<compile_context>
chip_gen: v6e
topology: v6e:2x2x1
jax: 0.10.0
libtpu: 0.0.40
codegen_flags: <defaults>
</compile_context>

<pallas_src>
import functools

import jax
import jax.numpy as jnp
import numpy as np
from jax import lax
from jax.experimental import pallas as pl
from jax.experimental.pallas import tpu as pltpu


# ----------------------------------------------------------------------------
# Pallas kernel
# ----------------------------------------------------------------------------
def _lstm_kernel(x_ref, wih1_ref, whh1_ref, b1_ref, wih2_ref, whh2_ref,
                 b2_ref, wlin_ref, blin_ref, out_ref, *, seq_len, future,
                 hidden):
    T = seq_len
    H = hidden
    B = out_ref.shape[0]            # padded batch (multiple of 8)
    L = out_ref.shape[1]            # lane-dense output slab width (128)

    wih1 = wih1_ref[...]            # (1, 4H)  f32
    whh1 = whh1_ref[...]            # (H, 4H)  bf16
    b1 = b1_ref[...]                # (1, 4H)  f32  (b_ih + b_hh fused)
    wih2 = wih2_ref[...]            # (H, 4H)  bf16
    whh2 = whh2_ref[...]            # (H, 4H)  bf16
    b2 = b2_ref[...]                # (1, 4H)  f32
    wlin = wlin_ref[...]            # (H, L)   bf16 (every column identical)
    blin = blin_ref[...]            # (1, 1)   f32

    def gates_to_hc(g, c):
        # Whole-vreg activations (2 EUP pushes over (B,4H)), then lane slices.
        sig = jax.nn.sigmoid(g)
        th = jnp.tanh(g)
        i = sig[:, 0:H]             # PyTorch LSTMCell gate order: i, f, g, o
        f = sig[:, H:2 * H]
        gg = th[:, 2 * H:3 * H]
        o = sig[:, 3 * H:4 * H]
        c_new = f * c + i * gg
        h_new = o * jnp.tanh(c_new)
        return h_new, c_new

    def step(xg_t, h1, c1, h2, c2):
        # Layer-2 recurrent term depends only on the PREVIOUS step's h2 ->
        # off the h1 critical path; the scheduler overlaps it with layer 1.
        g2_rec = jnp.dot(h2.astype(jnp.bfloat16), whh2,
                         preferred_element_type=jnp.float32)
        # Layer 1: input term precomputed; only the recurrent matmul remains.
        g1 = xg_t + jnp.dot(h1.astype(jnp.bfloat16), whh1,
                            preferred_element_type=jnp.float32)
        h1, c1 = gates_to_hc(g1, c1)
        # Layer 2: no concat — second small LHS matmul on the fresh h1.
        g2 = (jnp.dot(h1.astype(jnp.bfloat16), wih2,
                      preferred_element_type=jnp.float32) + g2_rec + b2)
        h2, c2 = gates_to_hc(g2, c2)
        # Linear head on the MXU with lane-replicated weights: every lane of
        # out_rep is the per-row output (no cross-lane reduce, no broadcast).
        out_rep = jnp.dot(h2.astype(jnp.bfloat16), wlin,
                          preferred_element_type=jnp.float32) + blin
        return out_rep, h1, c1, h2, c2

    zeros = jnp.zeros((B, H), jnp.float32)
    h1 = c1 = h2 = c2 = zeros

    lane = lax.broadcasted_iota(jnp.int32, (B, L), 1)
    outs = jnp.zeros((B, L), jnp.float32)
    out_rep = jnp.zeros((B, L), jnp.float32)

    # Fully unrolled static time loops (trip counts T and future).
    for t in range(T):
        # Per-step recompute of the x-gate term: short vreg live ranges,
        # 1 vld + mul + add that hides under MXU/EUP latency.
        x_t = x_ref[t * B:(t + 1) * B, :]        # (B, 1) static aligned slice
        xg_t = x_t * wih1 + b1                    # (B, 4H)
        out_rep, h1, c1, h2, c2 = step(xg_t, h1, c1, h2, c2)
        outs = jnp.where(lane == t, out_rep, outs)

    for k in range(future):
        if 4 * H == L:
            # All lanes of out_rep are identical and 4H == L: the feedback
            # input-gate term is a pure elementwise op, no lane broadcast.
            xg_t = out_rep * wih1 + b1
        else:
            xg_t = out_rep[:, 0:1] * wih1 + b1
        out_rep, h1, c1, h2, c2 = step(xg_t, h1, c1, h2, c2)
        outs = jnp.where(lane == (T + k), out_rep, outs)

    out_ref[...] = outs                           # single lane-dense store


# ----------------------------------------------------------------------------
# Parameter init (PyTorch LSTMCell/Linear shapes, uniform(-1/sqrt(H), 1/sqrt(H)))
# packed for the kernel: transposed weights, fused biases, bf16 MXU operands,
# lane-replicated head weight.
# ----------------------------------------------------------------------------
def init_params(key, hidden, head_lanes=128):
    H = hidden
    bound = 1.0 / np.sqrt(H)
    keys = jax.random.split(key, 10)
    u = lambda k, shape: jax.random.uniform(k, shape, jnp.float32, -bound, bound)

    w_ih1 = u(keys[0], (4 * H, 1))
    w_hh1 = u(keys[1], (4 * H, H))
    b_ih1 = u(keys[2], (4 * H,))
    b_hh1 = u(keys[3], (4 * H,))
    w_ih2 = u(keys[4], (4 * H, H))
    w_hh2 = u(keys[5], (4 * H, H))
    b_ih2 = u(keys[6], (4 * H,))
    b_hh2 = u(keys[7], (4 * H,))
    w_lin = u(keys[8], (1, H))
    b_lin = u(keys[9], (1,))

    return dict(
        wih1_t=w_ih1.T,                                         # (1, 4H)  f32
        whh1_t=w_hh1.T.astype(jnp.bfloat16),                    # (H, 4H)  bf16
        b1=(b_ih1 + b_hh1)[None, :],                            # (1, 4H)  f32
        wih2_t=w_ih2.T.astype(jnp.bfloat16),                    # (H, 4H)  bf16
        whh2_t=w_hh2.T.astype(jnp.bfloat16),                    # (H, 4H)  bf16
        b2=(b_ih2 + b_hh2)[None, :],                            # (1, 4H)  f32
        wlin_rep=jnp.tile(w_lin.T, (1, head_lanes)).astype(jnp.bfloat16),
                                                                # (H, 128) bf16
        wlin_col=w_lin.T.astype(jnp.bfloat16),                  # (H, 1)   bf16 (reference only)
        blin=b_lin[None, :],                                    # (1, 1)   f32
    )


# ----------------------------------------------------------------------------
# Wrapper (layout plumbing only: batch pad to 8, time-major column input,
# lane-dense output slab).
# ----------------------------------------------------------------------------
def lstm_forward(x, params, hidden, future=0):
    B, T = x.shape
    H = hidden
    TT = T + future
    # TODO(synk): generalize the outs slab to multiple lane-vregs if TT > 128.
    assert TT <= 128, "output slab limited to one vreg of lanes"
    Bp = ((B + 7) // 8) * 8                 # pad batch to sublane width
    out_lanes = 128                         # lane-dense output slab

    x_p = jnp.zeros((Bp, T), jnp.float32).at[:B, :].set(x.astype(jnp.float32))
    x_col = x_p.T.reshape(T * Bp, 1)        # time-major column

    kernel = functools.partial(_lstm_kernel, seq_len=T, future=future,
                               hidden=hidden)

    kernel_params = (params["wih1_t"], params["whh1_t"], params["b1"],
                     params["wih2_t"], params["whh2_t"], params["b2"],
                     params["wlin_rep"], params["blin"])

    flops = TT * Bp * (6 * H * 4 * H + 2 * H * out_lanes + 16 * H)
    transcendentals = TT * Bp * 2 * (2 * 4 * H + H)
    bytes_accessed = (x_col.size * 4 + Bp * out_lanes * 4
                      + sum(int(np.prod(v.shape)) * v.dtype.itemsize
                            for v in kernel_params))

    vmem = pl.BlockSpec(memory_space=pltpu.MemorySpace.VMEM)
    out = pl.pallas_call(
        kernel,
        out_shape=jax.ShapeDtypeStruct((Bp, out_lanes), jnp.float32),
        in_specs=[vmem] * 9,
        out_specs=vmem,
        cost_estimate=pl.CostEstimate(flops=int(flops),
                                      transcendentals=int(transcendentals),
                                      bytes_accessed=int(bytes_accessed)),
    )(x_col, *kernel_params)
    return out[:B, :TT]


# ----------------------------------------------------------------------------
# Pure-JAX reference (identical math, incl. bf16 MXU operands & split layer-2
# matmuls) for correctness.
# ----------------------------------------------------------------------------
def lstm_reference(x, params, hidden, future=0):
    B, T = x.shape
    H = hidden

    def gates_to_hc(g, c):
        i = jax.nn.sigmoid(g[:, 0:H])
        f = jax.nn.sigmoid(g[:, H:2 * H])
        gg = jnp.tanh(g[:, 2 * H:3 * H])
        o = jax.nn.sigmoid(g[:, 3 * H:4 * H])
        c_new = f * c + i * gg
        return o * jnp.tanh(c_new), c_new

    def step(x_t, state):
        h1, c1, h2, c2 = state
        g2_rec = jnp.dot(h2.astype(jnp.bfloat16), params["whh2_t"],
                         preferred_element_type=jnp.float32)
        g1 = (x_t * params["wih1_t"] + params["b1"]
              + jnp.dot(h1.astype(jnp.bfloat16), params["whh1_t"],
                        preferred_element_type=jnp.float32))
        h1, c1 = gates_to_hc(g1, c1)
        g2 = (jnp.dot(h1.astype(jnp.bfloat16), params["wih2_t"],
                      preferred_element_type=jnp.float32)
              + g2_rec + params["b2"])
        h2, c2 = gates_to_hc(g2, c2)
        out = (jnp.dot(h2.astype(jnp.bfloat16), params["wlin_col"],
                       preferred_element_type=jnp.float32) + params["blin"])
        return out, (h1, c1, h2, c2)

    zeros = jnp.zeros((B, H), jnp.float32)
    state = (zeros, zeros, zeros, zeros)
    outs = []
    out = jnp.zeros((B, 1), jnp.float32)
    for t in range(T):
        out, state = step(x[:, t:t + 1], state)
        outs.append(out)
    for _ in range(future):
        out, state = step(out, state)
        outs.append(out)
    return jnp.concatenate(outs, axis=1)


if __name__ == "__main__":
    B, T, H, FUTURE = 2, 8, 32, 4
    key = jax.random.PRNGKey(0)
    kx, kp = jax.random.split(key)

    x = jax.random.normal(kx, (B, T), jnp.float32)
    params = init_params(kp, H)

    out = lstm_forward(x, params, H, future=FUTURE)
    out = jax.block_until_ready(out)

    ref = lstm_reference(x, params, H, future=FUTURE)
    assert out.shape == (B, T + FUTURE)
    np.testing.assert_allclose(np.asarray(out), np.asarray(ref),
                               rtol=2e-3, atol=2e-3)
    print("KERNEL_OK")
</pallas_src>

<mosaic_0001>
module attributes {stable_mosaic.version = 11 : i64} {
  func.func @_lstm_kernel(%arg0: memref<64x1xf32, #tpu.memory_space<vmem>>, %arg1: memref<1x128xf32, #tpu.memory_space<vmem>>, %arg2: memref<32x128xbf16, #tpu.memory_space<vmem>>, %arg3: memref<1x128xf32, #tpu.memory_space<vmem>>, %arg4: memref<32x128xbf16, #tpu.memory_space<vmem>>, %arg5: memref<32x128xbf16, #tpu.memory_space<vmem>>, %arg6: memref<1x128xf32, #tpu.memory_space<vmem>>, %arg7: memref<32x128xbf16, #tpu.memory_space<vmem>>, %arg8: memref<1x1xf32, #tpu.memory_space<vmem>>, %arg9: memref<8x128xf32, #tpu.memory_space<vmem>>) attributes {dimension_semantics = [], scalar_prefetch = 0 : i64, scratch_operands = 0 : i64, tpu.core_type = #tpu.core_type<tc>} {
    %c0 = arith.constant 0 : index
    %c0_0 = arith.constant 0 : index
    %0 = vector.load %arg1[%c0, %c0_0] : memref<1x128xf32, #tpu.memory_space<vmem>>, vector<1x128xf32>
    %c0_1 = arith.constant 0 : index
    %c0_2 = arith.constant 0 : index
    %1 = vector.load %arg2[%c0_1, %c0_2] : memref<32x128xbf16, #tpu.memory_space<vmem>>, vector<32x128xbf16>
    %c0_3 = arith.constant 0 : index
    %c0_4 = arith.constant 0 : index
    %2 = vector.load %arg3[%c0_3, %c0_4] : memref<1x128xf32, #tpu.memory_space<vmem>>, vector<1x128xf32>
    %c0_5 = arith.constant 0 : index
    %c0_6 = arith.constant 0 : index
    %3 = vector.load %arg4[%c0_5, %c0_6] : memref<32x128xbf16, #tpu.memory_space<vmem>>, vector<32x128xbf16>
    %c0_7 = arith.constant 0 : index
    %c0_8 = arith.constant 0 : index
    %4 = vector.load %arg5[%c0_7, %c0_8] : memref<32x128xbf16, #tpu.memory_space<vmem>>, vector<32x128xbf16>
    %c0_9 = arith.constant 0 : index
    %c0_10 = arith.constant 0 : index
    %5 = vector.load %arg6[%c0_9, %c0_10] : memref<1x128xf32, #tpu.memory_space<vmem>>, vector<1x128xf32>
    %c0_11 = arith.constant 0 : index
    %c0_12 = arith.constant 0 : index
    %6 = vector.load %arg7[%c0_11, %c0_12] : memref<32x128xbf16, #tpu.memory_space<vmem>>, vector<32x128xbf16>
    %c0_13 = arith.constant 0 : index
    %c0_14 = arith.constant 0 : index
    %7 = vector.load %arg8[%c0_13, %c0_14] : memref<1x1xf32, #tpu.memory_space<vmem>>, vector<1x1xf32>
    %cst = arith.constant 0.000000e+00 : f32
    %8 = vector.broadcast %cst : f32 to vector<8x32xf32>
    %9 = tpu.iota {dimensions = array<i32: 1>} : vector<8x128xi32>
    %cst_15 = arith.constant 0.000000e+00 : f32
    %10 = vector.broadcast %cst_15 : f32 to vector<8x128xf32>
    %c0_16 = arith.constant 0 : index
    %c0_17 = arith.constant 0 : index
    %11 = vector.load %arg0[%c0_16, %c0_17] : memref<64x1xf32, #tpu.memory_space<vmem>>, vector<8x1xf32>
    %12 = vector.broadcast %11 : vector<8x1xf32> to vector<8x128xf32>
    %13 = vector.broadcast %0 : vector<1x128xf32> to vector<8x128xf32>
    %14 = arith.mulf %12, %13 : vector<8x128xf32>
    %15 = vector.broadcast %2 : vector<1x128xf32> to vector<8x128xf32>
    %16 = arith.addf %14, %15 : vector<8x128xf32>
    %17 = arith.truncf %8 : vector<8x32xf32> to vector<8x32xbf16>
    %cst_18 = arith.constant dense<0.000000e+00> : vector<8x128xf32>
    %18 = tpu.matmul %17, %4, %cst_18 {dimension_numbers = #tpu.dot_dimension_numbers<[1], [0], [0], [1], [0, 0, 1, 1], [], []>} : vector<8x32xbf16>, vector<32x128xbf16>, vector<8x128xf32> -> vector<8x128xf32>
    %19 = arith.truncf %8 : vector<8x32xf32> to vector<8x32xbf16>
    %cst_19 = arith.constant dense<0.000000e+00> : vector<8x128xf32>
    %20 = tpu.matmul %19, %1, %cst_19 {dimension_numbers = #tpu.dot_dimension_numbers<[1], [0], [0], [1], [0, 0, 1, 1], [], []>} : vector<8x32xbf16>, vector<32x128xbf16>, vector<8x128xf32> -> vector<8x128xf32>
    %21 = arith.addf %16, %20 : vector<8x128xf32>
    %22 = arith.negf %21 : vector<8x128xf32>
    %23 = math.exp %22 : vector<8x128xf32>
    %cst_20 = arith.constant 1.000000e+00 : f32
    %24 = vector.broadcast %cst_20 : f32 to vector<8x128xf32>
    %25 = arith.addf %24, %23 : vector<8x128xf32>
    %26 = arith.divf %24, %25 : vector<8x128xf32>
    %27 = math.tanh %21 : vector<8x128xf32>
    %28 = vector.extract_strided_slice %26 {offsets = [0, 0], sizes = [8, 32], strides = [1, 1]} : vector<8x128xf32> to vector<8x32xf32>
    %29 = vector.extract_strided_slice %26 {offsets = [0, 32], sizes = [8, 32], strides = [1, 1]} : vector<8x128xf32> to vector<8x32xf32>
    %30 = vector.extract_strided_slice %27 {offsets = [0, 64], sizes = [8, 32], strides = [1, 1]} : vector<8x128xf32> to vector<8x32xf32>
    %31 = vector.extract_strided_slice %26 {offsets = [0, 96], sizes = [8, 32], strides = [1, 1]} : vector<8x128xf32> to vector<8x32xf32>
    %32 = arith.mulf %29, %8 : vector<8x32xf32>
    %33 = arith.mulf %28, %30 : vector<8x32xf32>
    %34 = arith.addf %32, %33 : vector<8x32xf32>
    %35 = math.tanh %34 : vector<8x32xf32>
    %36 = arith.mulf %31, %35 : vector<8x32xf32>
    %37 = arith.truncf %36 : vector<8x32xf32> to vector<8x32xbf16>
    %cst_21 = arith.constant dense<0.000000e+00> : vector<8x128xf32>
    %38 = tpu.matmul %37, %3, %cst_21 {dimension_numbers = #tpu.dot_dimension_numbers<[1], [0], [0], [1], [0, 0, 1, 1], [], []>} : vector<8x32xbf16>, vector<32x128xbf16>, vector<8x128xf32> -> vector<8x128xf32>
    %39 = arith.addf %38, %18 : vector<8x128xf32>
    %40 = vector.broadcast %5 : vector<1x128xf32> to vector<8x128xf32>
    %41 = arith.addf %39, %40 : vector<8x128xf32>
    %42 = arith.negf %41 : vector<8x128xf32>
    %43 = math.exp %42 : vector<8x128xf32>
    %cst_22 = arith.constant 1.000000e+00 : f32
    %44 = vector.broadcast %cst_22 : f32 to vector<8x128xf32>
    %45 = arith.addf %44, %43 : vector<8x128xf32>
    %46 = arith.divf %44, %45 : vector<8x128xf32>
    %47 = math.tanh %41 : vector<8x128xf32>
    %48 = vector.extract_strided_slice %46 {offsets = [0, 0], sizes = [8, 32], strides = [1, 1]} : vector<8x128xf32> to vector<8x32xf32>
    %49 = vector.extract_strided_slice %46 {offsets = [0, 32], sizes = [8, 32], strides = [1, 1]} : vector<8x128xf32> to vector<8x32xf32>
    %50 = vector.extract_strided_slice %47 {offsets = [0, 64], sizes = [8, 32], strides = [1, 1]} : vector<8x128xf32> to vector<8x32xf32>
    %51 = vector.extract_strided_slice %46 {offsets = [0, 96], sizes = [8, 32], strides = [1, 1]} : vector<8x128xf32> to vector<8x32xf32>
    %52 = arith.mulf %49, %8 : vector<8x32xf32>
    %53 = arith.mulf %48, %50 : vector<8x32xf32>
    %54 = arith.addf %52, %53 : vector<8x32xf32>
    %55 = math.tanh %54 : vector<8x32xf32>
    %56 = arith.mulf %51, %55 : vector<8x32xf32>
    %57 = arith.truncf %56 : vector<8x32xf32> to vector<8x32xbf16>
    %cst_23 = arith.constant dense<0.000000e+00> : vector<8x128xf32>
    %58 = tpu.matmul %57, %6, %cst_23 {dimension_numbers = #tpu.dot_dimension_numbers<[1], [0], [0], [1], [0, 0, 1, 1], [], []>} : vector<8x32xbf16>, vector<32x128xbf16>, vector<8x128xf32> -> vector<8x128xf32>
    %59 = vector.broadcast %7 : vector<1x1xf32> to vector<8x128xf32>
    %60 = arith.addf %58, %59 : vector<8x128xf32>
    %c0_i32 = arith.constant 0 : i32
    %61 = vector.broadcast %c0_i32 : i32 to vector<8x128xi32>
    %62 = arith.cmpi eq, %9, %61 : vector<8x128xi32>
    %63 = arith.select %62, %60, %10 : vector<8x128xi1>, vector<8x128xf32>
    %c8 = arith.constant 8 : index
    %c0_24 = arith.constant 0 : index
    %64 = vector.load %arg0[%c8, %c0_24] : memref<64x1xf32, #tpu.memory_space<vmem>>, vector<8x1xf32>
    %65 = vector.broadcast %64 : vector<8x1xf32> to vector<8x128xf32>
    %66 = vector.broadcast %0 : vector<1x128xf32> to vector<8x128xf32>
    %67 = arith.mulf %65, %66 : vector<8x128xf32>
    %68 = vector.broadcast %2 : vector<1x128xf32> to vector<8x128xf32>
    %69 = arith.addf %67, %68 : vector<8x128xf32>
    %70 = arith.truncf %56 : vector<8x32xf32> to vector<8x32xbf16>
    %cst_25 = arith.constant dense<0.000000e+00> : vector<8x128xf32>
    %71 = tpu.matmul %70, %4, %cst_25 {dimension_numbers = #tpu.dot_dimension_numbers<[1], [0], [0], [1], [0, 0, 1, 1], [], []>} : vector<8x32xbf16>, vector<32x128xbf16>, vector<8x128xf32> -> vector<8x128xf32>
    %72 = arith.truncf %36 : vector<8x32xf32> to vector<8x32xbf16>
    %cst_26 = arith.constant dense<0.000000e+00> : vector<8x128xf32>
    %73 = tpu.matmul %72, %1, %cst_26 {dimension_numbers = #tpu.dot_dimension_numbers<[1], [0], [0], [1], [0, 0, 1, 1], [], []>} : vector<8x32xbf16>, vector<32x128xbf16>, vector<8x128xf32> -> vector<8x128xf32>
    %74 = arith.addf %69, %73 : vector<8x128xf32>
    %75 = arith.negf %74 : vector<8x128xf32>
    %76 = math.exp %75 : vector<8x128xf32>
    %cst_27 = arith.constant 1.000000e+00 : f32
    %77 = vector.broadcast %cst_27 : f32 to vector<8x128xf32>
    %78 = arith.addf %77, %76 : vector<8x128xf32>
    %79 = arith.divf %77, %78 : vector<8x128xf32>
    %80 = math.tanh %74 : vector<8x128xf32>
    %81 = vector.extract_strided_slice %79 {offsets = [0, 0], sizes = [8, 32], strides = [1, 1]} : vector<8x128xf32> to vector<8x32xf32>
    %82 = vector.extract_strided_slice %79 {offsets = [0, 32], sizes = [8, 32], strides = [1, 1]} : vector<8x128xf32> to vector<8x32xf32>
    %83 = vector.extract_strided_slice %80 {offsets = [0, 64], sizes = [8, 32], strides = [1, 1]} : vector<8x128xf32> to vector<8x32xf32>
    %84 = vector.extract_strided_slice %79 {offsets = [0, 96], sizes = [8, 32], strides = [1, 1]} : vector<8x128xf32> to vector<8x32xf32>
    %85 = arith.mulf %82, %34 : vector<8x32xf32>
    %86 = arith.mulf %81, %83 : vector<8x32xf32>
    %87 = arith.addf %85, %86 : vector<8x32xf32>
    %88 = math.tanh %87 : vector<8x32xf32>
    %89 = arith.mulf %84, %88 : vector<8x32xf32>
    %90 = arith.truncf %89 : vector<8x32xf32> to vector<8x32xbf16>
    %cst_28 = arith.constant dense<0.000000e+00> : vector<8x128xf32>
    %91 = tpu.matmul %90, %3, %cst_28 {dimension_numbers = #tpu.dot_dimension_numbers<[1], [0], [0], [1], [0, 0, 1, 1], [], []>} : vector<8x32xbf16>, vector<32x128xbf16>, vector<8x128xf32> -> vector<8x128xf32>
    %92 = arith.addf %91, %71 : vector<8x128xf32>
    %93 = vector.broadcast %5 : vector<1x128xf32> to vector<8x128xf32>
    %94 = arith.addf %92, %93 : vector<8x128xf32>
    %95 = arith.negf %94 : vector<8x128xf32>
    %96 = math.exp %95 : vector<8x128xf32>
    %cst_29 = arith.constant 1.000000e+00 : f32
    %97 = vector.broadcast %cst_29 : f32 to vector<8x128xf32>
    %98 = arith.addf %97, %96 : vector<8x128xf32>
    %99 = arith.divf %97, %98 : vector<8x128xf32>
    %100 = math.tanh %94 : vector<8x128xf32>
    %101 = vector.extract_strided_slice %99 {offsets = [0, 0], sizes = [8, 32], strides = [1, 1]} : vector<8x128xf32> to vector<8x32xf32>
    %102 = vector.extract_strided_slice %99 {offsets = [0, 32], sizes = [8, 32], strides = [1, 1]} : vector<8x128xf32> to vector<8x32xf32>
    %103 = vector.extract_strided_slice %100 {offsets = [0, 64], sizes = [8, 32], strides = [1, 1]} : vector<8x128xf32> to vector<8x32xf32>
    %104 = vector.extract_strided_slice %99 {offsets = [0, 96], sizes = [8, 32], strides = [1, 1]} : vector<8x128xf32> to vector<8x32xf32>
    %105 = arith.mulf %102, %54 : vector<8x32xf32>
    %106 = arith.mulf %101, %103 : vector<8x32xf32>
    %107 = arith.addf %105, %106 : vector<8x32xf32>
    %108 = math.tanh %107 : vector<8x32xf32>
    %109 = arith.mulf %104, %108 : vector<8x32xf32>
    %110 = arith.truncf %109 : vector<8x32xf32> to vector<8x32xbf16>
    %cst_30 = arith.constant dense<0.000000e+00> : vector<8x128xf32>
    %111 = tpu.matmul %110, %6, %cst_30 {dimension_numbers = #tpu.dot_dimension_numbers<[1], [0], [0], [1], [0, 0, 1, 1], [], []>} : vector<8x32xbf16>, vector<32x128xbf16>, vector<8x128xf32> -> vector<8x128xf32>
    %112 = vector.broadcast %7 : vector<1x1xf32> to vector<8x128xf32>
    %113 = arith.addf %111, %112 : vector<8x128xf32>
    %c1_i32 = arith.constant 1 : i32
    %114 = vector.broadcast %c1_i32 : i32 to vector<8x128xi32>
    %115 = arith.cmpi eq, %9, %114 : vector<8x128xi32>
    %116 = arith.select %115, %113, %63 : vector<8x128xi1>, vector<8x128xf32>
    %c16 = arith.constant 16 : index
    %c0_31 = arith.constant 0 : index
    %117 = vector.load %arg0[%c16, %c0_31] : memref<64x1xf32, #tpu.memory_space<vmem>>, vector<8x1xf32>
    %118 = vector.broadcast %117 : vector<8x1xf32> to vector<8x128xf32>
    %119 = vector.broadcast %0 : vector<1x128xf32> to vector<8x128xf32>
    %120 = arith.mulf %118, %119 : vector<8x128xf32>
    %121 = vector.broadcast %2 : vector<1x128xf32> to vector<8x128xf32>
    %122 = arith.addf %120, %121 : vector<8x128xf32>
    %123 = arith.truncf %109 : vector<8x32xf32> to vector<8x32xbf16>
    %cst_32 = arith.constant dense<0.000000e+00> : vector<8x128xf32>
    %124 = tpu.matmul %123, %4, %cst_32 {dimension_numbers = #tpu.dot_dimension_numbers<[1], [0], [0], [1], [0, 0, 1, 1], [], []>} : vector<8x32xbf16>, vector<32x128xbf16>, vector<8x128xf32> -> vector<8x128xf32>
    %125 = arith.truncf %89 : vector<8x32xf32> to vector<8x32xbf16>
    %cst_33 = arith.constant dense<0.000000e+00> : vector<8x128xf32>
    %126 = tpu.matmul %125, %1, %cst_33 {dimension_numbers = #tpu.dot_dimension_numbers<[1], [0], [0], [1], [0, 0, 1, 1], [], []>} : vector<8x32xbf16>, vector<32x128xbf16>, vector<8x128xf32> -> vector<8x128xf32>
    %127 = arith.addf %122, %126 : vector<8x128xf32>
    %128 = arith.negf %127 : vector<8x128xf32>
    %129 = math.exp %128 : vector<8x128xf32>
    %cst_34 = arith.constant 1.000000e+00 : f32
    %130 = vector.broadcast %cst_34 : f32 to vector<8x128xf32>
    %131 = arith.addf %130, %129 : vector<8x128xf32>
    %132 = arith.divf %130, %131 : vector<8x128xf32>
    %133 = math.tanh %127 : vector<8x128xf32>
    %134 = vector.extract_strided_slice %132 {offsets = [0, 0], sizes = [8, 32], strides = [1, 1]} : vector<8x128xf32> to vector<8x32xf32>
    %135 = vector.extract_strided_slice %132 {offsets = [0, 32], sizes = [8, 32], strides = [1, 1]} : vector<8x128xf32> to vector<8x32xf32>
    %136 = vector.extract_strided_slice %133 {offsets = [0, 64], sizes = [8, 32], strides = [1, 1]} : vector<8x128xf32> to vector<8x32xf32>
    %137 = vector.extract_strided_slice %132 {offsets = [0, 96], sizes = [8, 32], strides = [1, 1]} : vector<8x128xf32> to vector<8x32xf32>
    %138 = arith.mulf %135, %87 : vector<8x32xf32>
    %139 = arith.mulf %134, %136 : vector<8x32xf32>
    %140 = arith.addf %138, %139 : vector<8x32xf32>
    %141 = math.tanh %140 : vector<8x32xf32>
    %142 = arith.mulf %137, %141 : vector<8x32xf32>
    %143 = arith.truncf %142 : vector<8x32xf32> to vector<8x32xbf16>
    %cst_35 = arith.constant dense<0.000000e+00> : vector<8x128xf32>
    %144 = tpu.matmul %143, %3, %cst_35 {dimension_numbers = #tpu.dot_dimension_numbers<[1], [0], [0], [1], [0, 0, 1, 1], [], []>} : vector<8x32xbf16>, vector<32x128xbf16>, vector<8x128xf32> -> vector<8x128xf32>
    %145 = arith.addf %144, %124 : vector<8x128xf32>
    %146 = vector.broadcast %5 : vector<1x128xf32> to vector<8x128xf32>
    %147 = arith.addf %145, %146 : vector<8x128xf32>
    %148 = arith.negf %147 : vector<8x128xf32>
    %149 = math.exp %148 : vector<8x128xf32>
    %cst_36 = arith.constant 1.000000e+00 : f32
    %150 = vector.broadcast %cst_36 : f32 to vector<8x128xf32>
    %151 = arith.addf %150, %149 : vector<8x128xf32>
    %152 = arith.divf %150, %151 : vector<8x128xf32>
    %153 = math.tanh %147 : vector<8x128xf32>
    %154 = vector.extract_strided_slice %152 {offsets = [0, 0], sizes = [8, 32], strides = [1, 1]} : vector<8x128xf32> to vector<8x32xf32>
    %155 = vector.extract_strided_slice %152 {offsets = [0, 32], sizes = [8, 32], strides = [1, 1]} : vector<8x128xf32> to vector<8x32xf32>
    %156 = vector.extract_strided_slice %153 {offsets = [0, 64], sizes = [8, 32], strides = [1, 1]} : vector<8x128xf32> to vector<8x32xf32>
    %157 = vector.extract_strided_slice %152 {offsets = [0, 96], sizes = [8, 32], strides = [1, 1]} : vector<8x128xf32> to vector<8x32xf32>
    %158 = arith.mulf %155, %107 : vector<8x32xf32>
    %159 = arith.mulf %154, %156 : vector<8x32xf32>
    %160 = arith.addf %158, %159 : vector<8x32xf32>
    %161 = math.tanh %160 : vector<8x32xf32>
    %162 = arith.mulf %157, %161 : vector<8x32xf32>
    %163 = arith.truncf %162 : vector<8x32xf32> to vector<8x32xbf16>
    %cst_37 = arith.constant dense<0.000000e+00> : vector<8x128xf32>
    %164 = tpu.matmul %163, %6, %cst_37 {dimension_numbers = #tpu.dot_dimension_numbers<[1], [0], [0], [1], [0, 0, 1, 1], [], []>} : vector<8x32xbf16>, vector<32x128xbf16>, vector<8x128xf32> -> vector<8x128xf32>
    %165 = vector.broadcast %7 : vector<1x1xf32> to vector<8x128xf32>
    %166 = arith.addf %164, %165 : vector<8x128xf32>
    %c2_i32 = arith.constant 2 : i32
    %167 = vector.broadcast %c2_i32 : i32 to vector<8x128xi32>
    %168 = arith.cmpi eq, %9, %167 : vector<8x128xi32>
    %169 = arith.select %168, %166, %116 : vector<8x128xi1>, vector<8x128xf32>
    %c24 = arith.constant 24 : index
    %c0_38 = arith.constant 0 : index
    %170 = vector.load %arg0[%c24, %c0_38] : memref<64x1xf32, #tpu.memory_space<vmem>>, vector<8x1xf32>
    %171 = vector.broadcast %170 : vector<8x1xf32> to vector<8x128xf32>
    %172 = vector.broadcast %0 : vector<1x128xf32> to vector<8x128xf32>
    %173 = arith.mulf %171, %172 : vector<8x128xf32>
    %174 = vector.broadcast %2 : vector<1x128xf32> to vector<8x128xf32>
    %175 = arith.addf %173, %174 : vector<8x128xf32>
    %176 = arith.truncf %162 : vector<8x32xf32> to vector<8x32xbf16>
    %cst_39 = arith.constant dense<0.000000e+00> : vector<8x128xf32>
    %177 = tpu.matmul %176, %4, %cst_39 {dimension_numbers = #tpu.dot_dimension_numbers<[1], [0], [0], [1], [0, 0, 1, 1], [], []>} : vector<8x32xbf16>, vector<32x128xbf16>, vector<8x128xf32> -> vector<8x128xf32>
    %178 = arith.truncf %142 : vector<8x32xf32> to vector<8x32xbf16>
    %cst_40 = arith.constant dense<0.000000e+00> : vector<8x128xf32>
    %179 = tpu.matmul %178, %1, %cst_40 {dimension_numbers = #tpu.dot_dimension_numbers<[1], [0], [0], [1], [0, 0, 1, 1], [], []>} : vector<8x32xbf16>, vector<32x128xbf16>, vector<8x128xf32> -> vector<8x128xf32>
    %180 = arith.addf %175, %179 : vector<8x128xf32>
    %181 = arith.negf %180 : vector<8x128xf32>
    %182 = math.exp %181 : vector<8x128xf32>
    %cst_41 = arith.constant 1.000000e+00 : f32
    %183 = vector.broadcast %cst_41 : f32 to vector<8x128xf32>
    %184 = arith.addf %183, %182 : vector<8x128xf32>
    %185 = arith.divf %183, %184 : vector<8x128xf32>
    %186 = math.tanh %180 : vector<8x128xf32>
    %187 = vector.extract_strided_slice %185 {offsets = [0, 0], sizes = [8, 32], strides = [1, 1]} : vector<8x128xf32> to vector<8x32xf32>
    %188 = vector.extract_strided_slice %185 {offsets = [0, 32], sizes = [8, 32], strides = [1, 1]} : vector<8x128xf32> to vector<8x32xf32>
    %189 = vector.extract_strided_slice %186 {offsets = [0, 64], sizes = [8, 32], strides = [1, 1]} : vector<8x128xf32> to vector<8x32xf32>
    %190 = vector.extract_strided_slice %185 {offsets = [0, 96], sizes = [8, 32], strides = [1, 1]} : vector<8x128xf32> to vector<8x32xf32>
    %191 = arith.mulf %188, %140 : vector<8x32xf32>
    %192 = arith.mulf %187, %189 : vector<8x32xf32>
    %193 = arith.addf %191, %192 : vector<8x32xf32>
    %194 = math.tanh %193 : vector<8x32xf32>
    %195 = arith.mulf %190, %194 : vector<8x32xf32>
    %196 = arith.truncf %195 : vector<8x32xf32> to vector<8x32xbf16>
    %cst_42 = arith.constant dense<0.000000e+00> : vector<8x128xf32>
    %197 = tpu.matmul %196, %3, %cst_42 {dimension_numbers = #tpu.dot_dimension_numbers<[1], [0], [0], [1], [0, 0, 1, 1], [], []>} : vector<8x32xbf16>, vector<32x128xbf16>, vector<8x128xf32> -> vector<8x128xf32>
    %198 = arith.addf %197, %177 : vector<8x128xf32>
    %199 = vector.broadcast %5 : vector<1x128xf32> to vector<8x128xf32>
    %200 = arith.addf %198, %199 : vector<8x128xf32>
    %201 = arith.negf %200 : vector<8x128xf32>
    %202 = math.exp %201 : vector<8x128xf32>
    %cst_43 = arith.constant 1.000000e+00 : f32
    %203 = vector.broadcast %cst_43 : f32 to vector<8x128xf32>
    %204 = arith.addf %203, %202 : vector<8x128xf32>
    %205 = arith.divf %203, %204 : vector<8x128xf32>
    %206 = math.tanh %200 : vector<8x128xf32>
    %207 = vector.extract_strided_slice %205 {offsets = [0, 0], sizes = [8, 32], strides = [1, 1]} : vector<8x128xf32> to vector<8x32xf32>
    %208 = vector.extract_strided_slice %205 {offsets = [0, 32], sizes = [8, 32], strides = [1, 1]} : vector<8x128xf32> to vector<8x32xf32>
    %209 = vector.extract_strided_slice %206 {offsets = [0, 64], sizes = [8, 32], strides = [1, 1]} : vector<8x128xf32> to vector<8x32xf32>
    %210 = vector.extract_strided_slice %205 {offsets = [0, 96], sizes = [8, 32], strides = [1, 1]} : vector<8x128xf32> to vector<8x32xf32>
    %211 = arith.mulf %208, %160 : vector<8x32xf32>
    %212 = arith.mulf %207, %209 : vector<8x32xf32>
    %213 = arith.addf %211, %212 : vector<8x32xf32>
    %214 = math.tanh %213 : vector<8x32xf32>
    %215 = arith.mulf %210, %214 : vector<8x32xf32>
    %216 = arith.truncf %215 : vector<8x32xf32> to vector<8x32xbf16>
    %cst_44 = arith.constant dense<0.000000e+00> : vector<8x128xf32>
    %217 = tpu.matmul %216, %6, %cst_44 {dimension_numbers = #tpu.dot_dimension_numbers<[1], [0], [0], [1], [0, 0, 1, 1], [], []>} : vector<8x32xbf16>, vector<32x128xbf16>, vector<8x128xf32> -> vector<8x128xf32>
    %218 = vector.broadcast %7 : vector<1x1xf32> to vector<8x128xf32>
    %219 = arith.addf %217, %218 : vector<8x128xf32>
    %c3_i32 = arith.constant 3 : i32
    %220 = vector.broadcast %c3_i32 : i32 to vector<8x128xi32>
    %221 = arith.cmpi eq, %9, %220 : vector<8x128xi32>
    %222 = arith.select %221, %219, %169 : vector<8x128xi1>, vector<8x128xf32>
    %c32 = arith.constant 32 : index
    %c0_45 = arith.constant 0 : index
    %223 = vector.load %arg0[%c32, %c0_45] : memref<64x1xf32, #tpu.memory_space<vmem>>, vector<8x1xf32>
    %224 = vector.broadcast %223 : vector<8x1xf32> to vector<8x128xf32>
    %225 = vector.broadcast %0 : vector<1x128xf32> to vector<8x128xf32>
    %226 = arith.mulf %224, %225 : vector<8x128xf32>
    %227 = vector.broadcast %2 : vector<1x128xf32> to vector<8x128xf32>
    %228 = arith.addf %226, %227 : vector<8x128xf32>
    %229 = arith.truncf %215 : vector<8x32xf32> to vector<8x32xbf16>
    %cst_46 = arith.constant dense<0.000000e+00> : vector<8x128xf32>
    %230 = tpu.matmul %229, %4, %cst_46 {dimension_numbers = #tpu.dot_dimension_numbers<[1], [0], [0], [1], [0, 0, 1, 1], [], []>} : vector<8x32xbf16>, vector<32x128xbf16>, vector<8x128xf32> -> vector<8x128xf32>
    %231 = arith.truncf %195 : vector<8x32xf32> to vector<8x32xbf16>
    %cst_47 = arith.constant dense<0.000000e+00> : vector<8x128xf32>
    %232 = tpu.matmul %231, %1, %cst_47 {dimension_numbers = #tpu.dot_dimension_numbers<[1], [0], [0], [1], [0, 0, 1, 1], [], []>} : vector<8x32xbf16>, vector<32x128xbf16>, vector<8x128xf32> -> vector<8x128xf32>
    %233 = arith.addf %228, %232 : vector<8x128xf32>
    %234 = arith.negf %233 : vector<8x128xf32>
    %235 = math.exp %234 : vector<8x128xf32>
    %cst_48 = arith.constant 1.000000e+00 : f32
    %236 = vector.broadcast %cst_48 : f32 to vector<8x128xf32>
    %237 = arith.addf %236, %235 : vector<8x128xf32>
    %238 = arith.divf %236, %237 : vector<8x128xf32>
    %239 = math.tanh %233 : vector<8x128xf32>
    %240 = vector.extract_strided_slice %238 {offsets = [0, 0], sizes = [8, 32], strides = [1, 1]} : vector<8x128xf32> to vector<8x32xf32>
    %241 = vector.extract_strided_slice %238 {offsets = [0, 32], sizes = [8, 32], strides = [1, 1]} : vector<8x128xf32> to vector<8x32xf32>
    %242 = vector.extract_strided_slice %239 {offsets = [0, 64], sizes = [8, 32], strides = [1, 1]} : vector<8x128xf32> to vector<8x32xf32>
    %243 = vector.extract_strided_slice %238 {offsets = [0, 96], sizes = [8, 32], strides = [1, 1]} : vector<8x128xf32> to vector<8x32xf32>
    %244 = arith.mulf %241, %193 : vector<8x32xf32>
    %245 = arith.mulf %240, %242 : vector<8x32xf32>
    %246 = arith.addf %244, %245 : vector<8x32xf32>
    %247 = math.tanh %246 : vector<8x32xf32>
    %248 = arith.mulf %243, %247 : vector<8x32xf32>
    %249 = arith.truncf %248 : vector<8x32xf32> to vector<8x32xbf16>
    %cst_49 = arith.constant dense<0.000000e+00> : vector<8x128xf32>
    %250 = tpu.matmul %249, %3, %cst_49 {dimension_numbers = #tpu.dot_dimension_numbers<[1], [0], [0], [1], [0, 0, 1, 1], [], []>} : vector<8x32xbf16>, vector<32x128xbf16>, vector<8x128xf32> -> vector<8x128xf32>
    %251 = arith.addf %250, %230 : vector<8x128xf32>
    %252 = vector.broadcast %5 : vector<1x128xf32> to vector<8x128xf32>
    %253 = arith.addf %251, %252 : vector<8x128xf32>
    %254 = arith.negf %253 : vector<8x128xf32>
    %255 = math.exp %254 : vector<8x128xf32>
    %cst_50 = arith.constant 1.000000e+00 : f32
    %256 = vector.broadcast %cst_50 : f32 to vector<8x128xf32>
    %257 = arith.addf %256, %255 : vector<8x128xf32>
    %258 = arith.divf %256, %257 : vector<8x128xf32>
    %259 = math.tanh %253 : vector<8x128xf32>
    %260 = vector.extract_strided_slice %258 {offsets = [0, 0], sizes = [8, 32], strides = [1, 1]} : vector<8x128xf32> to vector<8x32xf32>
    %261 = vector.extract_strided_slice %258 {offsets = [0, 32], sizes = [8, 32], strides = [1, 1]} : vector<8x128xf32> to vector<8x32xf32>
    %262 = vector.extract_strided_slice %259 {offsets = [0, 64], sizes = [8, 32], strides = [1, 1]} : vector<8x128xf32> to vector<8x32xf32>
    %263 = vector.extract_strided_slice %258 {offsets = [0, 96], sizes = [8, 32], strides = [1, 1]} : vector<8x128xf32> to vector<8x32xf32>
    %264 = arith.mulf %261, %213 : vector<8x32xf32>
    %265 = arith.mulf %260, %262 : vector<8x32xf32>
    %266 = arith.addf %264, %265 : vector<8x32xf32>
    %267 = math.tanh %266 : vector<8x32xf32>
    %268 = arith.mulf %263, %267 : vector<8x32xf32>
    %269 = arith.truncf %268 : vector<8x32xf32> to vector<8x32xbf16>
    %cst_51 = arith.constant dense<0.000000e+00> : vector<8x128xf32>
    %270 = tpu.matmul %269, %6, %cst_51 {dimension_numbers = #tpu.dot_dimension_numbers<[1], [0], [0], [1], [0, 0, 1, 1], [], []>} : vector<8x32xbf16>, vector<32x128xbf16>, vector<8x128xf32> -> vector<8x128xf32>
    %271 = vector.broadcast %7 : vector<1x1xf32> to vector<8x128xf32>
    %272 = arith.addf %270, %271 : vector<8x128xf32>
    %c4_i32 = arith.constant 4 : i32
    %273 = vector.broadcast %c4_i32 : i32 to vector<8x128xi32>
    %274 = arith.cmpi eq, %9, %273 : vector<8x128xi32>
    %275 = arith.select %274, %272, %222 : vector<8x128xi1>, vector<8x128xf32>
    %c40 = arith.constant 40 : index
    %c0_52 = arith.constant 0 : index
    %276 = vector.load %arg0[%c40, %c0_52] : memref<64x1xf32, #tpu.memory_space<vmem>>, vector<8x1xf32>
    %277 = vector.broadcast %276 : vector<8x1xf32> to vector<8x128xf32>
    %278 = vector.broadcast %0 : vector<1x128xf32> to vector<8x128xf32>
    %279 = arith.mulf %277, %278 : vector<8x128xf32>
    %280 = vector.broadcast %2 : vector<1x128xf32> to vector<8x128xf32>
    %281 = arith.addf %279, %280 : vector<8x128xf32>
    %282 = arith.truncf %268 : vector<8x32xf32> to vector<8x32xbf16>
    %cst_53 = arith.constant dense<0.000000e+00> : vector<8x128xf32>
    %283 = tpu.matmul %282, %4, %cst_53 {dimension_numbers = #tpu.dot_dimension_numbers<[1], [0], [0], [1], [0, 0, 1, 1], [], []>} : vector<8x32xbf16>, vector<32x128xbf16>, vector<8x128xf32> -> vector<8x128xf32>
    %284 = arith.truncf %248 : vector<8x32xf32> to vector<8x32xbf16>
    %cst_54 = arith.constant dense<0.000000e+00> : vector<8x128xf32>
    %285 = tpu.matmul %284, %1, %cst_54 {dimension_numbers = #tpu.dot_dimension_numbers<[1], [0], [0], [1], [0, 0, 1, 1], [], []>} : vector<8x32xbf16>, vector<32x128xbf16>, vector<8x128xf32> -> vector<8x128xf32>
    %286 = arith.addf %281, %285 : vector<8x128xf32>
    %287 = arith.negf %286 : vector<8x128xf32>
    %288 = math.exp %287 : vector<8x128xf32>
    %cst_55 = arith.constant 1.000000e+00 : f32
    %289 = vector.broadcast %cst_55 : f32 to vector<8x128xf32>
    %290 = arith.addf %289, %288 : vector<8x128xf32>
    %291 = arith.divf %289, %290 : vector<8x128xf32>
    %292 = math.tanh %286 : vector<8x128xf32>
    %293 = vector.extract_strided_slice %291 {offsets = [0, 0], sizes = [8, 32], strides = [1, 1]} : vector<8x128xf32> to vector<8x32xf32>
    %294 = vector.extract_strided_slice %291 {offsets = [0, 32], sizes = [8, 32], strides = [1, 1]} : vector<8x128xf32> to vector<8x32xf32>
    %295 = vector.extract_strided_slice %292 {offsets = [0, 64], sizes = [8, 32], strides = [1, 1]} : vector<8x128xf32> to vector<8x32xf32>
    %296 = vector.extract_strided_slice %291 {offsets = [0, 96], sizes = [8, 32], strides = [1, 1]} : vector<8x128xf32> to vector<8x32xf32>
    %297 = arith.mulf %294, %246 : vector<8x32xf32>
    %298 = arith.mulf %293, %295 : vector<8x32xf32>
    %299 = arith.addf %297, %298 : vector<8x32xf32>
    %300 = math.tanh %299 : vector<8x32xf32>
    %301 = arith.mulf %296, %300 : vector<8x32xf32>
    %302 = arith.truncf %301 : vector<8x32xf32> to vector<8x32xbf16>
    %cst_56 = arith.constant dense<0.000000e+00> : vector<8x128xf32>
    %303 = tpu.matmul %302, %3, %cst_56 {dimension_numbers = #tpu.dot_dimension_numbers<[1], [0], [0], [1], [0, 0, 1, 1], [], []>} : vector<8x32xbf16>, vector<32x128xbf16>, vector<8x128xf32> -> vector<8x128xf32>
    %304 = arith.addf %303, %283 : vector<8x128xf32>
    %305 = vector.broadcast %5 : vector<1x128xf32> to vector<8x128xf32>
    %306 = arith.addf %304, %305 : vector<8x128xf32>
    %307 = arith.negf %306 : vector<8x128xf32>
    %308 = math.exp %307 : vector<8x128xf32>
    %cst_57 = arith.constant 1.000000e+00 : f32
    %309 = vector.broadcast %cst_57 : f32 to vector<8x128xf32>
    %310 = arith.addf %309, %308 : vector<8x128xf32>
    %311 = arith.divf %309, %310 : vector<8x128xf32>
    %312 = math.tanh %306 : vector<8x128xf32>
    %313 = vector.extract_strided_slice %311 {offsets = [0, 0], sizes = [8, 32], strides = [1, 1]} : vector<8x128xf32> to vector<8x32xf32>
    %314 = vector.extract_strided_slice %311 {offsets = [0, 32], sizes = [8, 32], strides = [1, 1]} : vector<8x128xf32> to vector<8x32xf32>
    %315 = vector.extract_strided_slice %312 {offsets = [0, 64], sizes = [8, 32], strides = [1, 1]} : vector<8x128xf32> to vector<8x32xf32>
    %316 = vector.extract_strided_slice %311 {offsets = [0, 96], sizes = [8, 32], strides = [1, 1]} : vector<8x128xf32> to vector<8x32xf32>
    %317 = arith.mulf %314, %266 : vector<8x32xf32>
    %318 = arith.mulf %313, %315 : vector<8x32xf32>
    %319 = arith.addf %317, %318 : vector<8x32xf32>
    %320 = math.tanh %319 : vector<8x32xf32>
    %321 = arith.mulf %316, %320 : vector<8x32xf32>
    %322 = arith.truncf %321 : vector<8x32xf32> to vector<8x32xbf16>
    %cst_58 = arith.constant dense<0.000000e+00> : vector<8x128xf32>
    %323 = tpu.matmul %322, %6, %cst_58 {dimension_numbers = #tpu.dot_dimension_numbers<[1], [0], [0], [1], [0, 0, 1, 1], [], []>} : vector<8x32xbf16>, vector<32x128xbf16>, vector<8x128xf32> -> vector<8x128xf32>
    %324 = vector.broadcast %7 : vector<1x1xf32> to vector<8x128xf32>
    %325 = arith.addf %323, %324 : vector<8x128xf32>
    %c5_i32 = arith.constant 5 : i32
    %326 = vector.broadcast %c5_i32 : i32 to vector<8x128xi32>
    %327 = arith.cmpi eq, %9, %326 : vector<8x128xi32>
    %328 = arith.select %327, %325, %275 : vector<8x128xi1>, vector<8x128xf32>
    %c48 = arith.constant 48 : index
    %c0_59 = arith.constant 0 : index
    %329 = vector.load %arg0[%c48, %c0_59] : memref<64x1xf32, #tpu.memory_space<vmem>>, vector<8x1xf32>
    %330 = vector.broadcast %329 : vector<8x1xf32> to vector<8x128xf32>
    %331 = vector.broadcast %0 : vector<1x128xf32> to vector<8x128xf32>
    %332 = arith.mulf %330, %331 : vector<8x128xf32>
    %333 = vector.broadcast %2 : vector<1x128xf32> to vector<8x128xf32>
    %334 = arith.addf %332, %333 : vector<8x128xf32>
    %335 = arith.truncf %321 : vector<8x32xf32> to vector<8x32xbf16>
    %cst_60 = arith.constant dense<0.000000e+00> : vector<8x128xf32>
    %336 = tpu.matmul %335, %4, %cst_60 {dimension_numbers = #tpu.dot_dimension_numbers<[1], [0], [0], [1], [0, 0, 1, 1], [], []>} : vector<8x32xbf16>, vector<32x128xbf16>, vector<8x128xf32> -> vector<8x128xf32>
    %337 = arith.truncf %301 : vector<8x32xf32> to vector<8x32xbf16>
    %cst_61 = arith.constant dense<0.000000e+00> : vector<8x128xf32>
    %338 = tpu.matmul %337, %1, %cst_61 {dimension_numbers = #tpu.dot_dimension_numbers<[1], [0], [0], [1], [0, 0, 1, 1], [], []>} : vector<8x32xbf16>, vector<32x128xbf16>, vector<8x128xf32> -> vector<8x128xf32>
    %339 = arith.addf %334, %338 : vector<8x128xf32>
    %340 = arith.negf %339 : vector<8x128xf32>
    %341 = math.exp %340 : vector<8x128xf32>
    %cst_62 = arith.constant 1.000000e+00 : f32
    %342 = vector.broadcast %cst_62 : f32 to vector<8x128xf32>
    %343 = arith.addf %342, %341 : vector<8x128xf32>
    %344 = arith.divf %342, %343 : vector<8x128xf32>
    %345 = math.tanh %339 : vector<8x128xf32>
    %346 = vector.extract_strided_slice %344 {offsets = [0, 0], sizes = [8, 32], strides = [1, 1]} : vector<8x128xf32> to vector<8x32xf32>
    %347 = vector.extract_strided_slice %344 {offsets = [0, 32], sizes = [8, 32], strides = [1, 1]} : vector<8x128xf32> to vector<8x32xf32>
    %348 = vector.extract_strided_slice %345 {offsets = [0, 64], sizes = [8, 32], strides = [1, 1]} : vector<8x128xf32> to vector<8x32xf32>
    %349 = vector.extract_strided_slice %344 {offsets = [0, 96], sizes = [8, 32], strides = [1, 1]} : vector<8x128xf32> to vector<8x32xf32>
    %350 = arith.mulf %347, %299 : vector<8x32xf32>
    %351 = arith.mulf %346, %348 : vector<8x32xf32>
    %352 = arith.addf %350, %351 : vector<8x32xf32>
    %353 = math.tanh %352 : vector<8x32xf32>
    %354 = arith.mulf %349, %353 : vector<8x32xf32>
    %355 = arith.truncf %354 : vector<8x32xf32> to vector<8x32xbf16>
    %cst_63 = arith.constant dense<0.000000e+00> : vector<8x128xf32>
    %356 = tpu.matmul %355, %3, %cst_63 {dimension_numbers = #tpu.dot_dimension_numbers<[1], [0], [0], [1], [0, 0, 1, 1], [], []>} : vector<8x32xbf16>, vector<32x128xbf16>, vector<8x128xf32> -> vector<8x128xf32>
    %357 = arith.addf %356, %336 : vector<8x128xf32>
    %358 = vector.broadcast %5 : vector<1x128xf32> to vector<8x128xf32>
    %359 = arith.addf %357, %358 : vector<8x128xf32>
    %360 = arith.negf %359 : vector<8x128xf32>
    %361 = math.exp %360 : vector<8x128xf32>
    %cst_64 = arith.constant 1.000000e+00 : f32
    %362 = vector.broadcast %cst_64 : f32 to vector<8x128xf32>
    %363 = arith.addf %362, %361 : vector<8x128xf32>
    %364 = arith.divf %362, %363 : vector<8x128xf32>
    %365 = math.tanh %359 : vector<8x128xf32>
    %366 = vector.extract_strided_slice %364 {offsets = [0, 0], sizes = [8, 32], strides = [1, 1]} : vector<8x128xf32> to vector<8x32xf32>
    %367 = vector.extract_strided_slice %364 {offsets = [0, 32], sizes = [8, 32], strides = [1, 1]} : vector<8x128xf32> to vector<8x32xf32>
    %368 = vector.extract_strided_slice %365 {offsets = [0, 64], sizes = [8, 32], strides = [1, 1]} : vector<8x128xf32> to vector<8x32xf32>
    %369 = vector.extract_strided_slice %364 {offsets = [0, 96], sizes = [8, 32], strides = [1, 1]} : vector<8x128xf32> to vector<8x32xf32>
    %370 = arith.mulf %367, %319 : vector<8x32xf32>
    %371 = arith.mulf %366, %368 : vector<8x32xf32>
    %372 = arith.addf %370, %371 : vector<8x32xf32>
    %373 = math.tanh %372 : vector<8x32xf32>
    %374 = arith.mulf %369, %373 : vector<8x32xf32>
    %375 = arith.truncf %374 : vector<8x32xf32> to vector<8x32xbf16>
    %cst_65 = arith.constant dense<0.000000e+00> : vector<8x128xf32>
    %376 = tpu.matmul %375, %6, %cst_65 {dimension_numbers = #tpu.dot_dimension_numbers<[1], [0], [0], [1], [0, 0, 1, 1], [], []>} : vector<8x32xbf16>, vector<32x128xbf16>, vector<8x128xf32> -> vector<8x128xf32>
    %377 = vector.broadcast %7 : vector<1x1xf32> to vector<8x128xf32>
    %378 = arith.addf %376, %377 : vector<8x128xf32>
    %c6_i32 = arith.constant 6 : i32
    %379 = vector.broadcast %c6_i32 : i32 to vector<8x128xi32>
    %380 = arith.cmpi eq, %9, %379 : vector<8x128xi32>
    %381 = arith.select %380, %378, %328 : vector<8x128xi1>, vector<8x128xf32>
    %c56 = arith.constant 56 : index
    %c0_66 = arith.constant 0 : index
    %382 = vector.load %arg0[%c56, %c0_66] : memref<64x1xf32, #tpu.memory_space<vmem>>, vector<8x1xf32>
    %383 = vector.broadcast %382 : vector<8x1xf32> to vector<8x128xf32>
    %384 = vector.broadcast %0 : vector<1x128xf32> to vector<8x128xf32>
    %385 = arith.mulf %383, %384 : vector<8x128xf32>
    %386 = vector.broadcast %2 : vector<1x128xf32> to vector<8x128xf32>
    %387 = arith.addf %385, %386 : vector<8x128xf32>
    %388 = arith.truncf %374 : vector<8x32xf32> to vector<8x32xbf16>
    %cst_67 = arith.constant dense<0.000000e+00> : vector<8x128xf32>
    %389 = tpu.matmul %388, %4, %cst_67 {dimension_numbers = #tpu.dot_dimension_numbers<[1], [0], [0], [1], [0, 0, 1, 1], [], []>} : vector<8x32xbf16>, vector<32x128xbf16>, vector<8x128xf32> -> vector<8x128xf32>
    %390 = arith.truncf %354 : vector<8x32xf32> to vector<8x32xbf16>
    %cst_68 = arith.constant dense<0.000000e+00> : vector<8x128xf32>
    %391 = tpu.matmul %390, %1, %cst_68 {dimension_numbers = #tpu.dot_dimension_numbers<[1], [0], [0], [1], [0, 0, 1, 1], [], []>} : vector<8x32xbf16>, vector<32x128xbf16>, vector<8x128xf32> -> vector<8x128xf32>
    %392 = arith.addf %387, %391 : vector<8x128xf32>
    %393 = arith.negf %392 : vector<8x128xf32>
    %394 = math.exp %393 : vector<8x128xf32>
    %cst_69 = arith.constant 1.000000e+00 : f32
    %395 = vector.broadcast %cst_69 : f32 to vector<8x128xf32>
    %396 = arith.addf %395, %394 : vector<8x128xf32>
    %397 = arith.divf %395, %396 : vector<8x128xf32>
    %398 = math.tanh %392 : vector<8x128xf32>
    %399 = vector.extract_strided_slice %397 {offsets = [0, 0], sizes = [8, 32], strides = [1, 1]} : vector<8x128xf32> to vector<8x32xf32>
    %400 = vector.extract_strided_slice %397 {offsets = [0, 32], sizes = [8, 32], strides = [1, 1]} : vector<8x128xf32> to vector<8x32xf32>
    %401 = vector.extract_strided_slice %398 {offsets = [0, 64], sizes = [8, 32], strides = [1, 1]} : vector<8x128xf32> to vector<8x32xf32>
    %402 = vector.extract_strided_slice %397 {offsets = [0, 96], sizes = [8, 32], strides = [1, 1]} : vector<8x128xf32> to vector<8x32xf32>
    %403 = arith.mulf %400, %352 : vector<8x32xf32>
    %404 = arith.mulf %399, %401 : vector<8x32xf32>
    %405 = arith.addf %403, %404 : vector<8x32xf32>
    %406 = math.tanh %405 : vector<8x32xf32>
    %407 = arith.mulf %402, %406 : vector<8x32xf32>
    %408 = arith.truncf %407 : vector<8x32xf32> to vector<8x32xbf16>
    %cst_70 = arith.constant dense<0.000000e+00> : vector<8x128xf32>
    %409 = tpu.matmul %408, %3, %cst_70 {dimension_numbers = #tpu.dot_dimension_numbers<[1], [0], [0], [1], [0, 0, 1, 1], [], []>} : vector<8x32xbf16>, vector<32x128xbf16>, vector<8x128xf32> -> vector<8x128xf32>
    %410 = arith.addf %409, %389 : vector<8x128xf32>
    %411 = vector.broadcast %5 : vector<1x128xf32> to vector<8x128xf32>
    %412 = arith.addf %410, %411 : vector<8x128xf32>
    %413 = arith.negf %412 : vector<8x128xf32>
    %414 = math.exp %413 : vector<8x128xf32>
    %cst_71 = arith.constant 1.000000e+00 : f32
    %415 = vector.broadcast %cst_71 : f32 to vector<8x128xf32>
    %416 = arith.addf %415, %414 : vector<8x128xf32>
    %417 = arith.divf %415, %416 : vector<8x128xf32>
    %418 = math.tanh %412 : vector<8x128xf32>
    %419 = vector.extract_strided_slice %417 {offsets = [0, 0], sizes = [8, 32], strides = [1, 1]} : vector<8x128xf32> to vector<8x32xf32>
    %420 = vector.extract_strided_slice %417 {offsets = [0, 32], sizes = [8, 32], strides = [1, 1]} : vector<8x128xf32> to vector<8x32xf32>
    %421 = vector.extract_strided_slice %418 {offsets = [0, 64], sizes = [8, 32], strides = [1, 1]} : vector<8x128xf32> to vector<8x32xf32>
    %422 = vector.extract_strided_slice %417 {offsets = [0, 96], sizes = [8, 32], strides = [1, 1]} : vector<8x128xf32> to vector<8x32xf32>
    %423 = arith.mulf %420, %372 : vector<8x32xf32>
    %424 = arith.mulf %419, %421 : vector<8x32xf32>
    %425 = arith.addf %423, %424 : vector<8x32xf32>
    %426 = math.tanh %425 : vector<8x32xf32>
    %427 = arith.mulf %422, %426 : vector<8x32xf32>
    %428 = arith.truncf %427 : vector<8x32xf32> to vector<8x32xbf16>
    %cst_72 = arith.constant dense<0.000000e+00> : vector<8x128xf32>
    %429 = tpu.matmul %428, %6, %cst_72 {dimension_numbers = #tpu.dot_dimension_numbers<[1], [0], [0], [1], [0, 0, 1, 1], [], []>} : vector<8x32xbf16>, vector<32x128xbf16>, vector<8x128xf32> -> vector<8x128xf32>
    %430 = vector.broadcast %7 : vector<1x1xf32> to vector<8x128xf32>
    %431 = arith.addf %429, %430 : vector<8x128xf32>
    %c7_i32 = arith.constant 7 : i32
    %432 = vector.broadcast %c7_i32 : i32 to vector<8x128xi32>
    %433 = arith.cmpi eq, %9, %432 : vector<8x128xi32>
    %434 = arith.select %433, %431, %381 : vector<8x128xi1>, vector<8x128xf32>
    %435 = vector.broadcast %0 : vector<1x128xf32> to vector<8x128xf32>
    %436 = arith.mulf %431, %435 : vector<8x128xf32>
    %437 = vector.broadcast %2 : vector<1x128xf32> to vector<8x128xf32>
    %438 = arith.addf %436, %437 : vector<8x128xf32>
    %439 = arith.truncf %427 : vector<8x32xf32> to vector<8x32xbf16>
    %cst_73 = arith.constant dense<0.000000e+00> : vector<8x128xf32>
    %440 = tpu.matmul %439, %4, %cst_73 {dimension_numbers = #tpu.dot_dimension_numbers<[1], [0], [0], [1], [0, 0, 1, 1], [], []>} : vector<8x32xbf16>, vector<32x128xbf16>, vector<8x128xf32> -> vector<8x128xf32>
    %441 = arith.truncf %407 : vector<8x32xf32> to vector<8x32xbf16>
    %cst_74 = arith.constant dense<0.000000e+00> : vector<8x128xf32>
    %442 = tpu.matmul %441, %1, %cst_74 {dimension_numbers = #tpu.dot_dimension_numbers<[1], [0], [0], [1], [0, 0, 1, 1], [], []>} : vector<8x32xbf16>, vector<32x128xbf16>, vector<8x128xf32> -> vector<8x128xf32>
    %443 = arith.addf %438, %442 : vector<8x128xf32>
    %444 = arith.negf %443 : vector<8x128xf32>
    %445 = math.exp %444 : vector<8x128xf32>
    %cst_75 = arith.constant 1.000000e+00 : f32
    %446 = vector.broadcast %cst_75 : f32 to vector<8x128xf32>
    %447 = arith.addf %446, %445 : vector<8x128xf32>
    %448 = arith.divf %446, %447 : vector<8x128xf32>
    %449 = math.tanh %443 : vector<8x128xf32>
    %450 = vector.extract_strided_slice %448 {offsets = [0, 0], sizes = [8, 32], strides = [1, 1]} : vector<8x128xf32> to vector<8x32xf32>
    %451 = vector.extract_strided_slice %448 {offsets = [0, 32], sizes = [8, 32], strides = [1, 1]} : vector<8x128xf32> to vector<8x32xf32>
    %452 = vector.extract_strided_slice %449 {offsets = [0, 64], sizes = [8, 32], strides = [1, 1]} : vector<8x128xf32> to vector<8x32xf32>
    %453 = vector.extract_strided_slice %448 {offsets = [0, 96], sizes = [8, 32], strides = [1, 1]} : vector<8x128xf32> to vector<8x32xf32>
    %454 = arith.mulf %451, %405 : vector<8x32xf32>
    %455 = arith.mulf %450, %452 : vector<8x32xf32>
    %456 = arith.addf %454, %455 : vector<8x32xf32>
    %457 = math.tanh %456 : vector<8x32xf32>
    %458 = arith.mulf %453, %457 : vector<8x32xf32>
    %459 = arith.truncf %458 : vector<8x32xf32> to vector<8x32xbf16>
    %cst_76 = arith.constant dense<0.000000e+00> : vector<8x128xf32>
    %460 = tpu.matmul %459, %3, %cst_76 {dimension_numbers = #tpu.dot_dimension_numbers<[1], [0], [0], [1], [0, 0, 1, 1], [], []>} : vector<8x32xbf16>, vector<32x128xbf16>, vector<8x128xf32> -> vector<8x128xf32>
    %461 = arith.addf %460, %440 : vector<8x128xf32>
    %462 = vector.broadcast %5 : vector<1x128xf32> to vector<8x128xf32>
    %463 = arith.addf %461, %462 : vector<8x128xf32>
    %464 = arith.negf %463 : vector<8x128xf32>
    %465 = math.exp %464 : vector<8x128xf32>
    %cst_77 = arith.constant 1.000000e+00 : f32
    %466 = vector.broadcast %cst_77 : f32 to vector<8x128xf32>
    %467 = arith.addf %466, %465 : vector<8x128xf32>
    %468 = arith.divf %466, %467 : vector<8x128xf32>
    %469 = math.tanh %463 : vector<8x128xf32>
    %470 = vector.extract_strided_slice %468 {offsets = [0, 0], sizes = [8, 32], strides = [1, 1]} : vector<8x128xf32> to vector<8x32xf32>
    %471 = vector.extract_strided_slice %468 {offsets = [0, 32], sizes = [8, 32], strides = [1, 1]} : vector<8x128xf32> to vector<8x32xf32>
    %472 = vector.extract_strided_slice %469 {offsets = [0, 64], sizes = [8, 32], strides = [1, 1]} : vector<8x128xf32> to vector<8x32xf32>
    %473 = vector.extract_strided_slice %468 {offsets = [0, 96], sizes = [8, 32], strides = [1, 1]} : vector<8x128xf32> to vector<8x32xf32>
    %474 = arith.mulf %471, %425 : vector<8x32xf32>
    %475 = arith.mulf %470, %472 : vector<8x32xf32>
    %476 = arith.addf %474, %475 : vector<8x32xf32>
    %477 = math.tanh %476 : vector<8x32xf32>
    %478 = arith.mulf %473, %477 : vector<8x32xf32>
    %479 = arith.truncf %478 : vector<8x32xf32> to vector<8x32xbf16>
    %cst_78 = arith.constant dense<0.000000e+00> : vector<8x128xf32>
    %480 = tpu.matmul %479, %6, %cst_78 {dimension_numbers = #tpu.dot_dimension_numbers<[1], [0], [0], [1], [0, 0, 1, 1], [], []>} : vector<8x32xbf16>, vector<32x128xbf16>, vector<8x128xf32> -> vector<8x128xf32>
    %481 = vector.broadcast %7 : vector<1x1xf32> to vector<8x128xf32>
    %482 = arith.addf %480, %481 : vector<8x128xf32>
    %c8_i32 = arith.constant 8 : i32
    %483 = vector.broadcast %c8_i32 : i32 to vector<8x128xi32>
    %484 = arith.cmpi eq, %9, %483 : vector<8x128xi32>
    %485 = arith.select %484, %482, %434 : vector<8x128xi1>, vector<8x128xf32>
    %486 = vector.broadcast %0 : vector<1x128xf32> to vector<8x128xf32>
    %487 = arith.mulf %482, %486 : vector<8x128xf32>
    %488 = vector.broadcast %2 : vector<1x128xf32> to vector<8x128xf32>
    %489 = arith.addf %487, %488 : vector<8x128xf32>
    %490 = arith.truncf %478 : vector<8x32xf32> to vector<8x32xbf16>
    %cst_79 = arith.constant dense<0.000000e+00> : vector<8x128xf32>
    %491 = tpu.matmul %490, %4, %cst_79 {dimension_numbers = #tpu.dot_dimension_numbers<[1], [0], [0], [1], [0, 0, 1, 1], [], []>} : vector<8x32xbf16>, vector<32x128xbf16>, vector<8x128xf32> -> vector<8x128xf32>
    %492 = arith.truncf %458 : vector<8x32xf32> to vector<8x32xbf16>
    %cst_80 = arith.constant dense<0.000000e+00> : vector<8x128xf32>
    %493 = tpu.matmul %492, %1, %cst_80 {dimension_numbers = #tpu.dot_dimension_numbers<[1], [0], [0], [1], [0, 0, 1, 1], [], []>} : vector<8x32xbf16>, vector<32x128xbf16>, vector<8x128xf32> -> vector<8x128xf32>
    %494 = arith.addf %489, %493 : vector<8x128xf32>
    %495 = arith.negf %494 : vector<8x128xf32>
    %496 = math.exp %495 : vector<8x128xf32>
    %cst_81 = arith.constant 1.000000e+00 : f32
    %497 = vector.broadcast %cst_81 : f32 to vector<8x128xf32>
    %498 = arith.addf %497, %496 : vector<8x128xf32>
    %499 = arith.divf %497, %498 : vector<8x128xf32>
    %500 = math.tanh %494 : vector<8x128xf32>
    %501 = vector.extract_strided_slice %499 {offsets = [0, 0], sizes = [8, 32], strides = [1, 1]} : vector<8x128xf32> to vector<8x32xf32>
    %502 = vector.extract_strided_slice %499 {offsets = [0, 32], sizes = [8, 32], strides = [1, 1]} : vector<8x128xf32> to vector<8x32xf32>
    %503 = vector.extract_strided_slice %500 {offsets = [0, 64], sizes = [8, 32], strides = [1, 1]} : vector<8x128xf32> to vector<8x32xf32>
    %504 = vector.extract_strided_slice %499 {offsets = [0, 96], sizes = [8, 32], strides = [1, 1]} : vector<8x128xf32> to vector<8x32xf32>
    %505 = arith.mulf %502, %456 : vector<8x32xf32>
    %506 = arith.mulf %501, %503 : vector<8x32xf32>
    %507 = arith.addf %505, %506 : vector<8x32xf32>
    %508 = math.tanh %507 : vector<8x32xf32>
    %509 = arith.mulf %504, %508 : vector<8x32xf32>
    %510 = arith.truncf %509 : vector<8x32xf32> to vector<8x32xbf16>
    %cst_82 = arith.constant dense<0.000000e+00> : vector<8x128xf32>
    %511 = tpu.matmul %510, %3, %cst_82 {dimension_numbers = #tpu.dot_dimension_numbers<[1], [0], [0], [1], [0, 0, 1, 1], [], []>} : vector<8x32xbf16>, vector<32x128xbf16>, vector<8x128xf32> -> vector<8x128xf32>
    %512 = arith.addf %511, %491 : vector<8x128xf32>
    %513 = vector.broadcast %5 : vector<1x128xf32> to vector<8x128xf32>
    %514 = arith.addf %512, %513 : vector<8x128xf32>
    %515 = arith.negf %514 : vector<8x128xf32>
    %516 = math.exp %515 : vector<8x128xf32>
    %cst_83 = arith.constant 1.000000e+00 : f32
    %517 = vector.broadcast %cst_83 : f32 to vector<8x128xf32>
    %518 = arith.addf %517, %516 : vector<8x128xf32>
    %519 = arith.divf %517, %518 : vector<8x128xf32>
    %520 = math.tanh %514 : vector<8x128xf32>
    %521 = vector.extract_strided_slice %519 {offsets = [0, 0], sizes = [8, 32], strides = [1, 1]} : vector<8x128xf32> to vector<8x32xf32>
    %522 = vector.extract_strided_slice %519 {offsets = [0, 32], sizes = [8, 32], strides = [1, 1]} : vector<8x128xf32> to vector<8x32xf32>
    %523 = vector.extract_strided_slice %520 {offsets = [0, 64], sizes = [8, 32], strides = [1, 1]} : vector<8x128xf32> to vector<8x32xf32>
    %524 = vector.extract_strided_slice %519 {offsets = [0, 96], sizes = [8, 32], strides = [1, 1]} : vector<8x128xf32> to vector<8x32xf32>
    %525 = arith.mulf %522, %476 : vector<8x32xf32>
    %526 = arith.mulf %521, %523 : vector<8x32xf32>
    %527 = arith.addf %525, %526 : vector<8x32xf32>
    %528 = math.tanh %527 : vector<8x32xf32>
    %529 = arith.mulf %524, %528 : vector<8x32xf32>
    %530 = arith.truncf %529 : vector<8x32xf32> to vector<8x32xbf16>
    %cst_84 = arith.constant dense<0.000000e+00> : vector<8x128xf32>
    %531 = tpu.matmul %530, %6, %cst_84 {dimension_numbers = #tpu.dot_dimension_numbers<[1], [0], [0], [1], [0, 0, 1, 1], [], []>} : vector<8x32xbf16>, vector<32x128xbf16>, vector<8x128xf32> -> vector<8x128xf32>
    %532 = vector.broadcast %7 : vector<1x1xf32> to vector<8x128xf32>
    %533 = arith.addf %531, %532 : vector<8x128xf32>
    %c9_i32 = arith.constant 9 : i32
    %534 = vector.broadcast %c9_i32 : i32 to vector<8x128xi32>
    %535 = arith.cmpi eq, %9, %534 : vector<8x128xi32>
    %536 = arith.select %535, %533, %485 : vector<8x128xi1>, vector<8x128xf32>
    %537 = vector.broadcast %0 : vector<1x128xf32> to vector<8x128xf32>
    %538 = arith.mulf %533, %537 : vector<8x128xf32>
    %539 = vector.broadcast %2 : vector<1x128xf32> to vector<8x128xf32>
    %540 = arith.addf %538, %539 : vector<8x128xf32>
    %541 = arith.truncf %529 : vector<8x32xf32> to vector<8x32xbf16>
    %cst_85 = arith.constant dense<0.000000e+00> : vector<8x128xf32>
    %542 = tpu.matmul %541, %4, %cst_85 {dimension_numbers = #tpu.dot_dimension_numbers<[1], [0], [0], [1], [0, 0, 1, 1], [], []>} : vector<8x32xbf16>, vector<32x128xbf16>, vector<8x128xf32> -> vector<8x128xf32>
    %543 = arith.truncf %509 : vector<8x32xf32> to vector<8x32xbf16>
    %cst_86 = arith.constant dense<0.000000e+00> : vector<8x128xf32>
    %544 = tpu.matmul %543, %1, %cst_86 {dimension_numbers = #tpu.dot_dimension_numbers<[1], [0], [0], [1], [0, 0, 1, 1], [], []>} : vector<8x32xbf16>, vector<32x128xbf16>, vector<8x128xf32> -> vector<8x128xf32>
    %545 = arith.addf %540, %544 : vector<8x128xf32>
    %546 = arith.negf %545 : vector<8x128xf32>
    %547 = math.exp %546 : vector<8x128xf32>
    %cst_87 = arith.constant 1.000000e+00 : f32
    %548 = vector.broadcast %cst_87 : f32 to vector<8x128xf32>
    %549 = arith.addf %548, %547 : vector<8x128xf32>
    %550 = arith.divf %548, %549 : vector<8x128xf32>
    %551 = math.tanh %545 : vector<8x128xf32>
    %552 = vector.extract_strided_slice %550 {offsets = [0, 0], sizes = [8, 32], strides = [1, 1]} : vector<8x128xf32> to vector<8x32xf32>
    %553 = vector.extract_strided_slice %550 {offsets = [0, 32], sizes = [8, 32], strides = [1, 1]} : vector<8x128xf32> to vector<8x32xf32>
    %554 = vector.extract_strided_slice %551 {offsets = [0, 64], sizes = [8, 32], strides = [1, 1]} : vector<8x128xf32> to vector<8x32xf32>
    %555 = vector.extract_strided_slice %550 {offsets = [0, 96], sizes = [8, 32], strides = [1, 1]} : vector<8x128xf32> to vector<8x32xf32>
    %556 = arith.mulf %553, %507 : vector<8x32xf32>
    %557 = arith.mulf %552, %554 : vector<8x32xf32>
    %558 = arith.addf %556, %557 : vector<8x32xf32>
    %559 = math.tanh %558 : vector<8x32xf32>
    %560 = arith.mulf %555, %559 : vector<8x32xf32>
    %561 = arith.truncf %560 : vector<8x32xf32> to vector<8x32xbf16>
    %cst_88 = arith.constant dense<0.000000e+00> : vector<8x128xf32>
    %562 = tpu.matmul %561, %3, %cst_88 {dimension_numbers = #tpu.dot_dimension_numbers<[1], [0], [0], [1], [0, 0, 1, 1], [], []>} : vector<8x32xbf16>, vector<32x128xbf16>, vector<8x128xf32> -> vector<8x128xf32>
    %563 = arith.addf %562, %542 : vector<8x128xf32>
    %564 = vector.broadcast %5 : vector<1x128xf32> to vector<8x128xf32>
    %565 = arith.addf %563, %564 : vector<8x128xf32>
    %566 = arith.negf %565 : vector<8x128xf32>
    %567 = math.exp %566 : vector<8x128xf32>
    %cst_89 = arith.constant 1.000000e+00 : f32
    %568 = vector.broadcast %cst_89 : f32 to vector<8x128xf32>
    %569 = arith.addf %568, %567 : vector<8x128xf32>
    %570 = arith.divf %568, %569 : vector<8x128xf32>
    %571 = math.tanh %565 : vector<8x128xf32>
    %572 = vector.extract_strided_slice %570 {offsets = [0, 0], sizes = [8, 32], strides = [1, 1]} : vector<8x128xf32> to vector<8x32xf32>
    %573 = vector.extract_strided_slice %570 {offsets = [0, 32], sizes = [8, 32], strides = [1, 1]} : vector<8x128xf32> to vector<8x32xf32>
    %574 = vector.extract_strided_slice %571 {offsets = [0, 64], sizes = [8, 32], strides = [1, 1]} : vector<8x128xf32> to vector<8x32xf32>
    %575 = vector.extract_strided_slice %570 {offsets = [0, 96], sizes = [8, 32], strides = [1, 1]} : vector<8x128xf32> to vector<8x32xf32>
    %576 = arith.mulf %573, %527 : vector<8x32xf32>
    %577 = arith.mulf %572, %574 : vector<8x32xf32>
    %578 = arith.addf %576, %577 : vector<8x32xf32>
    %579 = math.tanh %578 : vector<8x32xf32>
    %580 = arith.mulf %575, %579 : vector<8x32xf32>
    %581 = arith.truncf %580 : vector<8x32xf32> to vector<8x32xbf16>
    %cst_90 = arith.constant dense<0.000000e+00> : vector<8x128xf32>
    %582 = tpu.matmul %581, %6, %cst_90 {dimension_numbers = #tpu.dot_dimension_numbers<[1], [0], [0], [1], [0, 0, 1, 1], [], []>} : vector<8x32xbf16>, vector<32x128xbf16>, vector<8x128xf32> -> vector<8x128xf32>
    %583 = vector.broadcast %7 : vector<1x1xf32> to vector<8x128xf32>
    %584 = arith.addf %582, %583 : vector<8x128xf32>
    %c10_i32 = arith.constant 10 : i32
    %585 = vector.broadcast %c10_i32 : i32 to vector<8x128xi32>
    %586 = arith.cmpi eq, %9, %585 : vector<8x128xi32>
    %587 = arith.select %586, %584, %536 : vector<8x128xi1>, vector<8x128xf32>
    %588 = vector.broadcast %0 : vector<1x128xf32> to vector<8x128xf32>
    %589 = arith.mulf %584, %588 : vector<8x128xf32>
    %590 = vector.broadcast %2 : vector<1x128xf32> to vector<8x128xf32>
    %591 = arith.addf %589, %590 : vector<8x128xf32>
    %592 = arith.truncf %580 : vector<8x32xf32> to vector<8x32xbf16>
    %cst_91 = arith.constant dense<0.000000e+00> : vector<8x128xf32>
    %593 = tpu.matmul %592, %4, %cst_91 {dimension_numbers = #tpu.dot_dimension_numbers<[1], [0], [0], [1], [0, 0, 1, 1], [], []>} : vector<8x32xbf16>, vector<32x128xbf16>, vector<8x128xf32> -> vector<8x128xf32>
    %594 = arith.truncf %560 : vector<8x32xf32> to vector<8x32xbf16>
    %cst_92 = arith.constant dense<0.000000e+00> : vector<8x128xf32>
    %595 = tpu.matmul %594, %1, %cst_92 {dimension_numbers = #tpu.dot_dimension_numbers<[1], [0], [0], [1], [0, 0, 1, 1], [], []>} : vector<8x32xbf16>, vector<32x128xbf16>, vector<8x128xf32> -> vector<8x128xf32>
    %596 = arith.addf %591, %595 : vector<8x128xf32>
    %597 = arith.negf %596 : vector<8x128xf32>
    %598 = math.exp %597 : vector<8x128xf32>
    %cst_93 = arith.constant 1.000000e+00 : f32
    %599 = vector.broadcast %cst_93 : f32 to vector<8x128xf32>
    %600 = arith.addf %599, %598 : vector<8x128xf32>
    %601 = arith.divf %599, %600 : vector<8x128xf32>
    %602 = math.tanh %596 : vector<8x128xf32>
    %603 = vector.extract_strided_slice %601 {offsets = [0, 0], sizes = [8, 32], strides = [1, 1]} : vector<8x128xf32> to vector<8x32xf32>
    %604 = vector.extract_strided_slice %601 {offsets = [0, 32], sizes = [8, 32], strides = [1, 1]} : vector<8x128xf32> to vector<8x32xf32>
    %605 = vector.extract_strided_slice %602 {offsets = [0, 64], sizes = [8, 32], strides = [1, 1]} : vector<8x128xf32> to vector<8x32xf32>
    %606 = vector.extract_strided_slice %601 {offsets = [0, 96], sizes = [8, 32], strides = [1, 1]} : vector<8x128xf32> to vector<8x32xf32>
    %607 = arith.mulf %604, %558 : vector<8x32xf32>
    %608 = arith.mulf %603, %605 : vector<8x32xf32>
    %609 = arith.addf %607, %608 : vector<8x32xf32>
    %610 = math.tanh %609 : vector<8x32xf32>
    %611 = arith.mulf %606, %610 : vector<8x32xf32>
    %612 = arith.truncf %611 : vector<8x32xf32> to vector<8x32xbf16>
    %cst_94 = arith.constant dense<0.000000e+00> : vector<8x128xf32>
    %613 = tpu.matmul %612, %3, %cst_94 {dimension_numbers = #tpu.dot_dimension_numbers<[1], [0], [0], [1], [0, 0, 1, 1], [], []>} : vector<8x32xbf16>, vector<32x128xbf16>, vector<8x128xf32> -> vector<8x128xf32>
    %614 = arith.addf %613, %593 : vector<8x128xf32>
    %615 = vector.broadcast %5 : vector<1x128xf32> to vector<8x128xf32>
    %616 = arith.addf %614, %615 : vector<8x128xf32>
    %617 = arith.negf %616 : vector<8x128xf32>
    %618 = math.exp %617 : vector<8x128xf32>
    %cst_95 = arith.constant 1.000000e+00 : f32
    %619 = vector.broadcast %cst_95 : f32 to vector<8x128xf32>
    %620 = arith.addf %619, %618 : vector<8x128xf32>
    %621 = arith.divf %619, %620 : vector<8x128xf32>
    %622 = math.tanh %616 : vector<8x128xf32>
    %623 = vector.extract_strided_slice %621 {offsets = [0, 0], sizes = [8, 32], strides = [1, 1]} : vector<8x128xf32> to vector<8x32xf32>
    %624 = vector.extract_strided_slice %621 {offsets = [0, 32], sizes = [8, 32], strides = [1, 1]} : vector<8x128xf32> to vector<8x32xf32>
    %625 = vector.extract_strided_slice %622 {offsets = [0, 64], sizes = [8, 32], strides = [1, 1]} : vector<8x128xf32> to vector<8x32xf32>
    %626 = vector.extract_strided_slice %621 {offsets = [0, 96], sizes = [8, 32], strides = [1, 1]} : vector<8x128xf32> to vector<8x32xf32>
    %627 = arith.mulf %624, %578 : vector<8x32xf32>
    %628 = arith.mulf %623, %625 : vector<8x32xf32>
    %629 = arith.addf %627, %628 : vector<8x32xf32>
    %630 = math.tanh %629 : vector<8x32xf32>
    %631 = arith.mulf %626, %630 : vector<8x32xf32>
    %632 = arith.truncf %631 : vector<8x32xf32> to vector<8x32xbf16>
    %cst_96 = arith.constant dense<0.000000e+00> : vector<8x128xf32>
    %633 = tpu.matmul %632, %6, %cst_96 {dimension_numbers = #tpu.dot_dimension_numbers<[1], [0], [0], [1], [0, 0, 1, 1], [], []>} : vector<8x32xbf16>, vector<32x128xbf16>, vector<8x128xf32> -> vector<8x128xf32>
    %634 = vector.broadcast %7 : vector<1x1xf32> to vector<8x128xf32>
    %635 = arith.addf %633, %634 : vector<8x128xf32>
    %c11_i32 = arith.constant 11 : i32
    %636 = vector.broadcast %c11_i32 : i32 to vector<8x128xi32>
    %637 = arith.cmpi eq, %9, %636 : vector<8x128xi32>
    %638 = arith.select %637, %635, %587 : vector<8x128xi1>, vector<8x128xf32>
    %c0_97 = arith.constant 0 : index
    %c0_98 = arith.constant 0 : index
    %639 = vector.load %arg9[%c0_97, %c0_98] : memref<8x128xf32, #tpu.memory_space<vmem>>, vector<8x128xf32>
    tpu.vector_store %arg9[%c0_97, %c0_98], %638 {strides = array<i32>} : memref<8x128xf32, #tpu.memory_space<vmem>>, vector<8x128xf32>,
    return
  }
}

</mosaic_0001>

<bundles_post_ra>
// kernel: tpu_custom_call.1
= control target key start
LH: loop header
LB: loop body
LE: loop exit
PB: predicated region body
PF: predicated region fallthrough
CT: control target
= control target key end

     0   :  { %s4599_s0 = inlined_call_operand.vmem [shape: f32[64,1], index: 0, kind: input, shape index: {}]   ;;  %s4600_s1 = inlined_call_operand.vmem [shape: f32[1,128], index: 1, kind: input, shape index: {}]   ;;  %s4601_s2 = inlined_call_operand.vmem [shape: bf16[32,128], index: 2, kind: input, shape index: {}]   ;;  %s4602_s3 = inlined_call_operand.vmem [shape: f32[1,128], index: 3, kind: input, shape index: {}]   ;;  %s4603_s4 = inlined_call_operand.vmem [shape: bf16[32,128], index: 4, kind: input, shape index: {}]   ;;  %s4604_s5 = inlined_call_operand.vmem [shape: bf16[32,128], index: 5, kind: input, shape index: {}]   ;;  %s4605_s6 = inlined_call_operand.vmem [shape: f32[1,128], index: 6, kind: input, shape index: {}]   ;;  %s4606_s7 = inlined_call_operand.vmem [shape: bf16[32,128], index: 7, kind: input, shape index: {}]   ;;  %s4607_s8 = inlined_call_operand.<no memory space> [shape: f32[1,1], index: 8, kind: input, shape index: {}]   ;;  %s4608_s9 = inlined_call_operand.hbm [shape: f32[8,128], index: 9, kind: output, shape index: {}]  }
   0x1   :  { %v14_v0 = vstv %s4607_s8 }
   0x2   :  { %15 = vst [vmem:[#allocation2] sm:$0x1] %v14_v0 }
   0x3   :  { %v3849_v1 = vld [vmem:[%s4601_s2 + $0x8] sm:$0xff]   ;;  %v3787_v2 = vmov 0.0   ;;  %v3857_v3 = vld [vmem:[%s4601_s2] sm:$0xff]   ;;  %vm3788_vm0 = vmmov 0   ;;  %v3789_v5 = vmov 0  }
   0x4   :  { %3170 = vmatprep.subr.bf16.mxu1 %v3787_v2  ;;  %3162 = vmatprep.subr.bf16.mxu0 %v3787_v2  ;;  %v58_v4 = vld [vmem:[%s4599_s0] sm:$0xff] }
   0x5   :  { %3171 = vmatpush3.bf16.msra.mxu1 %v3849_v1  ;;  %3174 = vmatprep.mubr.msk.bf16.mxu1 %vm3788_vm0, %v3787_v2 }
   0x6   :  { %3172 = vmatprep.subr.bf16.mxu1 %v3787_v2  ;;  %3552 = vset.pattern.permute.xlu0 %v3789_v5 }
   0x7   :  { %61 = vperm.xlu0 %3552, %v58_v4   ;;  %3166 = vmatprep.mubr.msk.bf16.mxu0 %vm3788_vm0, %v3787_v2 }
   0x8   :  { %3553 = vset.pattern.permute.xlu1 %v3789_v5 }
   0x9   :  { %3173 = vmatpush3.bf16.msra.mxu1 %v3857_v3 }
   0xa   :  { %3186 = vmatprep.subr.bf16.mxu1 %v3787_v2 }
   0xb   :  { %16 = vsyncpa [#allocation4], 0  ;;  %v3874_v7 = vld [vmem:[%s4600_s1] ss:$0 sm:$0xff]  ;;  %s3790_s20 = smov 64   ;;  %s3791_s21 = smov 32  }
   0xc   :  { %3175 = vmatmul.mubr.bf16.vlgmr.msra.gmra.mxu1 %v3789_v5  ;;  %v3880_v9 = vld [vmem:[%s4602_s3] ss:$0 sm:$0xff]  ;;  %v3891_v26 = vld [vmem:[%s4604_s5 + $0x8] sm:$0xff]   ;;  %vm90_vm1 = vcmask 261120  }
   0xd   :  { %3190 = vmatprep.mubr.msk.bf16.mxu1 %vm3788_vm0, %v3787_v2  ;;  %3163 = vmatpush3.bf16.msra.mxu0 %v3891_v26  ;;  %v3897_v27 = vld [vmem:[%s4604_s5] sm:$0xff]   ;;  %v3904_v28 = vld [vmem:[%s4603_s4 + $0x8] sm:$0xff]  }
   0xe   :  { %3164 = vmatprep.subr.bf16.mxu0 %v3787_v2  ;;  %v3912_v30 = vld [vmem:[%s4603_s4] sm:$0xff]   ;;  %v3941_v56 = vld [vmem:[%s4606_s7 + $0x8] sm:$0xff]  }
   0xf   :  { %v3930_v39 = vld [vmem:[%s4605_s6] ss:$0 sm:$0xff]  ;;  %3187 = vmatpush3.bf16.msra.mxu1 %v3941_v56  ;;  %v371_v60 = vld [vmem:[%s4599_s0 + $0x8] sm:$0xff] }
  0x10   :  { %v3947_v57 = vld [vmem:[%s4606_s7] sm:$0xff]   ;;  %3188 = vmatprep.subr.bf16.mxu1 %v3787_v2 }
  0x11   :  { %3165 = vmatpush3.bf16.msra.mxu0 %v3897_v27 }
  0x12   :  { %3178 = vmatprep.subr.bf16.mxu0 %v3787_v2 }
  0x13   :  { %3189 = vmatpush3.bf16.msra.mxu1 %v3947_v57 }
  0x14   :  { %3167 = vmatmul.mubr.bf16.vlgmr.msra.gmra.mxu0 %v3789_v5  ;;  %3202 = vmatprep.subr.bf16.mxu1 %v3787_v2 }
  0x15   :  { %3179 = vmatpush3.bf16.msra.mxu0 %v3904_v28  ;;  %3182 = vmatprep.mubr.msk.bf16.mxu0 %vm3788_vm0, %v3787_v2 }
  0x16   :  { %3180 = vmatprep.subr.bf16.mxu0 %v3787_v2 }
  0x19   :  { %3181 = vmatpush3.bf16.msra.mxu0 %v3912_v30 }
  0x1a   :  { %3194 = vmatprep.subr.bf16.mxu0 %v3787_v2 }
  0x82   :  { %v62_v6 = vpop.permute.xlu0 %61 }
  0x83   :  { %v70_v8 = vmul.f32 %v3874_v7, %v62_v6 }
  0x85   :  { %v77_v10 = vadd.f32 %v3880_v9, %v70_v8 }
  0xcc   :  { %v180_v11 = vpop.f32.mrf.mxu1 }
  0xcd   :  { %v186_v12 = vadd.f32 %v180_v11, %v77_v10 }
  0xce   :  { %v3176_v13 = vpop.f32.mrf.mxu1 }
  0xcf   :  { %3562 = vtanh.f32 %v186_v12  ;;  %v2942_v17 = vmul.f32 -1.442695, %v186_v12 }
  0xd0   :  { %v183_v14 = vpop.f32.mrf.mxu1 }
  0xd1   :  { %3564 = vpow2.f32 %v2942_v17 }
  0xd2   :  { %v3177_v15 = vpop.f32.mrf.mxu1 }
  0xd4   :  { %v128_v34 = vpop.f32.mrf.mxu0 }
  0xd6   :  { %v3168_v35 = vpop.f32.mrf.mxu0 }
  0xd8   :  { %v131_v36 = vpop.f32.mrf.mxu0 }
  0xda   :  { %v3169_v37 = vpop.f32.mrf.mxu0 }
  0xdc   :  { %v3563_v16 = vpop.eup %3562 }
  0xdd   :  { %196 = vrot.lane.b32.xlu0 %v3563_v16, %s3790_s20 }
  0xde   :  { %v3565_v18 = vpop.eup %3564 }
  0xdf   :  { %v190_v19 = vadd.f32 1.0, %v3565_v18 }
  0xe1   :  { %3566 = vrcp.f32 %v190_v19 }
  0xee   :  { %v3567_v20 = vpop.eup %3566 }
  0xef   :  { %v194_v23 = vmul.f32 0.0, %v3567_v20 }
 0x14f   :  { %v197_v21 = vpop.permute.xlu0 %196 }
 0x150   :  { %v199_v22 = vmul.f32 %v3567_v20, %v197_v21 }
 0x152   :  { %201 = vrot.lane.b32.xlu1 %v199_v22, %s3791_s21 }
 0x1c4   :  { %v202_v24 = vpop.permute.xlu1 %201 }
 0x1c5   :  { %v3885_v25 = vadd.f32 %v202_v24, %v194_v23 }
 0x1c7   :  { %3568 = vtanh.f32 %v3885_v25 }
 0x1d4   :  { %v3569_v29 = vpop.eup %3568 }
 0x1d5   :  { %207 = vrot.lane.b32.xlu1 %v3569_v29, %s3790_s20 }
 0x247   :  { %v208_v31 = vpop.permute.xlu1 %207 }
 0x248   :  { %v210_v32 = vmul.f32 %v3567_v20, %v208_v31 }
 0x24a   :  { %v211_v33 = vpack.c.bf16 %v210_v32, %v210_v32 }
 0x24c   :  { %213 = vrot.lane.b32.xlu0 %v211_v33, %s3791_s21 }
 0x2be   :  { %v214_v38 = vpop.permute.xlu0 %213 }
 0x2bf   :  { %3183 = vmatmul.mubr.msk.bf16.vlgmr.msra.gmra.mxu0 %vm90_vm1, %v214_v38 }
 0x2c0   :  { %3195 = vmatpush3.bf16.msra.mxu0 %v3891_v26  ;;  %3198 = vmatprep.mubr.msk.bf16.mxu0 %vm3788_vm0, %v3787_v2 }
 0x2c1   :  { %3196 = vmatprep.subr.bf16.mxu0 %v3787_v2 }
 0x2c4   :  { %3197 = vmatpush3.bf16.msra.mxu0 %v3897_v27 }
 0x2c5   :  { %3210 = vmatprep.subr.bf16.mxu0 %v3787_v2 }
 0x37f   :  { %v264_v40 = vpop.f32.mrf.mxu0 }
 0x380   :  { %v265_v41 = vadd.f32 %v264_v40, %v128_v34 }
 0x381   :  { %v3184_v42 = vpop.f32.mrf.mxu0 }
 0x382   :  { %v276_v43 = vadd.f32 %v3930_v39, %v265_v41 }
 0x383   :  { %v267_v44 = vpop.f32.mrf.mxu0 }
 0x384   :  { %3570 = vtanh.f32 %v276_v43  ;;  %v2947_v47 = vmul.f32 -1.442695, %v276_v43 }
 0x385   :  { %v3185_v45 = vpop.f32.mrf.mxu0 }
 0x386   :  { %3572 = vpow2.f32 %v2947_v47 }
 0x391   :  { %v3571_v46 = vpop.eup %3570 }
 0x392   :  { %286 = vrot.lane.b32.xlu1 %v3571_v46, %s3790_s20 }
 0x393   :  { %v3573_v48 = vpop.eup %3572 }
 0x394   :  { %v280_v49 = vadd.f32 1.0, %v3573_v48 }
 0x396   :  { %3574 = vrcp.f32 %v280_v49 }
 0x3a3   :  { %v3575_v50 = vpop.eup %3574 }
 0x3a4   :  { %v284_v53 = vmul.f32 0.0, %v3575_v50 }
 0x404   :  { %v287_v51 = vpop.permute.xlu1 %286 }
 0x405   :  { %v289_v52 = vmul.f32 %v3575_v50, %v287_v51 }
 0x407   :  { %291 = vrot.lane.b32.xlu0 %v289_v52, %s3791_s21 }
 0x479   :  { %v292_v54 = vpop.permute.xlu0 %291 }
 0x47a   :  { %v3935_v55 = vadd.f32 %v292_v54, %v284_v53 }
 0x47c   :  { %3576 = vtanh.f32 %v3935_v55 }
 0x489   :  { %v3577_v58 = vpop.eup %3576 }
 0x48a   :  { %297 = vrot.lane.b32.xlu1 %v3577_v58, %s3790_s20 }
 0x48e   :  { %374 = vperm.xlu1 %3553, %v371_v60  }
 0x4fc   :  { %v298_v59 = vpop.permute.xlu1 %297 }
 0x4fd   :  { %v300_v61 = vmul.f32 %v3575_v50, %v298_v59 }
 0x4ff   :  { %v301_v62 = vpack.c.bf16 %v300_v61, %v300_v61  ;;  %v605_v61 = vld [vmem:[%s4599_s0 + $0x10] sm:$0xff] }
 0x501   :  { %312 = vrot.lane.b32.xlu0 %v301_v62, %s3791_s21 }
 0x509   :  { %v375_v0 = vpop.permute.xlu1 %374 }
 0x50a   :  { %v377_v6 = vmul.f32 %v3874_v7, %v375_v0 }
 0x50c   :  { %v378_v13 = vadd.f32 %v3880_v9, %v377_v6 }
 0x573   :  { %v313_v63 = vpop.permute.xlu0 %312 }
 0x574   :  { %3191 = vmatmul.mubr.msk.bf16.vlgmr.msra.gmra.mxu1 %vm90_vm1, %v313_v63  ;;  %3199 = vmatmul.mubr.msk.bf16.vlgmr.msra.gmra.mxu0 %vm90_vm1, %v313_v63 }
 0x575   :  { %3203 = vmatpush3.bf16.msra.mxu1 %v3849_v1  ;;  %3206 = vmatprep.mubr.msk.bf16.mxu1 %vm3788_vm0, %v3787_v2 }
 0x576   :  { %3204 = vmatprep.subr.bf16.mxu1 %v3787_v2  ;;  %3211 = vmatpush3.bf16.msra.mxu0 %v3904_v28 }
 0x577   :  { %3212 = vmatprep.subr.bf16.mxu0 %v3787_v2  ;;  %3214 = vmatprep.mubr.msk.bf16.mxu0 %vm3788_vm0, %v3787_v2 }
 0x579   :  { %3205 = vmatpush3.bf16.msra.mxu1 %v3857_v3 }
 0x57a   :  { %3213 = vmatpush3.bf16.msra.mxu0 %v3912_v30  ;;  %3218 = vmatprep.subr.bf16.mxu1 %v3787_v2 }
 0x57b   :  { %3226 = vmatprep.subr.bf16.mxu0 %v3787_v2 }
 0x57c   :  { %3207 = vmatmul.mubr.msk.bf16.vlgmr.msra.gmra.mxu1 %vm90_vm1, %v214_v38 }
 0x57d   :  { %3219 = vmatpush3.bf16.msra.mxu1 %v3941_v56  ;;  %3222 = vmatprep.mubr.msk.bf16.mxu1 %vm3788_vm0, %v3787_v2 }
 0x57e   :  { %3220 = vmatprep.subr.bf16.mxu1 %v3787_v2 }
 0x581   :  { %3221 = vmatpush3.bf16.msra.mxu1 %v3947_v57 }
 0x582   :  { %3234 = vmatprep.subr.bf16.mxu1 %v3787_v2 }
 0x634   :  { %v3978_v4 = vpop.f32.mrf.mxu1  ;;  %v413_v5 = vpop.f32.mrf.mxu0 }
 0x636   :  { %v3192_v8 = vpop.f32.mrf.mxu1  ;;  %v3200_v10 = vpop.f32.mrf.mxu0 }
 0x638   :  { %v366_v11 = vpop.f32.mrf.mxu1  ;;  %v416_v12 = vpop.f32.mrf.mxu0 }
 0x63a   :  { %v3193_v14 = vpop.f32.mrf.mxu1  ;;  %v3201_v15 = vpop.f32.mrf.mxu0 }
 0x63c   :  { %v453_v16 = vpop.f32.mrf.mxu1 }
 0x63d   :  { %v459_v17 = vadd.f32 %v453_v16, %v378_v13 }
 0x63e   :  { %v3208_v18 = vpop.f32.mrf.mxu1 }
 0x63f   :  { %3578 = vtanh.f32 %v459_v17  ;;  %v2954_v22 = vmul.f32 -1.442695, %v459_v17 }
 0x640   :  { %v456_v19 = vpop.f32.mrf.mxu1 }
 0x641   :  { %3580 = vpow2.f32 %v2954_v22 }
 0x642   :  { %v3209_v20 = vpop.f32.mrf.mxu1 }
 0x64c   :  { %v3579_v21 = vpop.eup %3578 }
 0x64d   :  { %469 = vrot.lane.b32.xlu0 %v3579_v21, %s3790_s20 }
 0x64e   :  { %v3581_v23 = vpop.eup %3580 }
 0x64f   :  { %v463_v24 = vadd.f32 1.0, %v3581_v23 }
 0x651   :  { %3582 = vrcp.f32 %v463_v24 }
 0x65e   :  { %v3583_v29 = vpop.eup %3582 }
 0x65f   :  { %v467_v33 = vmul.f32 %v3583_v29, %v3885_v25 }
 0x6bf   :  { %v470_v31 = vpop.permute.xlu0 %469 }
 0x6c0   :  { %v472_v32 = vmul.f32 %v3583_v29, %v470_v31 }
 0x6c2   :  { %474 = vrot.lane.b32.xlu1 %v472_v32, %s3791_s21 }
 0x734   :  { %v475_v34 = vpop.permute.xlu1 %474 }
 0x735   :  { %v3985_v35 = vadd.f32 %v475_v34, %v467_v33 }
 0x737   :  { %3584 = vtanh.f32 %v3985_v35 }
 0x744   :  { %v3585_v36 = vpop.eup %3584 }
 0x745   :  { %480 = vrot.lane.b32.xlu0 %v3585_v36, %s3790_s20 }
 0x7b7   :  { %v481_v37 = vpop.permute.xlu0 %480 }
 0x7b8   :  { %v483_v38 = vmul.f32 %v3583_v29, %v481_v37 }
 0x7ba   :  { %v484_v40 = vpack.c.bf16 %v483_v38, %v483_v38 }
 0x7bc   :  { %486 = vrot.lane.b32.xlu1 %v484_v40, %s3791_s21 }
 0x82e   :  { %v487_v41 = vpop.permute.xlu1 %486 }
 0x82f   :  { %3215 = vmatmul.mubr.msk.bf16.vlgmr.msra.gmra.mxu0 %vm90_vm1, %v487_v41 }
 0x830   :  { %3227 = vmatpush3.bf16.msra.mxu0 %v3891_v26  ;;  %3230 = vmatprep.mubr.msk.bf16.mxu0 %vm3788_vm0, %v3787_v2 }
 0x831   :  { %3228 = vmatprep.subr.bf16.mxu0 %v3787_v2 }
 0x834   :  { %3229 = vmatpush3.bf16.msra.mxu0 %v3897_v27 }
 0x835   :  { %3242 = vmatprep.subr.bf16.mxu0 %v3787_v2 }
 0x8ef   :  { %v525_v25 = vpop.f32.mrf.mxu0 }
 0x8f0   :  { %v526_v42 = vadd.f32 %v525_v25, %v413_v5 }
 0x8f1   :  { %v3216_v43 = vpop.f32.mrf.mxu0 }
 0x8f2   :  { %v531_v44 = vadd.f32 %v3930_v39, %v526_v42 }
 0x8f3   :  { %v528_v45 = vpop.f32.mrf.mxu0 }
 0x8f4   :  { %3586 = vtanh.f32 %v531_v44  ;;  %v2956_v48 = vmul.f32 -1.442695, %v531_v44 }
 0x8f5   :  { %v3217_v46 = vpop.f32.mrf.mxu0 }
 0x8f6   :  { %3588 = vpow2.f32 %v2956_v48 }
 0x901   :  { %v3587_v47 = vpop.eup %3586 }
 0x902   :  { %541 = vrot.lane.b32.xlu0 %v3587_v47, %s3790_s20 }
 0x903   :  { %v3589_v49 = vpop.eup %3588 }
 0x904   :  { %v535_v50 = vadd.f32 1.0, %v3589_v49 }
 0x906   :  { %3590 = vrcp.f32 %v535_v50 }
 0x913   :  { %v3591_v51 = vpop.eup %3590 }
 0x914   :  { %v539_v54 = vmul.f32 %v3591_v51, %v3935_v55 }
 0x974   :  { %v542_v52 = vpop.permute.xlu0 %541 }
 0x975   :  { %v544_v53 = vmul.f32 %v3591_v51, %v542_v52 }
 0x977   :  { %546 = vrot.lane.b32.xlu1 %v544_v53, %s3791_s21 }
 0x9e9   :  { %v547_v58 = vpop.permute.xlu1 %546 }
 0x9ea   :  { %v4001_v59 = vadd.f32 %v547_v58, %v539_v54 }
 0x9ec   :  { %3592 = vtanh.f32 %v4001_v59 }
 0x9f9   :  { %v3593_v60 = vpop.eup %3592 }
 0x9fa   :  { %552 = vrot.lane.b32.xlu0 %v3593_v60, %s3790_s20 }
 0x9fe   :  { %608 = vperm.xlu0 %3552, %v605_v61  }
 0xa6c   :  { %v553_v62 = vpop.permute.xlu0 %552 }
 0xa6d   :  { %v555_v63 = vmul.f32 %v3591_v51, %v553_v62 }
 0xa6f   :  { %v556_v0 = vpack.c.bf16 %v555_v63, %v555_v63 }
 0xa71   :  { %558 = vrot.lane.b32.xlu1 %v556_v0, %s3791_s21  ;;  %v839_v0 = vld [vmem:[%s4599_s0 + $0x18] sm:$0xff] }
 0xa79   :  { %v609_v55 = vpop.permute.xlu0 %608 }
 0xa7a   :  { %v611_v12 = vmul.f32 %v3874_v7, %v609_v55 }
 0xa7c   :  { %v612_v17 = vadd.f32 %v3880_v9, %v611_v12 }
 0xae3   :  { %v559_v5 = vpop.permute.xlu1 %558 }
 0xae4   :  { %3223 = vmatmul.mubr.msk.bf16.vlgmr.msra.gmra.mxu1 %vm90_vm1, %v559_v5  ;;  %3231 = vmatmul.mubr.msk.bf16.vlgmr.msra.gmra.mxu0 %vm90_vm1, %v559_v5 }
 0xae5   :  { %3235 = vmatpush3.bf16.msra.mxu1 %v3849_v1  ;;  %3238 = vmatprep.mubr.msk.bf16.mxu1 %vm3788_vm0, %v3787_v2 }
 0xae6   :  { %3236 = vmatprep.subr.bf16.mxu1 %v3787_v2  ;;  %3243 = vmatpush3.bf16.msra.mxu0 %v3904_v28 }
 0xae7   :  { %3244 = vmatprep.subr.bf16.mxu0 %v3787_v2  ;;  %3246 = vmatprep.mubr.msk.bf16.mxu0 %vm3788_vm0, %v3787_v2 }
 0xae9   :  { %3237 = vmatpush3.bf16.msra.mxu1 %v3857_v3 }
 0xaea   :  { %3245 = vmatpush3.bf16.msra.mxu0 %v3912_v30  ;;  %3250 = vmatprep.subr.bf16.mxu1 %v3787_v2 }
 0xaeb   :  { %3258 = vmatprep.subr.bf16.mxu0 %v3787_v2 }
 0xaec   :  { %3239 = vmatmul.mubr.msk.bf16.vlgmr.msra.gmra.mxu1 %vm90_vm1, %v487_v41 }
 0xaed   :  { %3251 = vmatpush3.bf16.msra.mxu1 %v3941_v56  ;;  %3254 = vmatprep.mubr.msk.bf16.mxu1 %vm3788_vm0, %v3787_v2 }
 0xaee   :  { %3252 = vmatprep.subr.bf16.mxu1 %v3787_v2 }
 0xaf1   :  { %3253 = vmatpush3.bf16.msra.mxu1 %v3947_v57 }
 0xaf2   :  { %3266 = vmatprep.subr.bf16.mxu1 %v3787_v2 }
 0xba4   :  { %v4030_v6 = vpop.f32.mrf.mxu1  ;;  %v647_v8 = vpop.f32.mrf.mxu0 }
 0xba6   :  { %v3224_v10 = vpop.f32.mrf.mxu1  ;;  %v3232_v11 = vpop.f32.mrf.mxu0 }
 0xba8   :  { %v600_v13 = vpop.f32.mrf.mxu1  ;;  %v650_v14 = vpop.f32.mrf.mxu0 }
 0xbaa   :  { %v3225_v15 = vpop.f32.mrf.mxu1  ;;  %v3233_v16 = vpop.f32.mrf.mxu0 }
 0xbac   :  { %v687_v18 = vpop.f32.mrf.mxu1 }
 0xbad   :  { %v693_v19 = vadd.f32 %v687_v18, %v612_v17 }
 0xbae   :  { %v3240_v20 = vpop.f32.mrf.mxu1 }
 0xbaf   :  { %3594 = vtanh.f32 %v693_v19  ;;  %v2960_v24 = vmul.f32 -1.442695, %v693_v19 }
 0xbb0   :  { %v690_v21 = vpop.f32.mrf.mxu1 }
 0xbb1   :  { %3596 = vpow2.f32 %v2960_v24 }
 0xbb2   :  { %v3241_v22 = vpop.f32.mrf.mxu1 }
 0xbbc   :  { %v3595_v23 = vpop.eup %3594 }
 0xbbd   :  { %703 = vrot.lane.b32.xlu1 %v3595_v23, %s3790_s20 }
 0xbbe   :  { %v3597_v29 = vpop.eup %3596 }
 0xbbf   :  { %v697_v31 = vadd.f32 1.0, %v3597_v29 }
 0xbc1   :  { %3598 = vrcp.f32 %v697_v31 }
 0xbce   :  { %v3599_v32 = vpop.eup %3598 }
 0xbcf   :  { %v701_v36 = vmul.f32 %v3599_v32, %v3985_v35 }
 0xc2f   :  { %v704_v33 = vpop.permute.xlu1 %703 }
 0xc30   :  { %v706_v34 = vmul.f32 %v3599_v32, %v704_v33 }
 0xc32   :  { %708 = vrot.lane.b32.xlu0 %v706_v34, %s3791_s21 }
 0xca4   :  { %v709_v37 = vpop.permute.xlu0 %708 }
 0xca5   :  { %v4037_v38 = vadd.f32 %v709_v37, %v701_v36 }
 0xca7   :  { %3600 = vtanh.f32 %v4037_v38 }
 0xcb4   :  { %v3601_v40 = vpop.eup %3600 }
 0xcb5   :  { %714 = vrot.lane.b32.xlu1 %v3601_v40, %s3790_s20 }
 0xd27   :  { %v715_v41 = vpop.permute.xlu1 %714 }
 0xd28   :  { %v717_v25 = vmul.f32 %v3599_v32, %v715_v41 }
 0xd2a   :  { %v718_v42 = vpack.c.bf16 %v717_v25, %v717_v25 }
 0xd2c   :  { %720 = vrot.lane.b32.xlu0 %v718_v42, %s3791_s21 }
 0xd9e   :  { %v721_v43 = vpop.permute.xlu0 %720 }
 0xd9f   :  { %3247 = vmatmul.mubr.msk.bf16.vlgmr.msra.gmra.mxu0 %vm90_vm1, %v721_v43 }
 0xda0   :  { %3259 = vmatpush3.bf16.msra.mxu0 %v3891_v26  ;;  %3262 = vmatprep.mubr.msk.bf16.mxu0 %vm3788_vm0, %v3787_v2 }
 0xda1   :  { %3260 = vmatprep.subr.bf16.mxu0 %v3787_v2 }
 0xda4   :  { %3261 = vmatpush3.bf16.msra.mxu0 %v3897_v27 }
 0xda5   :  { %3274 = vmatprep.subr.bf16.mxu0 %v3787_v2 }
 0xe5f   :  { %v759_v35 = vpop.f32.mrf.mxu0 }
 0xe60   :  { %v760_v44 = vadd.f32 %v759_v35, %v647_v8 }
 0xe61   :  { %v3248_v45 = vpop.f32.mrf.mxu0 }
 0xe62   :  { %v765_v46 = vadd.f32 %v3930_v39, %v760_v44 }
 0xe63   :  { %v762_v47 = vpop.f32.mrf.mxu0 }
 0xe64   :  { %3602 = vtanh.f32 %v765_v46  ;;  %v2962_v50 = vmul.f32 -1.442695, %v765_v46 }
 0xe65   :  { %v3249_v48 = vpop.f32.mrf.mxu0 }
 0xe66   :  { %3604 = vpow2.f32 %v2962_v50 }
 0xe71   :  { %v3603_v49 = vpop.eup %3602 }
 0xe72   :  { %775 = vrot.lane.b32.xlu1 %v3603_v49, %s3790_s20 }
 0xe73   :  { %v3605_v51 = vpop.eup %3604 }
 0xe74   :  { %v769_v52 = vadd.f32 1.0, %v3605_v51 }
 0xe76   :  { %3606 = vrcp.f32 %v769_v52 }
 0xe83   :  { %v3607_v53 = vpop.eup %3606 }
 0xe84   :  { %v773_v60 = vmul.f32 %v3607_v53, %v4001_v59 }
 0xee4   :  { %v776_v54 = vpop.permute.xlu1 %775 }
 0xee5   :  { %v778_v58 = vmul.f32 %v3607_v53, %v776_v54 }
 0xee7   :  { %780 = vrot.lane.b32.xlu0 %v778_v58, %s3791_s21 }
 0xf59   :  { %v781_v61 = vpop.permute.xlu0 %780 }
 0xf5a   :  { %v4053_v62 = vadd.f32 %v781_v61, %v773_v60 }
 0xf5c   :  { %3608 = vtanh.f32 %v4053_v62 }
 0xf69   :  { %v3609_v63 = vpop.eup %3608 }
 0xf6a   :  { %786 = vrot.lane.b32.xlu1 %v3609_v63, %s3790_s20 }
 0xf6e   :  { %842 = vperm.xlu1 %3553, %v839_v0  }
 0xfdc   :  { %v787_v5 = vpop.permute.xlu1 %786 }
 0xfdd   :  { %v789_v55 = vmul.f32 %v3607_v53, %v787_v5 }
 0xfdf   :  { %v790_v8 = vpack.c.bf16 %v789_v55, %v789_v55 }
 0xfe1   :  { %792 = vrot.lane.b32.xlu0 %v790_v8, %s3791_s21 }
 0xfe9   :  { %v843_v59 = vpop.permute.xlu1 %842 }
 0xfea   :  { %v845_v15 = vmul.f32 %v3874_v7, %v843_v59 }
 0xfec   :  { %v846_v20 = vadd.f32 %v3880_v9, %v845_v15 }
0x1053   :  { %v793_v10 = vpop.permute.xlu0 %792 }
0x1054   :  { %3255 = vmatmul.mubr.msk.bf16.vlgmr.msra.gmra.mxu1 %vm90_vm1, %v793_v10  ;;  %3263 = vmatmul.mubr.msk.bf16.vlgmr.msra.gmra.mxu0 %vm90_vm1, %v793_v10  ;;  %v1073_v10 = vld [vmem:[%s4599_s0 + $0x20] sm:$0xff] }
0x1055   :  { %3267 = vmatpush3.bf16.msra.mxu1 %v3849_v1  ;;  %3270 = vmatprep.mubr.msk.bf16.mxu1 %vm3788_vm0, %v3787_v2 }
0x1056   :  { %3268 = vmatprep.subr.bf16.mxu1 %v3787_v2  ;;  %3275 = vmatpush3.bf16.msra.mxu0 %v3904_v28 }
0x1057   :  { %3276 = vmatprep.subr.bf16.mxu0 %v3787_v2  ;;  %3278 = vmatprep.mubr.msk.bf16.mxu0 %vm3788_vm0, %v3787_v2 }
0x1059   :  { %3269 = vmatpush3.bf16.msra.mxu1 %v3857_v3 }
0x105a   :  { %3277 = vmatpush3.bf16.msra.mxu0 %v3912_v30  ;;  %3282 = vmatprep.subr.bf16.mxu1 %v3787_v2 }
0x105b   :  { %3290 = vmatprep.subr.bf16.mxu0 %v3787_v2 }
0x105c   :  { %3271 = vmatmul.mubr.msk.bf16.vlgmr.msra.gmra.mxu1 %vm90_vm1, %v721_v43 }
0x105d   :  { %3283 = vmatpush3.bf16.msra.mxu1 %v3941_v56  ;;  %3286 = vmatprep.mubr.msk.bf16.mxu1 %vm3788_vm0, %v3787_v2 }
0x105e   :  { %3284 = vmatprep.subr.bf16.mxu1 %v3787_v2 }
0x1061   :  { %3285 = vmatpush3.bf16.msra.mxu1 %v3947_v57 }
0x1062   :  { %3298 = vmatprep.subr.bf16.mxu1 %v3787_v2 }
0x1114   :  { %v4082_v11 = vpop.f32.mrf.mxu1  ;;  %v881_v12 = vpop.f32.mrf.mxu0 }
0x1116   :  { %v3256_v13 = vpop.f32.mrf.mxu1  ;;  %v3264_v14 = vpop.f32.mrf.mxu0 }
0x1118   :  { %v834_v16 = vpop.f32.mrf.mxu1  ;;  %v884_v17 = vpop.f32.mrf.mxu0 }
0x111a   :  { %v3257_v18 = vpop.f32.mrf.mxu1  ;;  %v3265_v19 = vpop.f32.mrf.mxu0 }
0x111c   :  { %v921_v21 = vpop.f32.mrf.mxu1 }
0x111d   :  { %v927_v22 = vadd.f32 %v921_v21, %v846_v20 }
0x111e   :  { %v3272_v23 = vpop.f32.mrf.mxu1 }
0x111f   :  { %3610 = vtanh.f32 %v927_v22  ;;  %v2966_v32 = vmul.f32 -1.442695, %v927_v22 }
0x1120   :  { %v924_v24 = vpop.f32.mrf.mxu1 }
0x1121   :  { %3612 = vpow2.f32 %v2966_v32 }
0x1122   :  { %v3273_v29 = vpop.f32.mrf.mxu1 }
0x112c   :  { %v3611_v31 = vpop.eup %3610 }
0x112d   :  { %937 = vrot.lane.b32.xlu0 %v3611_v31, %s3790_s20 }
0x112e   :  { %v3613_v33 = vpop.eup %3612 }
0x112f   :  { %v931_v34 = vadd.f32 1.0, %v3613_v33 }
0x1131   :  { %3614 = vrcp.f32 %v931_v34 }
0x113e   :  { %v3615_v36 = vpop.eup %3614 }
0x113f   :  { %v935_v41 = vmul.f32 %v3615_v36, %v4037_v38 }
0x119f   :  { %v938_v37 = vpop.permute.xlu0 %937 }
0x11a0   :  { %v940_v40 = vmul.f32 %v3615_v36, %v938_v37 }
0x11a2   :  { %942 = vrot.lane.b32.xlu1 %v940_v40, %s3791_s21 }
0x1214   :  { %v943_v25 = vpop.permute.xlu1 %942 }
0x1215   :  { %v4089_v42 = vadd.f32 %v943_v25, %v935_v41 }
0x1217   :  { %3616 = vtanh.f32 %v4089_v42 }
0x1224   :  { %v3617_v43 = vpop.eup %3616 }
0x1225   :  { %948 = vrot.lane.b32.xlu0 %v3617_v43, %s3790_s20 }
0x1297   :  { %v949_v35 = vpop.permute.xlu0 %948 }
0x1298   :  { %v951_v44 = vmul.f32 %v3615_v36, %v949_v35 }
0x129a   :  { %v952_v45 = vpack.c.bf16 %v951_v44, %v951_v44 }
0x129c   :  { %954 = vrot.lane.b32.xlu1 %v952_v45, %s3791_s21 }
0x130e   :  { %v955_v46 = vpop.permute.xlu1 %954 }
0x130f   :  { %3279 = vmatmul.mubr.msk.bf16.vlgmr.msra.gmra.mxu0 %vm90_vm1, %v955_v46 }
0x1310   :  { %3291 = vmatpush3.bf16.msra.mxu0 %v3891_v26  ;;  %3294 = vmatprep.mubr.msk.bf16.mxu0 %vm3788_vm0, %v3787_v2 }
0x1311   :  { %3292 = vmatprep.subr.bf16.mxu0 %v3787_v2 }
0x1314   :  { %3293 = vmatpush3.bf16.msra.mxu0 %v3897_v27 }
0x1315   :  { %3306 = vmatprep.subr.bf16.mxu0 %v3787_v2 }
0x13cf   :  { %v993_v38 = vpop.f32.mrf.mxu0 }
0x13d0   :  { %v994_v47 = vadd.f32 %v993_v38, %v881_v12 }
0x13d1   :  { %v3280_v48 = vpop.f32.mrf.mxu0 }
0x13d2   :  { %v999_v49 = vadd.f32 %v3930_v39, %v994_v47 }
0x13d3   :  { %v996_v50 = vpop.f32.mrf.mxu0 }
0x13d4   :  { %3618 = vtanh.f32 %v999_v49  ;;  %v2968_v53 = vmul.f32 -1.442695, %v999_v49 }
0x13d5   :  { %v3281_v51 = vpop.f32.mrf.mxu0 }
0x13d6   :  { %3620 = vpow2.f32 %v2968_v53 }
0x13e1   :  { %v3619_v52 = vpop.eup %3618 }
0x13e2   :  { %1009 = vrot.lane.b32.xlu0 %v3619_v52, %s3790_s20 }
0x13e3   :  { %v3621_v54 = vpop.eup %3620 }
0x13e4   :  { %v1003_v58 = vadd.f32 1.0, %v3621_v54 }
0x13e6   :  { %3622 = vrcp.f32 %v1003_v58 }
0x13f3   :  { %v3623_v60 = vpop.eup %3622 }
0x13f4   :  { %v1007_v0 = vmul.f32 %v3623_v60, %v4053_v62 }
0x1454   :  { %v1010_v61 = vpop.permute.xlu0 %1009 }
0x1455   :  { %v1012_v63 = vmul.f32 %v3623_v60, %v1010_v61 }
0x1457   :  { %1014 = vrot.lane.b32.xlu1 %v1012_v63, %s3791_s21 }
0x14c9   :  { %v1015_v5 = vpop.permute.xlu1 %1014 }
0x14ca   :  { %v4105_v55 = vadd.f32 %v1015_v5, %v1007_v0 }
0x14cc   :  { %3624 = vtanh.f32 %v4105_v55 }
0x14d9   :  { %v3625_v8 = vpop.eup %3624 }
0x14da   :  { %1020 = vrot.lane.b32.xlu0 %v3625_v8, %s3790_s20 }
0x14de   :  { %1076 = vperm.xlu0 %3552, %v1073_v10  }
0x154c   :  { %v1021_v59 = vpop.permute.xlu0 %1020 }
0x154d   :  { %v1023_v12 = vmul.f32 %v3623_v60, %v1021_v59 }
0x154f   :  { %v1024_v13 = vpack.c.bf16 %v1023_v12, %v1023_v12 }
0x1551   :  { %1026 = vrot.lane.b32.xlu1 %v1024_v13, %s3791_s21 }
0x1559   :  { %v1077_v62 = vpop.permute.xlu0 %1076 }
0x155a   :  { %v1079_v19 = vmul.f32 %v3874_v7, %v1077_v62  ;;  %v1307_v62 = vld [vmem:[%s4599_s0 + $0x28] sm:$0xff] }
0x155c   :  { %v1080_v24 = vadd.f32 %v3880_v9, %v1079_v19 }
0x15c3   :  { %v1027_v14 = vpop.permute.xlu1 %1026 }
0x15c4   :  { %3287 = vmatmul.mubr.msk.bf16.vlgmr.msra.gmra.mxu1 %vm90_vm1, %v1027_v14  ;;  %3295 = vmatmul.mubr.msk.bf16.vlgmr.msra.gmra.mxu0 %vm90_vm1, %v1027_v14 }
0x15c5   :  { %3299 = vmatpush3.bf16.msra.mxu1 %v3849_v1  ;;  %3302 = vmatprep.mubr.msk.bf16.mxu1 %vm3788_vm0, %v3787_v2 }
0x15c6   :  { %3300 = vmatprep.subr.bf16.mxu1 %v3787_v2  ;;  %3307 = vmatpush3.bf16.msra.mxu0 %v3904_v28 }
0x15c7   :  { %3308 = vmatprep.subr.bf16.mxu0 %v3787_v2  ;;  %3310 = vmatprep.mubr.msk.bf16.mxu0 %vm3788_vm0, %v3787_v2 }
0x15c9   :  { %3301 = vmatpush3.bf16.msra.mxu1 %v3857_v3 }
0x15ca   :  { %3309 = vmatpush3.bf16.msra.mxu0 %v3912_v30  ;;  %3314 = vmatprep.subr.bf16.mxu1 %v3787_v2 }
0x15cb   :  { %3322 = vmatprep.subr.bf16.mxu0 %v3787_v2 }
0x15cc   :  { %3303 = vmatmul.mubr.msk.bf16.vlgmr.msra.gmra.mxu1 %vm90_vm1, %v955_v46 }
0x15cd   :  { %3315 = vmatpush3.bf16.msra.mxu1 %v3941_v56  ;;  %3318 = vmatprep.mubr.msk.bf16.mxu1 %vm3788_vm0, %v3787_v2 }
0x15ce   :  { %3316 = vmatprep.subr.bf16.mxu1 %v3787_v2 }
0x15d1   :  { %3317 = vmatpush3.bf16.msra.mxu1 %v3947_v57 }
0x15d2   :  { %3330 = vmatprep.subr.bf16.mxu1 %v3787_v2 }
0x1684   :  { %v4134_v15 = vpop.f32.mrf.mxu1  ;;  %v1115_v16 = vpop.f32.mrf.mxu0 }
0x1686   :  { %v3288_v17 = vpop.f32.mrf.mxu1  ;;  %v3296_v18 = vpop.f32.mrf.mxu0 }
0x1688   :  { %v1068_v20 = vpop.f32.mrf.mxu1  ;;  %v1118_v21 = vpop.f32.mrf.mxu0 }
0x168a   :  { %v3289_v22 = vpop.f32.mrf.mxu1  ;;  %v3297_v23 = vpop.f32.mrf.mxu0 }
0x168c   :  { %v1155_v29 = vpop.f32.mrf.mxu1 }
0x168d   :  { %v1161_v31 = vadd.f32 %v1155_v29, %v1080_v24 }
0x168e   :  { %v3304_v32 = vpop.f32.mrf.mxu1 }
0x168f   :  { %3626 = vtanh.f32 %v1161_v31  ;;  %v2972_v37 = vmul.f32 -1.442695, %v1161_v31 }
0x1690   :  { %v1158_v33 = vpop.f32.mrf.mxu1 }
0x1691   :  { %3628 = vpow2.f32 %v2972_v37 }
0x1692   :  { %v3305_v34 = vpop.f32.mrf.mxu1 }
0x169c   :  { %v3627_v36 = vpop.eup %3626 }
0x169d   :  { %1171 = vrot.lane.b32.xlu1 %v3627_v36, %s3790_s20 }
0x169e   :  { %v3629_v40 = vpop.eup %3628 }
0x169f   :  { %v1165_v41 = vadd.f32 1.0, %v3629_v40 }
0x16a1   :  { %3630 = vrcp.f32 %v1165_v41 }
0x16ae   :  { %v3631_v25 = vpop.eup %3630 }
0x16af   :  { %v1169_v44 = vmul.f32 %v3631_v25, %v4089_v42 }
0x170f   :  { %v1172_v43 = vpop.permute.xlu1 %1171 }
0x1710   :  { %v1174_v35 = vmul.f32 %v3631_v25, %v1172_v43 }
0x1712   :  { %1176 = vrot.lane.b32.xlu0 %v1174_v35, %s3791_s21 }
0x1784   :  { %v1177_v45 = vpop.permute.xlu0 %1176 }
0x1785   :  { %v4141_v46 = vadd.f32 %v1177_v45, %v1169_v44 }
0x1787   :  { %3632 = vtanh.f32 %v4141_v46 }
0x1794   :  { %v3633_v38 = vpop.eup %3632 }
0x1795   :  { %1182 = vrot.lane.b32.xlu1 %v3633_v38, %s3790_s20 }
0x1807   :  { %v1183_v47 = vpop.permute.xlu1 %1182 }
0x1808   :  { %v1185_v48 = vmul.f32 %v3631_v25, %v1183_v47 }
0x180a   :  { %v1186_v49 = vpack.c.bf16 %v1185_v48, %v1185_v48 }
0x180c   :  { %1188 = vrot.lane.b32.xlu0 %v1186_v49, %s3791_s21 }
0x187e   :  { %v1189_v50 = vpop.permute.xlu0 %1188 }
0x187f   :  { %3311 = vmatmul.mubr.msk.bf16.vlgmr.msra.gmra.mxu0 %vm90_vm1, %v1189_v50 }
0x1880   :  { %3323 = vmatpush3.bf16.msra.mxu0 %v3891_v26  ;;  %3326 = vmatprep.mubr.msk.bf16.mxu0 %vm3788_vm0, %v3787_v2 }
0x1881   :  { %3324 = vmatprep.subr.bf16.mxu0 %v3787_v2 }
0x1884   :  { %3325 = vmatpush3.bf16.msra.mxu0 %v3897_v27 }
0x1885   :  { %3338 = vmatprep.subr.bf16.mxu0 %v3787_v2 }
0x193f   :  { %v1227_v42 = vpop.f32.mrf.mxu0 }
0x1940   :  { %v1228_v51 = vadd.f32 %v1227_v42, %v1115_v16 }
0x1941   :  { %v3312_v52 = vpop.f32.mrf.mxu0 }
0x1942   :  { %v1233_v53 = vadd.f32 %v3930_v39, %v1228_v51 }
0x1943   :  { %v1230_v54 = vpop.f32.mrf.mxu0 }
0x1944   :  { %3634 = vtanh.f32 %v1233_v53  ;;  %v2974_v61 = vmul.f32 -1.442695, %v1233_v53 }
0x1945   :  { %v3313_v58 = vpop.f32.mrf.mxu0 }
0x1946   :  { %3636 = vpow2.f32 %v2974_v61 }
0x1951   :  { %v3635_v60 = vpop.eup %3634 }
0x1952   :  { %1243 = vrot.lane.b32.xlu1 %v3635_v60, %s3790_s20 }
0x1953   :  { %v3637_v63 = vpop.eup %3636 }
0x1954   :  { %v1237_v0 = vadd.f32 1.0, %v3637_v63 }
0x1956   :  { %3638 = vrcp.f32 %v1237_v0 }
0x1963   :  { %v3639_v5 = vpop.eup %3638 }
0x1964   :  { %v1241_v59 = vmul.f32 %v3639_v5, %v4105_v55 }
0x19c4   :  { %v1244_v8 = vpop.permute.xlu1 %1243 }
0x19c5   :  { %v1246_v10 = vmul.f32 %v3639_v5, %v1244_v8 }
0x19c7   :  { %1248 = vrot.lane.b32.xlu0 %v1246_v10, %s3791_s21 }
0x1a39   :  { %v1249_v12 = vpop.permute.xlu0 %1248 }
0x1a3a   :  { %v4157_v13 = vadd.f32 %v1249_v12, %v1241_v59  ;;  %v1541_v59 = vld [vmem:[%s4599_s0 + $0x30] sm:$0xff] }
0x1a3c   :  { %3640 = vtanh.f32 %v4157_v13 }
0x1a49   :  { %v3641_v14 = vpop.eup %3640 }
0x1a4a   :  { %1254 = vrot.lane.b32.xlu1 %v3641_v14, %s3790_s20 }
0x1a4e   :  { %1310 = vperm.xlu1 %3553, %v1307_v62  }
0x1abc   :  { %v1255_v16 = vpop.permute.xlu1 %1254 }
0x1abd   :  { %v1257_v17 = vmul.f32 %v3639_v5, %v1255_v16 }
0x1abf   :  { %v1258_v18 = vpack.c.bf16 %v1257_v17, %v1257_v17  ;;  %v4231_v17 = vld [vmem:[%s4603_s4 + $0x8] sm:$0xff]  }
0x1ac1   :  { %1260 = vrot.lane.b32.xlu0 %v1258_v18, %s3791_s21  ;;  %v4240_v18 = vld [vmem:[%s4601_s2] sm:$0xff]  }
0x1b33   :  { %v1261_v19 = vpop.permute.xlu0 %1260 }
0x1b34   :  { %3319 = vmatmul.mubr.msk.bf16.vlgmr.msra.gmra.mxu1 %vm90_vm1, %v1261_v19  ;;  %3327 = vmatmul.mubr.msk.bf16.vlgmr.msra.gmra.mxu0 %vm90_vm1, %v1261_v19  ;;  %v4246_v19 = vld [vmem:[%s4603_s4] sm:$0xff]  }
0x1b35   :  { %3331 = vmatpush3.bf16.msra.mxu1 %v3849_v1  ;;  %3334 = vmatprep.mubr.msk.bf16.mxu1 %vm3788_vm0, %v3787_v2  ;;  %v1311_v1 = vpop.permute.xlu1 %1310 }
0x1b36   :  { %3332 = vmatprep.subr.bf16.mxu1 %v3787_v2  ;;  %3339 = vmatpush3.bf16.msra.mxu0 %v3904_v28  ;;  %v1313_v20 = vmul.f32 %v3874_v7, %v1311_v1 }
0x1b37   :  { %3340 = vmatprep.subr.bf16.mxu0 %v3787_v2  ;;  %3342 = vmatprep.mubr.msk.bf16.mxu0 %vm3788_vm0, %v3787_v2 }
0x1b38   :  { %v1314_v29 = vadd.f32 %v3880_v9, %v1313_v20 }
0x1b39   :  { %3333 = vmatpush3.bf16.msra.mxu1 %v3857_v3 }
0x1b3a   :  { %3341 = vmatpush3.bf16.msra.mxu0 %v3912_v30  ;;  %3346 = vmatprep.subr.bf16.mxu1 %v3787_v2 }
0x1b3b   :  { %3354 = vmatprep.subr.bf16.mxu0 %v3787_v2 }
0x1b3c   :  { %3335 = vmatmul.mubr.msk.bf16.vlgmr.msra.gmra.mxu1 %vm90_vm1, %v1189_v50 }
0x1b3d   :  { %3347 = vmatpush3.bf16.msra.mxu1 %v3941_v56  ;;  %3350 = vmatprep.mubr.msk.bf16.mxu1 %vm3788_vm0, %v3787_v2 }
0x1b3e   :  { %3348 = vmatprep.subr.bf16.mxu1 %v3787_v2 }
0x1b41   :  { %3349 = vmatpush3.bf16.msra.mxu1 %v3947_v57 }
0x1b42   :  { %3362 = vmatprep.subr.bf16.mxu1 %v3787_v2 }
0x1bf4   :  { %v4186_v3 = vpop.f32.mrf.mxu1  ;;  %v1349_v28 = vpop.f32.mrf.mxu0 }
0x1bf6   :  { %v3320_v30 = vpop.f32.mrf.mxu1  ;;  %v3328_v55 = vpop.f32.mrf.mxu0 }
0x1bf8   :  { %v1302_v21 = vpop.f32.mrf.mxu1  ;;  %v1352_v22 = vpop.f32.mrf.mxu0 }
0x1bf9   :  { %v4263_v21 = vld [vmem:[%s4600_s1] ss:$0 sm:$0xff] }
0x1bfa   :  { %v3321_v23 = vpop.f32.mrf.mxu1  ;;  %v3329_v24 = vpop.f32.mrf.mxu0 }
0x1bfc   :  { %v1389_v31 = vpop.f32.mrf.mxu1 }
0x1bfd   :  { %v1395_v32 = vadd.f32 %v1389_v31, %v1314_v29 }
0x1bfe   :  { %v3336_v33 = vpop.f32.mrf.mxu1 }
0x1bff   :  { %3642 = vtanh.f32 %v1395_v32  ;;  %v2978_v40 = vmul.f32 -1.442695, %v1395_v32 }
0x1c00   :  { %v1392_v34 = vpop.f32.mrf.mxu1 }
0x1c01   :  { %3644 = vpow2.f32 %v2978_v40 }
0x1c02   :  { %v3337_v36 = vpop.f32.mrf.mxu1 }
0x1c0c   :  { %v3643_v37 = vpop.eup %3642 }
0x1c0d   :  { %1405 = vrot.lane.b32.xlu0 %v3643_v37, %s3790_s20 }
0x1c0e   :  { %v3645_v41 = vpop.eup %3644 }
0x1c0f   :  { %v1399_v25 = vadd.f32 1.0, %v3645_v41 }
0x1c11   :  { %3646 = vrcp.f32 %v1399_v25 }
0x1c1e   :  { %v3647_v7 = vpop.eup %3646 }
0x1c1f   :  { %v1403_v9 = vmul.f32 %v3647_v7, %v4141_v46 }
0x1c7f   :  { %v1406_v43 = vpop.permute.xlu0 %1405 }
0x1c80   :  { %v1408_v35 = vmul.f32 %v3647_v7, %v1406_v43 }
0x1c82   :  { %1410 = vrot.lane.b32.xlu1 %v1408_v35, %s3791_s21 }
0x1cf4   :  { %v1411_v44 = vpop.permute.xlu1 %1410 }
0x1cf5   :  { %v4193_v45 = vadd.f32 %v1411_v44, %v1403_v9 }
0x1cf7   :  { %3648 = vtanh.f32 %v4193_v45 }
0x1d04   :  { %v3649_v38 = vpop.eup %3648 }
0x1d05   :  { %1416 = vrot.lane.b32.xlu0 %v3649_v38, %s3790_s20 }
0x1d77   :  { %v1417_v47 = vpop.permute.xlu0 %1416 }
0x1d78   :  { %v1419_v48 = vmul.f32 %v3647_v7, %v1417_v47 }
0x1d7a   :  { %v1420_v49 = vpack.c.bf16 %v1419_v48, %v1419_v48 }
0x1d7c   :  { %1422 = vrot.lane.b32.xlu1 %v1420_v49, %s3791_s21 }
0x1dee   :  { %v1423_v50 = vpop.permute.xlu1 %1422 }
0x1def   :  { %3343 = vmatmul.mubr.msk.bf16.vlgmr.msra.gmra.mxu0 %vm90_vm1, %v1423_v50 }
0x1df0   :  { %3355 = vmatpush3.bf16.msra.mxu0 %v3891_v26  ;;  %3358 = vmatprep.mubr.msk.bf16.mxu0 %vm3788_vm0, %v3787_v2 }
0x1df1   :  { %3356 = vmatprep.subr.bf16.mxu0 %v3787_v2 }
0x1df4   :  { %3357 = vmatpush3.bf16.msra.mxu0 %v3897_v27 }
0x1df5   :  { %3370 = vmatprep.subr.bf16.mxu0 %v3787_v2 }
0x1eaf   :  { %v1461_v46 = vpop.f32.mrf.mxu0 }
0x1eb0   :  { %v1462_v42 = vadd.f32 %v1461_v46, %v1349_v28 }
0x1eb1   :  { %v3344_v51 = vpop.f32.mrf.mxu0 }
0x1eb2   :  { %v1467_v52 = vadd.f32 %v3930_v39, %v1462_v42  ;;  %v4293_v51 = vld [vmem:[%s4604_s5] sm:$0xff]  }
0x1eb3   :  { %v1464_v53 = vpop.f32.mrf.mxu0 }
0x1eb4   :  { %3650 = vtanh.f32 %v1467_v52  ;;  %v2980_v26 = vmul.f32 -1.442695, %v1467_v52 }
0x1eb5   :  { %v3345_v54 = vpop.f32.mrf.mxu0 }
0x1eb6   :  { %3652 = vpow2.f32 %v2980_v26 }
0x1ec1   :  { %v3651_v58 = vpop.eup %3650 }
0x1ec2   :  { %1477 = vrot.lane.b32.xlu0 %v3651_v58, %s3790_s20  ;;  %v4300_v58 = vld [vmem:[%s4605_s6] ss:$0 sm:$0xff] }
0x1ec3   :  { %v3653_v60 = vpop.eup %3652 }
0x1ec4   :  { %v1471_v61 = vadd.f32 1.0, %v3653_v60 }
0x1ec6   :  { %3654 = vrcp.f32 %v1471_v61 }
0x1ed3   :  { %v3655_v63 = vpop.eup %3654 }
0x1ed4   :  { %v1475_v5 = vmul.f32 %v3655_v63, %v4157_v13  ;;  %v4222_v13 = vld [vmem:[%s4601_s2 + $0x8] sm:$0xff]  }
0x1f34   :  { %v1478_v27 = vpop.permute.xlu0 %1477 }
0x1f35   :  { %v1480_v0 = vmul.f32 %v3655_v63, %v1478_v27 }
0x1f37   :  { %1482 = vrot.lane.b32.xlu1 %v1480_v0, %s3791_s21 }
0x1fa9   :  { %v1483_v8 = vpop.permute.xlu1 %1482 }
0x1faa   :  { %v4209_v39 = vadd.f32 %v1483_v8, %v1475_v5 }
0x1fac   :  { %3656 = vtanh.f32 %v4209_v39 }
0x1fb9   :  { %v3657_v10 = vpop.eup %3656 }
0x1fba   :  { %1488 = vrot.lane.b32.xlu0 %v3657_v10, %s3790_s20 }
0x1fbe   :  { %1544 = vperm.xlu0 %3552, %v1541_v59  }
0x202c   :  { %v1489_v12 = vpop.permute.xlu0 %1488 }
0x202d   :  { %v1491_v14 = vmul.f32 %v3655_v63, %v1489_v12 }
0x202f   :  { %v1492_v62 = vpack.c.bf16 %v1491_v14, %v1491_v14 }
0x2031   :  { %1494 = vrot.lane.b32.xlu1 %v1492_v62, %s3791_s21 }
0x2039   :  { %v1545_v1 = vpop.permute.xlu0 %1544 }
0x20a3   :  { %v1495_v16 = vpop.permute.xlu1 %1494 }
0x20a4   :  { %3351 = vmatmul.mubr.msk.bf16.vlgmr.msra.gmra.mxu1 %vm90_vm1, %v1495_v16  ;;  %3359 = vmatmul.mubr.msk.bf16.vlgmr.msra.gmra.mxu0 %vm90_vm1, %v1495_v16 }
0x20a5   :  { %3363 = vmatpush3.bf16.msra.mxu1 %v4222_v13  ;;  %3366 = vmatprep.mubr.msk.bf16.mxu1 %vm3788_vm0, %v3787_v2 }
0x20a6   :  { %3364 = vmatprep.subr.bf16.mxu1 %v3787_v2  ;;  %3371 = vmatpush3.bf16.msra.mxu0 %v4231_v17 }
0x20a7   :  { %3372 = vmatprep.subr.bf16.mxu0 %v3787_v2  ;;  %3374 = vmatprep.mubr.msk.bf16.mxu0 %vm3788_vm0, %v3787_v2 }
0x20a9   :  { %3365 = vmatpush3.bf16.msra.mxu1 %v4240_v18 }
0x20aa   :  { %3373 = vmatpush3.bf16.msra.mxu0 %v4246_v19  ;;  %3378 = vmatprep.subr.bf16.mxu1 %v3787_v2 }
0x20ab   :  { %3386 = vmatprep.subr.bf16.mxu0 %v3787_v2 }
0x20ac   :  { %3367 = vmatmul.mubr.msk.bf16.vlgmr.msra.gmra.mxu1 %vm90_vm1, %v1423_v50 }
0x20ad   :  { %3379 = vmatpush3.bf16.msra.mxu1 %v3941_v56  ;;  %3382 = vmatprep.mubr.msk.bf16.mxu1 %vm3788_vm0, %v3787_v2  ;;  %v1547_v56 = vmul.f32 %v4263_v21, %v1545_v1  ;;  %v1775_v1 = vld [vmem:[%s4599_s0 + $0x38] sm:$0xff] }
0x20ae   :  { %3380 = vmatprep.subr.bf16.mxu1 %v3787_v2 }
0x20b1   :  { %3381 = vmatpush3.bf16.msra.mxu1 %v3947_v57  ;;  %v4269_v57 = vld [vmem:[%s4602_s3] ss:$0 sm:$0xff] }
0x20b2   :  { %3394 = vmatprep.subr.bf16.mxu1 %v3787_v2  ;;  %v1548_v31 = vadd.f32 %v4269_v57, %v1547_v56 }
0x2164   :  { %v4258_v28 = vpop.f32.mrf.mxu1  ;;  %v1583_v30 = vpop.f32.mrf.mxu0 }
0x2166   :  { %v3352_v55 = vpop.f32.mrf.mxu1  ;;  %v3360_v20 = vpop.f32.mrf.mxu0 }
0x2168   :  { %v1536_v22 = vpop.f32.mrf.mxu1  ;;  %v1586_v23 = vpop.f32.mrf.mxu0 }
0x2169   :  { %v4341_v22 = vld [vmem:[%s4606_s7] sm:$0xff]  }
0x216a   :  { %v3353_v24 = vpop.f32.mrf.mxu1  ;;  %v3361_v29 = vpop.f32.mrf.mxu0 }
0x216c   :  { %v1623_v32 = vpop.f32.mrf.mxu1 }
0x216d   :  { %v1629_v33 = vadd.f32 %v1623_v32, %v1548_v31 }
0x216e   :  { %v3368_v34 = vpop.f32.mrf.mxu1 }
0x216f   :  { %3658 = vtanh.f32 %v1629_v33  ;;  %v2984_v41 = vmul.f32 -1.442695, %v1629_v33 }
0x2170   :  { %v1626_v36 = vpop.f32.mrf.mxu1 }
0x2171   :  { %3660 = vpow2.f32 %v2984_v41 }
0x2172   :  { %v3369_v37 = vpop.f32.mrf.mxu1 }
0x217c   :  { %v3659_v40 = vpop.eup %3658 }
0x217d   :  { %1639 = vrot.lane.b32.xlu1 %v3659_v40, %s3790_s20 }
0x217e   :  { %v3661_v25 = vpop.eup %3660 }
0x217f   :  { %v1633_v7 = vadd.f32 1.0, %v3661_v25 }
0x2181   :  { %3662 = vrcp.f32 %v1633_v7 }
0x218e   :  { %v3663_v43 = vpop.eup %3662 }
0x218f   :  { %v1637_v44 = vmul.f32 %v3663_v43, %v4193_v45  ;;  %v4284_v45 = vld [vmem:[%s4604_s5 + $0x8] sm:$0xff]  }
0x21ef   :  { %v1640_v35 = vpop.permute.xlu1 %1639 }
0x21f0   :  { %v1642_v9 = vmul.f32 %v3663_v43, %v1640_v35 }
0x21f2   :  { %1644 = vrot.lane.b32.xlu0 %v1642_v9, %s3791_s21 }
0x2264   :  { %v1645_v38 = vpop.permute.xlu0 %1644 }
0x2265   :  { %v4275_v47 = vadd.f32 %v1645_v38, %v1637_v44 }
0x2267   :  { %3664 = vtanh.f32 %v4275_v47 }
0x2274   :  { %v3665_v48 = vpop.eup %3664 }
0x2275   :  { %1650 = vrot.lane.b32.xlu1 %v3665_v48, %s3790_s20 }
0x22e7   :  { %v1651_v49 = vpop.permute.xlu1 %1650 }
0x22e8   :  { %v1653_v50 = vmul.f32 %v3663_v43, %v1651_v49 }
0x22ea   :  { %v1654_v46 = vpack.c.bf16 %v1653_v50, %v1653_v50 }
0x22ec   :  { %1656 = vrot.lane.b32.xlu0 %v1654_v46, %s3791_s21 }
0x235e   :  { %v1657_v42 = vpop.permute.xlu0 %1656 }
0x235f   :  { %3375 = vmatmul.mubr.msk.bf16.vlgmr.msra.gmra.mxu0 %vm90_vm1, %v1657_v42 }
0x2360   :  { %3387 = vmatpush3.bf16.msra.mxu0 %v4284_v45  ;;  %3390 = vmatprep.mubr.msk.bf16.mxu0 %vm3788_vm0, %v3787_v2 }
0x2361   :  { %3388 = vmatprep.subr.bf16.mxu0 %v3787_v2 }
0x2364   :  { %3389 = vmatpush3.bf16.msra.mxu0 %v4293_v51 }
0x2365   :  { %3402 = vmatprep.subr.bf16.mxu0 %v3787_v2 }
0x241f   :  { %v1695_v52 = vpop.f32.mrf.mxu0 }
0x2420   :  { %v1696_v53 = vadd.f32 %v1695_v52, %v1583_v30 }
0x2421   :  { %v3376_v54 = vpop.f32.mrf.mxu0 }
0x2422   :  { %v1701_v26 = vadd.f32 %v4300_v58, %v1696_v53 }
0x2423   :  { %v1698_v60 = vpop.f32.mrf.mxu0 }
0x2424   :  { %3666 = vtanh.f32 %v1701_v26  ;;  %v2986_v27 = vmul.f32 -1.442695, %v1701_v26 }
0x2425   :  { %v3377_v61 = vpop.f32.mrf.mxu0 }
0x2426   :  { %3668 = vpow2.f32 %v2986_v27 }
0x2431   :  { %v3667_v63 = vpop.eup %3666 }
0x2432   :  { %1711 = vrot.lane.b32.xlu1 %v3667_v63, %s3790_s20 }
0x2433   :  { %v3669_v0 = vpop.eup %3668 }
0x2434   :  { %v1705_v5 = vadd.f32 1.0, %v3669_v0 }
0x2436   :  { %3670 = vrcp.f32 %v1705_v5 }
0x2443   :  { %v3671_v8 = vpop.eup %3670 }
0x2444   :  { %v1709_v12 = vmul.f32 %v3671_v8, %v4209_v39  ;;  %v4332_v39 = vld [vmem:[%s4606_s7 + $0x8] sm:$0xff]   ;;  %s3792_s7 = smov [#allocation3]  }
0x2445   :  { %s2928_s25 = sshll.u32 %s3792_s7, 4  ;;  %s2929_s25 = int_to_ptr.vmem [resolvable:$true] %s2928_s25 }
0x2446   :  { %p3770_p1 = scmp.lt.s32.totalorder %s2929_s25, %s2929_s25 }
0x24a4   :  { %v1712_v10 = vpop.permute.xlu1 %1711 }
0x24a5   :  { %v1714_v59 = vmul.f32 %v3671_v8, %v1712_v10 }
0x24a7   :  { %1716 = vrot.lane.b32.xlu0 %v1714_v59, %s3791_s21 }
0x2519   :  { %v1717_v14 = vpop.permute.xlu0 %1716 }
0x251a   :  { %v4306_v62 = vadd.f32 %v1717_v14, %v1709_v12 }
0x251c   :  { %3672 = vtanh.f32 %v4306_v62 }
0x2529   :  { %v3673_v16 = vpop.eup %3672 }
0x252a   :  { %1722 = vrot.lane.b32.xlu1 %v3673_v16, %s3790_s20 }
0x252e   :  { %1778 = vperm.xlu1 %3553, %v1775_v1  }
0x259c   :  { %v1723_v30 = vpop.permute.xlu1 %1722 }
0x259d   :  { %v1725_v55 = vmul.f32 %v3671_v8, %v1723_v30 }
0x259f   :  { %v1726_v20 = vpack.c.bf16 %v1725_v55, %v1725_v55 }
0x25a1   :  { %1728 = vrot.lane.b32.xlu0 %v1726_v20, %s3791_s21 }
0x25a9   :  { %v1779_v23 = vpop.permute.xlu1 %1778 }
0x25aa   :  { %v1781_v33 = vmul.f32 %v4263_v21, %v1779_v23 }
0x25ac   :  { %v1782_v41 = vadd.f32 %v4269_v57, %v1781_v33 }
0x2613   :  { %v1729_v56 = vpop.permute.xlu0 %1728 }
0x2614   :  { %3383 = vmatmul.mubr.msk.bf16.vlgmr.msra.gmra.mxu1 %vm90_vm1, %v1729_v56  ;;  %3391 = vmatmul.mubr.msk.bf16.vlgmr.msra.gmra.mxu0 %vm90_vm1, %v1729_v56 }
0x2615   :  { %3395 = vmatpush3.bf16.msra.mxu1 %v4222_v13  ;;  %3398 = vmatprep.mubr.msk.bf16.mxu1 %vm3788_vm0, %v3787_v2 }
0x2616   :  { %3396 = vmatprep.subr.bf16.mxu1 %v3787_v2  ;;  %3403 = vmatpush3.bf16.msra.mxu0 %v4231_v17 }
0x2617   :  { %3404 = vmatprep.subr.bf16.mxu0 %v3787_v2  ;;  %3406 = vmatprep.mubr.msk.bf16.mxu0 %vm3788_vm0, %v3787_v2 }
0x2619   :  { %3397 = vmatpush3.bf16.msra.mxu1 %v4240_v18 }
0x261a   :  { %3405 = vmatpush3.bf16.msra.mxu0 %v4246_v19  ;;  %3410 = vmatprep.subr.bf16.mxu1 %v3787_v2 }
0x261b   :  { %3418 = vmatprep.subr.bf16.mxu0 %v3787_v2 }
0x261c   :  { %3399 = vmatmul.mubr.msk.bf16.vlgmr.msra.gmra.mxu1 %vm90_vm1, %v1657_v42 }
0x261d   :  { %3411 = vmatpush3.bf16.msra.mxu1 %v4332_v39  ;;  %3414 = vmatprep.mubr.msk.bf16.mxu1 %vm3788_vm0, %v3787_v2 }
0x261e   :  { %3412 = vmatprep.subr.bf16.mxu1 %v3787_v2 }
0x2621   :  { %3413 = vmatpush3.bf16.msra.mxu1 %v4341_v22 }
0x2622   :  { %3426 = vmatprep.subr.bf16.mxu1 %v3787_v2 }
0x26d4   :  { %v4345_v24 = vpop.f32.mrf.mxu1  ;;  %v1817_v29 = vpop.f32.mrf.mxu0 }
0x26d6   :  { %v3384_v31 = vpop.f32.mrf.mxu1  ;;  %v3392_v32 = vpop.f32.mrf.mxu0 }
0x26d7   :  { %v2948_v32 = vld [vmem:[#allocation2] ss:$0 sm:$0xff] }
0x26d8   :  { %v1770_v34 = vpop.f32.mrf.mxu1  ;;  %v1820_v36 = vpop.f32.mrf.mxu0 }
0x26da   :  { %v3385_v37 = vpop.f32.mrf.mxu1  ;;  %v3393_v40 = vpop.f32.mrf.mxu0 }
0x26dc   :  { %v1857_v25 = vpop.f32.mrf.mxu1 }
0x26dd   :  { %v1863_v7 = vadd.f32 %v1857_v25, %v1782_v41 }
0x26de   :  { %v3400_v43 = vpop.f32.mrf.mxu1 }
0x26df   :  { %3674 = vtanh.f32 %v1863_v7  ;;  %v2990_v38 = vmul.f32 -1.442695, %v1863_v7 }
0x26e0   :  { %v1860_v35 = vpop.f32.mrf.mxu1 }
0x26e1   :  { %3676 = vpow2.f32 %v2990_v38 }
0x26e2   :  { %v3401_v9 = vpop.f32.mrf.mxu1 }
0x26ec   :  { %v3675_v44 = vpop.eup %3674 }
0x26ed   :  { %1873 = vrot.lane.b32.xlu0 %v3675_v44, %s3790_s20 }
0x26ee   :  { %v3677_v48 = vpop.eup %3676 }
0x26ef   :  { %v1867_v49 = vadd.f32 1.0, %v3677_v48 }
0x26f1   :  { %3678 = vrcp.f32 %v1867_v49 }
0x26fe   :  { %v3679_v50 = vpop.eup %3678 }
0x26ff   :  { %v1871_v52 = vmul.f32 %v3679_v50, %v4275_v47 }
0x275f   :  { %v1874_v46 = vpop.permute.xlu0 %1873 }
0x2760   :  { %v1876_v42 = vmul.f32 %v3679_v50, %v1874_v46 }
0x2762   :  { %1878 = vrot.lane.b32.xlu1 %v1876_v42, %s3791_s21 }
0x27d4   :  { %v1879_v53 = vpop.permute.xlu1 %1878 }
0x27d5   :  { %v4352_v54 = vadd.f32 %v1879_v53, %v1871_v52 }
0x27d7   :  { %3680 = vtanh.f32 %v4352_v54 }
0x27e4   :  { %v3681_v26 = vpop.eup %3680 }
0x27e5   :  { %1884 = vrot.lane.b32.xlu0 %v3681_v26, %s3790_s20 }
0x2857   :  { %v1885_v60 = vpop.permute.xlu0 %1884 }
0x2858   :  { %v1887_v61 = vmul.f32 %v3679_v50, %v1885_v60 }
0x285a   :  { %v1888_v63 = vpack.c.bf16 %v1887_v61, %v1887_v61 }
0x285c   :  { %1890 = vrot.lane.b32.xlu1 %v1888_v63, %s3791_s21 }
0x28ce   :  { %v1891_v27 = vpop.permute.xlu1 %1890 }
0x28cf   :  { %3407 = vmatmul.mubr.msk.bf16.vlgmr.msra.gmra.mxu0 %vm90_vm1, %v1891_v27 }
0x28d0   :  { %3419 = vmatpush3.bf16.msra.mxu0 %v4284_v45  ;;  %3422 = vmatprep.mubr.msk.bf16.mxu0 %vm3788_vm0, %v3787_v2 }
0x28d1   :  { %3420 = vmatprep.subr.bf16.mxu0 %v3787_v2 }
0x28d4   :  { %3421 = vmatpush3.bf16.msra.mxu0 %v4293_v51 }
0x28d5   :  { %3434 = vmatprep.subr.bf16.mxu0 %v3787_v2 }
0x298f   :  { %v1929_v47 = vpop.f32.mrf.mxu0 }
0x2990   :  { %v1930_v0 = vadd.f32 %v1929_v47, %v1817_v29 }
0x2991   :  { %v3408_v5 = vpop.f32.mrf.mxu0 }
0x2992   :  { %v1935_v8 = vadd.f32 %v4300_v58, %v1930_v0 }
0x2993   :  { %v1932_v10 = vpop.f32.mrf.mxu0 }
0x2994   :  { %3682 = vtanh.f32 %v1935_v8  ;;  %v2992_v14 = vmul.f32 -1.442695, %v1935_v8 }
0x2995   :  { %v3409_v59 = vpop.f32.mrf.mxu0 }
0x2996   :  { %3684 = vpow2.f32 %v2992_v14 }
0x29a1   :  { %v3683_v12 = vpop.eup %3682 }
0x29a2   :  { %1945 = vrot.lane.b32.xlu0 %v3683_v12, %s3790_s20 }
0x29a3   :  { %v3685_v16 = vpop.eup %3684 }
0x29a4   :  { %v1939_v1 = vadd.f32 1.0, %v3685_v16 }
0x29a6   :  { %3686 = vrcp.f32 %v1939_v1 }
0x29b3   :  { %v3687_v30 = vpop.eup %3686 }
0x29b4   :  { %v1943_v56 = vmul.f32 %v3687_v30, %v4306_v62 }
0x2a14   :  { %v1946_v55 = vpop.permute.xlu0 %1945 }
0x2a15   :  { %v1948_v20 = vmul.f32 %v3687_v30, %v1946_v55 }
0x2a17   :  { %1950 = vrot.lane.b32.xlu1 %v1948_v20, %s3791_s21 }
0x2a89   :  { %v1951_v23 = vpop.permute.xlu1 %1950 }
0x2a8a   :  { %v4368_v29 = vadd.f32 %v1951_v23, %v1943_v56 }
0x2a8c   :  { %3688 = vtanh.f32 %v4368_v29 }
0x2a99   :  { %v3689_v31 = vpop.eup %3688 }
0x2a9a   :  { %1956 = vrot.lane.b32.xlu0 %v3689_v31, %s3790_s20 }
0x2a9e   :  { %308 = vperm.xlu0 %3552, %v2948_v32  }
0x2b0c   :  { %v1957_v33 = vpop.permute.xlu0 %1956 }
0x2b0d   :  { %v1959_v34 = vmul.f32 %v3687_v30, %v1957_v33 }
0x2b0f   :  { %v1960_v36 = vpack.c.bf16 %v1959_v34, %v1959_v34 }
0x2b11   :  { %1962 = vrot.lane.b32.xlu1 %v1960_v36, %s3791_s21 }
0x2b19   :  { %v4394_v62 = vpop.permute.xlu0 %308 }
0x2b83   :  { %v1963_v37 = vpop.permute.xlu1 %1962 }
0x2b84   :  { %3415 = vmatmul.mubr.msk.bf16.vlgmr.msra.gmra.mxu1 %vm90_vm1, %v1963_v37  ;;  %3423 = vmatmul.mubr.msk.bf16.vlgmr.msra.gmra.mxu0 %vm90_vm1, %v1963_v37 }
0x2b85   :  { %3427 = vmatpush3.bf16.msra.mxu1 %v4222_v13  ;;  %3430 = vmatprep.mubr.msk.bf16.mxu1 %vm3788_vm0, %v3787_v2 }
0x2b86   :  { %3428 = vmatprep.subr.bf16.mxu1 %v3787_v2  ;;  %3435 = vmatpush3.bf16.msra.mxu0 %v4231_v17 }
0x2b87   :  { %3436 = vmatprep.subr.bf16.mxu0 %v3787_v2  ;;  %3438 = vmatprep.mubr.msk.bf16.mxu0 %vm3788_vm0, %v3787_v2 }
0x2b89   :  { %3429 = vmatpush3.bf16.msra.mxu1 %v4240_v18 }
0x2b8a   :  { %3437 = vmatpush3.bf16.msra.mxu0 %v4246_v19  ;;  %3442 = vmatprep.subr.bf16.mxu1 %v3787_v2 }
0x2b8b   :  { %3450 = vmatprep.subr.bf16.mxu0 %v3787_v2 }
0x2b8c   :  { %3431 = vmatmul.mubr.msk.bf16.vlgmr.msra.gmra.mxu1 %vm90_vm1, %v1891_v27 }
0x2b8d   :  { %3443 = vmatpush3.bf16.msra.mxu1 %v4332_v39  ;;  %3446 = vmatprep.mubr.msk.bf16.mxu1 %vm3788_vm0, %v3787_v2 }
0x2b8e   :  { %3444 = vmatprep.subr.bf16.mxu1 %v3787_v2 }
0x2b91   :  { %3445 = vmatpush3.bf16.msra.mxu1 %v4341_v22 }
0x2b92   :  { %3458 = vmatprep.subr.bf16.mxu1 %v3787_v2 }
0x2c44   :  { %v2001_v40 = vpop.f32.mrf.mxu1  ;;  %v2045_v41 = vpop.f32.mrf.mxu0 }
0x2c45   :  { %v4397_v25 = vadd.f32 %v2001_v40, %v4394_v62 }
0x2c46   :  { %v3416_v7 = vpop.f32.mrf.mxu1  ;;  %v3424_v43 = vpop.f32.mrf.mxu0 }
0x2c47   :  { %v2009_v35 = vmul.f32 %v4263_v21, %v4397_v25 }
0x2c48   :  { %v2004_v9 = vpop.f32.mrf.mxu1  ;;  %v2048_v44 = vpop.f32.mrf.mxu0 }
0x2c49   :  { %v2010_v49 = vadd.f32 %v4269_v57, %v2009_v35 }
0x2c4a   :  { %v3417_v38 = vpop.f32.mrf.mxu1  ;;  %v3425_v48 = vpop.f32.mrf.mxu0 }
0x2c4c   :  { %v2085_v50 = vpop.f32.mrf.mxu1 }
0x2c4d   :  { %v2091_v46 = vadd.f32 %v2085_v50, %v2010_v49  ;;  %v364_v50 = vadd.f32 %v3978_v4, %v4394_v62  ;;  %v1066_v4 = vadd.f32 %v4134_v15, %v4394_v62 }
0x2c4e   :  { %v3432_v42 = vpop.f32.mrf.mxu1 }
0x2c4f   :  { %3690 = vtanh.f32 %v2091_v46  ;;  %v2996_v60 = vmul.f32 -1.442695, %v2091_v46  ;;  %v598_v46 = vadd.f32 %v4030_v6, %v4394_v62  ;;  %v1300_v6 = vadd.f32 %v4186_v3, %v4394_v62 }
0x2c50   :  { %v2088_v52 = vpop.f32.mrf.mxu1 }
0x2c51   :  { %3692 = vpow2.f32 %v2996_v60 }
0x2c52   :  { %v3433_v53 = vpop.f32.mrf.mxu1 }
0x2c53   :  { %v832_v53 = vadd.f32 %v4082_v11, %v4394_v62  ;;  %v1768_v11 = vadd.f32 %v4345_v24, %v4394_v62 }
0x2c5c   :  { %v3691_v26 = vpop.eup %3690 }
0x2c5d   :  { %2101 = vrot.lane.b32.xlu1 %v3691_v26, %s3790_s20 }
0x2c5e   :  { %v3693_v61 = vpop.eup %3692 }
0x2c5f   :  { %v2095_v63 = vadd.f32 1.0, %v3693_v61 }
0x2c61   :  { %3694 = vrcp.f32 %v2095_v63  ;;  %v1534_v63 = vadd.f32 %v4258_v28, %v4394_v62 }
0x2c6e   :  { %v3695_v27 = vpop.eup %3694 }
0x2c6f   :  { %v2099_v5 = vmul.f32 %v3695_v27, %v4352_v54 }
0x2ccf   :  { %v2102_v47 = vpop.permute.xlu1 %2101 }
0x2cd0   :  { %v2104_v0 = vmul.f32 %v3695_v27, %v2102_v47 }
0x2cd2   :  { %2106 = vrot.lane.b32.xlu0 %v2104_v0, %s3791_s21 }
0x2d44   :  { %v2107_v8 = vpop.permute.xlu0 %2106 }
0x2d45   :  { %v4405_v10 = vadd.f32 %v2107_v8, %v2099_v5 }
0x2d47   :  { %3696 = vtanh.f32 %v4405_v10 }
0x2d54   :  { %v3697_v59 = vpop.eup %3696 }
0x2d55   :  { %2112 = vrot.lane.b32.xlu1 %v3697_v59, %s3790_s20 }
0x2dc7   :  { %v2113_v12 = vpop.permute.xlu1 %2112 }
0x2dc8   :  { %v2115_v14 = vmul.f32 %v3695_v27, %v2113_v12 }
0x2dca   :  { %v2116_v16 = vpack.c.bf16 %v2115_v14, %v2115_v14 }
0x2dcc   :  { %2118 = vrot.lane.b32.xlu0 %v2116_v16, %s3791_s21 }
0x2e3e   :  { %v2119_v1 = vpop.permute.xlu0 %2118 }
0x2e3f   :  { %3439 = vmatmul.mubr.msk.bf16.vlgmr.msra.gmra.mxu0 %vm90_vm1, %v2119_v1 }
0x2e40   :  { %3451 = vmatpush3.bf16.msra.mxu0 %v4284_v45  ;;  %3454 = vmatprep.mubr.msk.bf16.mxu0 %vm3788_vm0, %v3787_v2 }
0x2e41   :  { %3452 = vmatprep.subr.bf16.mxu0 %v3787_v2 }
0x2e44   :  { %3453 = vmatpush3.bf16.msra.mxu0 %v4293_v51 }
0x2e45   :  { %3466 = vmatprep.subr.bf16.mxu0 %v3787_v2 }
0x2eff   :  { %v2157_v54 = vpop.f32.mrf.mxu0 }
0x2f00   :  { %v2158_v30 = vadd.f32 %v2157_v54, %v2045_v41 }
0x2f01   :  { %v3440_v55 = vpop.f32.mrf.mxu0 }
0x2f02   :  { %v2163_v20 = vadd.f32 %v4300_v58, %v2158_v30 }
0x2f03   :  { %v2160_v56 = vpop.f32.mrf.mxu0 }
0x2f04   :  { %3698 = vtanh.f32 %v2163_v20  ;;  %v2998_v32 = vmul.f32 -1.442695, %v2163_v20 }
0x2f05   :  { %v3441_v23 = vpop.f32.mrf.mxu0 }
0x2f06   :  { %3700 = vpow2.f32 %v2998_v32 }
0x2f11   :  { %v3699_v31 = vpop.eup %3698 }
0x2f12   :  { %2173 = vrot.lane.b32.xlu1 %v3699_v31, %s3790_s20 }
0x2f13   :  { %v3701_v33 = vpop.eup %3700 }
0x2f14   :  { %v2167_v34 = vadd.f32 1.0, %v3701_v33 }
0x2f16   :  { %3702 = vrcp.f32 %v2167_v34 }
0x2f23   :  { %v3703_v36 = vpop.eup %3702 }
0x2f24   :  { %v2171_v41 = vmul.f32 %v3703_v36, %v4368_v29  ;;  %v56_v29 = vlaneseq }
0x2f26   :  { %v4447_v49 = vand.u32 127, %v56_v29 }
0x2f28   :  { %vm369_vm2 = vcmp.eq.s32.totalorder %v4447_v49, 0  ;;  %vm603_vm3 = vcmp.eq.s32.totalorder %v4447_v49, 1  ;;  %vm837_vm4 = vcmp.eq.s32.totalorder %v4447_v49, 2  ;;  %vm1071_vm5 = vcmp.eq.s32.totalorder %v4447_v49, 3 }
0x2f29   :  { %v370_v42 = vsel %vm369_vm2, %v364_v50, 0.0  ;;  %vm1305_vm6 = vcmp.eq.s32.totalorder %v4447_v49, 4  ;;  %vm1539_vm7 = vcmp.eq.s32.totalorder %v4447_v49, 5  ;;  %vm1773_vm8 = vcmp.eq.s32.totalorder %v4447_v49, 6 }
0x2f2a   :  { %v604_v52 = vsel %vm603_vm3, %v598_v46, %v370_v42  ;;  %vm2007_vm9 = vcmp.eq.s32.totalorder %v4447_v49, 7  ;;  %vm2235_vm10 = vcmp.eq.s32.totalorder %v4447_v49, 8  ;;  %vm2463_vm11 = vcmp.eq.s32.totalorder %v4447_v49, 9 }
0x2f2b   :  { %v838_v26 = vsel %vm837_vm4, %v832_v53, %v604_v52  ;;  %vm2691_vm12 = vcmp.eq.s32.totalorder %v4447_v49, 10  ;;  %vm2919_vm13 = vcmp.eq.s32.totalorder %v4447_v49, 11 }
0x2f2c   :  { %v1072_v60 = vsel %vm1071_vm5, %v1066_v4, %v838_v26 }
0x2f2d   :  { %v1306_v61 = vsel %vm1305_vm6, %v1300_v6, %v1072_v60 }
0x2f2e   :  { %v1540_v27 = vsel %vm1539_vm7, %v1534_v63, %v1306_v61 }
0x2f2f   :  { %v1774_v0 = vsel %vm1773_vm8, %v1768_v11, %v1540_v27 }
0x2f30   :  { %v2008_v5 = vsel %vm2007_vm9, %v4397_v25, %v1774_v0 }
0x2f84   :  { %v2174_v37 = vpop.permute.xlu1 %2173 }
0x2f85   :  { %v2176_v40 = vmul.f32 %v3703_v36, %v2174_v37 }
0x2f87   :  { %2178 = vrot.lane.b32.xlu0 %v2176_v40, %s3791_s21 }
0x2ff9   :  { %v2179_v7 = vpop.permute.xlu0 %2178 }
0x2ffa   :  { %v4421_v43 = vadd.f32 %v2179_v7, %v2171_v41 }
0x2ffc   :  { %3704 = vtanh.f32 %v4421_v43 }
0x3009   :  { %v3705_v35 = vpop.eup %3704 }
0x300a   :  { %2184 = vrot.lane.b32.xlu1 %v3705_v35, %s3790_s20 }
0x307c   :  { %v2185_v9 = vpop.permute.xlu1 %2184 }
0x307d   :  { %v2187_v44 = vmul.f32 %v3703_v36, %v2185_v9 }
0x307f   :  { %v2188_v38 = vpack.c.bf16 %v2187_v44, %v2187_v44 }
0x3081   :  { %2190 = vrot.lane.b32.xlu0 %v2188_v38, %s3791_s21 }
0x30f3   :  { %v2191_v48 = vpop.permute.xlu0 %2190 }
0x30f4   :  { %3447 = vmatmul.mubr.msk.bf16.vlgmr.msra.gmra.mxu1 %vm90_vm1, %v2191_v48  ;;  %3455 = vmatmul.mubr.msk.bf16.vlgmr.msra.gmra.mxu0 %vm90_vm1, %v2191_v48 }
0x30f5   :  { %3459 = vmatpush3.bf16.msra.mxu1 %v4222_v13  ;;  %3462 = vmatprep.mubr.msk.bf16.mxu1 %vm3788_vm0, %v3787_v2 }
0x30f6   :  { %3460 = vmatprep.subr.bf16.mxu1 %v3787_v2  ;;  %3467 = vmatpush3.bf16.msra.mxu0 %v4231_v17 }
0x30f7   :  { %3468 = vmatprep.subr.bf16.mxu0 %v3787_v2  ;;  %3470 = vmatprep.mubr.msk.bf16.mxu0 %vm3788_vm0, %v3787_v2 }
0x30f9   :  { %3461 = vmatpush3.bf16.msra.mxu1 %v4240_v18 }
0x30fa   :  { %3469 = vmatpush3.bf16.msra.mxu0 %v4246_v19  ;;  %3474 = vmatprep.subr.bf16.mxu1 %v3787_v2 }
0x30fb   :  { %3482 = vmatprep.subr.bf16.mxu0 %v3787_v2 }
0x30fc   :  { %3463 = vmatmul.mubr.msk.bf16.vlgmr.msra.gmra.mxu1 %vm90_vm1, %v2119_v1 }
0x30fd   :  { %3475 = vmatpush3.bf16.msra.mxu1 %v4332_v39  ;;  %3478 = vmatprep.mubr.msk.bf16.mxu1 %vm3788_vm0, %v3787_v2 }
0x30fe   :  { %3476 = vmatprep.subr.bf16.mxu1 %v3787_v2 }
0x3101   :  { %3477 = vmatpush3.bf16.msra.mxu1 %v4341_v22 }
0x3102   :  { %3490 = vmatprep.subr.bf16.mxu1 %v3787_v2 }
0x31b4   :  { %v2229_v15 = vpop.f32.mrf.mxu1  ;;  %v2273_v47 = vpop.f32.mrf.mxu0 }
0x31b5   :  { %v2230_v3 = vadd.f32 %v2229_v15, %v4394_v62 }
0x31b6   :  { %v3448_v8 = vpop.f32.mrf.mxu1  ;;  %v3456_v59 = vpop.f32.mrf.mxu0 }
0x31b7   :  { %v4474_v28 = vsel %vm2235_vm10, %v2230_v3, %v2008_v5  ;;  %v2237_v12 = vmul.f32 %v4263_v21, %v2230_v3 }
0x31b8   :  { %v2232_v14 = vpop.f32.mrf.mxu1  ;;  %v2276_v16 = vpop.f32.mrf.mxu0 }
0x31b9   :  { %v2238_v54 = vadd.f32 %v4269_v57, %v2237_v12 }
0x31ba   :  { %v3449_v24 = vpop.f32.mrf.mxu1  ;;  %v3457_v1 = vpop.f32.mrf.mxu0 }
0x31bc   :  { %v2313_v30 = vpop.f32.mrf.mxu1 }
0x31bd   :  { %v2319_v55 = vadd.f32 %v2313_v30, %v2238_v54 }
0x31be   :  { %v3464_v20 = vpop.f32.mrf.mxu1 }
0x31bf   :  { %3706 = vtanh.f32 %v2319_v55  ;;  %v3002_v25 = vmul.f32 -1.442695, %v2319_v55 }
0x31c0   :  { %v2316_v56 = vpop.f32.mrf.mxu1 }
0x31c1   :  { %3708 = vpow2.f32 %v3002_v25 }
0x31c2   :  { %v3465_v23 = vpop.f32.mrf.mxu1 }
0x31cc   :  { %v3707_v31 = vpop.eup %3706 }
0x31cd   :  { %2329 = vrot.lane.b32.xlu1 %v3707_v31, %s3790_s20 }
0x31ce   :  { %v3709_v32 = vpop.eup %3708 }
0x31cf   :  { %v2323_v33 = vadd.f32 1.0, %v3709_v32 }
0x31d1   :  { %3710 = vrcp.f32 %v2323_v33 }
0x31de   :  { %v3711_v34 = vpop.eup %3710 }
0x31df   :  { %v2327_v40 = vmul.f32 %v3711_v34, %v4405_v10 }
0x323f   :  { %v2330_v36 = vpop.permute.xlu1 %2329 }
0x3240   :  { %v2332_v37 = vmul.f32 %v3711_v34, %v2330_v36 }
0x3242   :  { %2334 = vrot.lane.b32.xlu0 %v2332_v37, %s3791_s21 }
0x32b4   :  { %v2335_v41 = vpop.permute.xlu0 %2334 }
0x32b5   :  { %v4481_v7 = vadd.f32 %v2335_v41, %v2327_v40 }
0x32b7   :  { %3712 = vtanh.f32 %v4481_v7 }
0x32c4   :  { %v3713_v35 = vpop.eup %3712 }
0x32c5   :  { %2340 = vrot.lane.b32.xlu1 %v3713_v35, %s3790_s20 }
0x3337   :  { %v2341_v9 = vpop.permute.xlu1 %2340 }
0x3338   :  { %v2343_v44 = vmul.f32 %v3711_v34, %v2341_v9 }
0x333a   :  { %v2344_v38 = vpack.c.bf16 %v2343_v44, %v2343_v44 }
0x333c   :  { %2346 = vrot.lane.b32.xlu0 %v2344_v38, %s3791_s21 }
0x33ae   :  { %v2347_v48 = vpop.permute.xlu0 %2346 }
0x33af   :  { %3471 = vmatmul.mubr.msk.bf16.vlgmr.msra.gmra.mxu0 %vm90_vm1, %v2347_v48 }
0x33b0   :  { %3483 = vmatpush3.bf16.msra.mxu0 %v4284_v45  ;;  %3486 = vmatprep.mubr.msk.bf16.mxu0 %vm3788_vm0, %v3787_v2 }
0x33b1   :  { %3484 = vmatprep.subr.bf16.mxu0 %v3787_v2 }
0x33b4   :  { %3485 = vmatpush3.bf16.msra.mxu0 %v4293_v51 }
0x33b5   :  { %3498 = vmatprep.subr.bf16.mxu0 %v3787_v2 }
0x346f   :  { %v2385_v10 = vpop.f32.mrf.mxu0 }
0x3470   :  { %v2386_v29 = vadd.f32 %v2385_v10, %v2273_v47 }
0x3471   :  { %v3472_v50 = vpop.f32.mrf.mxu0 }
0x3472   :  { %v2391_v46 = vadd.f32 %v4300_v58, %v2386_v29 }
0x3473   :  { %v2388_v42 = vpop.f32.mrf.mxu0 }
0x3474   :  { %3714 = vtanh.f32 %v2391_v46  ;;  %v3004_v26 = vmul.f32 -1.442695, %v2391_v46 }
0x3475   :  { %v3473_v52 = vpop.f32.mrf.mxu0 }
0x3476   :  { %3716 = vpow2.f32 %v3004_v26 }
0x3481   :  { %v3715_v53 = vpop.eup %3714 }
0x3482   :  { %2401 = vrot.lane.b32.xlu1 %v3715_v53, %s3790_s20 }
0x3483   :  { %v3717_v4 = vpop.eup %3716 }
0x3484   :  { %v2395_v60 = vadd.f32 1.0, %v3717_v4 }
0x3486   :  { %3718 = vrcp.f32 %v2395_v60 }
0x3493   :  { %v3719_v6 = vpop.eup %3718 }
0x3494   :  { %v2399_v27 = vmul.f32 %v3719_v6, %v4421_v43 }
0x34f4   :  { %v2402_v61 = vpop.permute.xlu1 %2401 }
0x34f5   :  { %v2404_v63 = vmul.f32 %v3719_v6, %v2402_v61 }
0x34f7   :  { %2406 = vrot.lane.b32.xlu0 %v2404_v63, %s3791_s21 }
0x3569   :  { %v2407_v11 = vpop.permute.xlu0 %2406 }
0x356a   :  { %v4497_v15 = vadd.f32 %v2407_v11, %v2399_v27 }
0x356c   :  { %3720 = vtanh.f32 %v4497_v15 }
0x3579   :  { %v3721_v47 = vpop.eup %3720 }
0x357a   :  { %2412 = vrot.lane.b32.xlu1 %v3721_v47, %s3790_s20 }
0x35ec   :  { %v2413_v0 = vpop.permute.xlu1 %2412 }
0x35ed   :  { %v2415_v3 = vmul.f32 %v3719_v6, %v2413_v0 }
0x35ef   :  { %v2416_v5 = vpack.c.bf16 %v2415_v3, %v2415_v3 }
0x35f1   :  { %2418 = vrot.lane.b32.xlu0 %v2416_v5, %s3791_s21 }
0x3663   :  { %v2419_v8 = vpop.permute.xlu0 %2418 }
0x3664   :  { %3479 = vmatmul.mubr.msk.bf16.vlgmr.msra.gmra.mxu1 %vm90_vm1, %v2419_v8  ;;  %3487 = vmatmul.mubr.msk.bf16.vlgmr.msra.gmra.mxu0 %vm90_vm1, %v2419_v8 }
0x3665   :  { %3491 = vmatpush3.bf16.msra.mxu1 %v4222_v13  ;;  %3494 = vmatprep.mubr.msk.bf16.mxu1 %vm3788_vm0, %v3787_v2 }
0x3666   :  { %3492 = vmatprep.subr.bf16.mxu1 %v3787_v2  ;;  %3499 = vmatpush3.bf16.msra.mxu0 %v4231_v17 }
0x3667   :  { %3500 = vmatprep.subr.bf16.mxu0 %v3787_v2  ;;  %3502 = vmatprep.mubr.msk.bf16.mxu0 %vm3788_vm0, %v3787_v2 }
0x3669   :  { %3493 = vmatpush3.bf16.msra.mxu1 %v4240_v18 }
0x366a   :  { %3501 = vmatpush3.bf16.msra.mxu0 %v4246_v19  ;;  %3506 = vmatprep.subr.bf16.mxu1 %v3787_v2 }
0x366b   :  { %3514 = vmatprep.subr.bf16.mxu0 %v3787_v2 }
0x366c   :  { %3495 = vmatmul.mubr.msk.bf16.vlgmr.msra.gmra.mxu1 %vm90_vm1, %v2347_v48 }
0x366d   :  { %3507 = vmatpush3.bf16.msra.mxu1 %v4332_v39  ;;  %3510 = vmatprep.mubr.msk.bf16.mxu1 %vm3788_vm0, %v3787_v2 }
0x366e   :  { %3508 = vmatprep.subr.bf16.mxu1 %v3787_v2 }
0x3671   :  { %3509 = vmatpush3.bf16.msra.mxu1 %v4341_v22 }
0x3672   :  { %3522 = vmatprep.subr.bf16.mxu1 %v3787_v2 }
0x3724   :  { %v2457_v43 = vpop.f32.mrf.mxu1  ;;  %v2501_v59 = vpop.f32.mrf.mxu0 }
0x3725   :  { %v2458_v12 = vadd.f32 %v2457_v43, %v4394_v62 }
0x3726   :  { %v3480_v14 = vpop.f32.mrf.mxu1  ;;  %v3488_v16 = vpop.f32.mrf.mxu0 }
0x3727   :  { %v4526_v24 = vsel %vm2463_vm11, %v2458_v12, %v4474_v28  ;;  %v2465_v1 = vmul.f32 %v4263_v21, %v2458_v12 }
0x3728   :  { %v2460_v54 = vpop.f32.mrf.mxu1  ;;  %v2504_v30 = vpop.f32.mrf.mxu0 }
0x3729   :  { %v2466_v56 = vadd.f32 %v4269_v57, %v2465_v1 }
0x372a   :  { %v3481_v55 = vpop.f32.mrf.mxu1  ;;  %v3489_v20 = vpop.f32.mrf.mxu0 }
0x372c   :  { %v2541_v23 = vpop.f32.mrf.mxu1 }
0x372d   :  { %v2547_v31 = vadd.f32 %v2541_v23, %v2466_v56 }
0x372e   :  { %v3496_v25 = vpop.f32.mrf.mxu1 }
0x372f   :  { %3722 = vtanh.f32 %v2547_v31  ;;  %v3008_v36 = vmul.f32 -1.442695, %v2547_v31 }
0x3730   :  { %v2544_v32 = vpop.f32.mrf.mxu1 }
0x3731   :  { %3724 = vpow2.f32 %v3008_v36 }
0x3732   :  { %v3497_v33 = vpop.f32.mrf.mxu1 }
0x373c   :  { %v3723_v34 = vpop.eup %3722 }
0x373d   :  { %2557 = vrot.lane.b32.xlu1 %v3723_v34, %s3790_s20 }
0x373e   :  { %v3725_v28 = vpop.eup %3724 }
0x373f   :  { %v2551_v37 = vadd.f32 1.0, %v3725_v28 }
0x3741   :  { %3726 = vrcp.f32 %v2551_v37 }
0x374e   :  { %v3727_v40 = vpop.eup %3726 }
0x374f   :  { %v2555_v9 = vmul.f32 %v3727_v40, %v4481_v7 }
0x37af   :  { %v2558_v41 = vpop.permute.xlu1 %2557 }
0x37b0   :  { %v2560_v35 = vmul.f32 %v3727_v40, %v2558_v41 }
0x37b2   :  { %2562 = vrot.lane.b32.xlu0 %v2560_v35, %s3791_s21 }
0x3824   :  { %v2563_v44 = vpop.permute.xlu0 %2562 }
0x3825   :  { %v4533_v38 = vadd.f32 %v2563_v44, %v2555_v9 }
0x3827   :  { %3728 = vtanh.f32 %v4533_v38 }
0x3834   :  { %v3729_v48 = vpop.eup %3728 }
0x3835   :  { %2568 = vrot.lane.b32.xlu1 %v3729_v48, %s3790_s20 }
0x38a7   :  { %v2569_v10 = vpop.permute.xlu1 %2568 }
0x38a8   :  { %v2571_v29 = vmul.f32 %v3727_v40, %v2569_v10 }
0x38aa   :  { %v2572_v50 = vpack.c.bf16 %v2571_v29, %v2571_v29 }
0x38ac   :  { %2574 = vrot.lane.b32.xlu0 %v2572_v50, %s3791_s21 }
0x391e   :  { %v2575_v46 = vpop.permute.xlu0 %2574 }
0x391f   :  { %3503 = vmatmul.mubr.msk.bf16.vlgmr.msra.gmra.mxu0 %vm90_vm1, %v2575_v46 }
0x3920   :  { %3515 = vmatpush3.bf16.msra.mxu0 %v4284_v45  ;;  %3518 = vmatprep.mubr.msk.bf16.mxu0 %vm3788_vm0, %v3787_v2 }
0x3921   :  { %3516 = vmatprep.subr.bf16.mxu0 %v3787_v2 }
0x3924   :  { %3517 = vmatpush3.bf16.msra.mxu0 %v4293_v51 }
0x3925   :  { %3530 = vmatprep.subr.bf16.mxu0 %v3787_v2 }
0x39df   :  { %v2613_v7 = vpop.f32.mrf.mxu0 }
0x39e0   :  { %v2614_v42 = vadd.f32 %v2613_v7, %v2501_v59 }
0x39e1   :  { %v3504_v52 = vpop.f32.mrf.mxu0 }
0x39e2   :  { %v2619_v53 = vadd.f32 %v4300_v58, %v2614_v42 }
0x39e3   :  { %v2616_v26 = vpop.f32.mrf.mxu0 }
0x39e4   :  { %3730 = vtanh.f32 %v2619_v53  ;;  %v3010_v45 = vmul.f32 -1.442695, %v2619_v53 }
0x39e5   :  { %v3505_v4 = vpop.f32.mrf.mxu0 }
0x39e6   :  { %3732 = vpow2.f32 %v3010_v45 }
0x39f1   :  { %v3731_v60 = vpop.eup %3730 }
0x39f2   :  { %2629 = vrot.lane.b32.xlu1 %v3731_v60, %s3790_s20 }
0x39f3   :  { %v3733_v6 = vpop.eup %3732 }
0x39f4   :  { %v2623_v61 = vadd.f32 1.0, %v3733_v6 }
0x39f6   :  { %3734 = vrcp.f32 %v2623_v61 }
0x3a03   :  { %v3735_v63 = vpop.eup %3734 }
0x3a04   :  { %v2627_v11 = vmul.f32 %v3735_v63, %v4497_v15 }
0x3a64   :  { %v2630_v51 = vpop.permute.xlu1 %2629 }
0x3a65   :  { %v2632_v27 = vmul.f32 %v3735_v63, %v2630_v51 }
0x3a67   :  { %2634 = vrot.lane.b32.xlu0 %v2632_v27, %s3791_s21 }
0x3ad9   :  { %v2635_v47 = vpop.permute.xlu0 %2634 }
0x3ada   :  { %v4549_v0 = vadd.f32 %v2635_v47, %v2627_v11 }
0x3adc   :  { %3736 = vtanh.f32 %v4549_v0 }
0x3ae9   :  { %v3737_v3 = vpop.eup %3736 }
0x3aea   :  { %2640 = vrot.lane.b32.xlu1 %v3737_v3, %s3790_s20 }
0x3b5c   :  { %v2641_v5 = vpop.permute.xlu1 %2640 }
0x3b5d   :  { %v2643_v8 = vmul.f32 %v3735_v63, %v2641_v5 }
0x3b5f   :  { %v2644_v43 = vpack.c.bf16 %v2643_v8, %v2643_v8 }
0x3b61   :  { %2646 = vrot.lane.b32.xlu0 %v2644_v43, %s3791_s21 }
0x3bd3   :  { %v2647_v59 = vpop.permute.xlu0 %2646 }
0x3bd4   :  { %3511 = vmatmul.mubr.msk.bf16.vlgmr.msra.gmra.mxu1 %vm90_vm1, %v2647_v59  ;;  %3519 = vmatmul.mubr.msk.bf16.vlgmr.msra.gmra.mxu0 %vm90_vm1, %v2647_v59 }
0x3bd5   :  { %3523 = vmatpush3.bf16.msra.mxu1 %v4222_v13  ;;  %3526 = vmatprep.mubr.msk.bf16.mxu1 %vm3788_vm0, %v3787_v2 }
0x3bd6   :  { %3524 = vmatprep.subr.bf16.mxu1 %v3787_v2  ;;  %3531 = vmatpush3.bf16.msra.mxu0 %v4231_v17 }
0x3bd7   :  { %3532 = vmatprep.subr.bf16.mxu0 %v3787_v2  ;;  %3534 = vmatprep.mubr.msk.bf16.mxu0 %vm3788_vm0, %v3787_v2 }
0x3bd9   :  { %3525 = vmatpush3.bf16.msra.mxu1 %v4240_v18 }
0x3bda   :  { %3533 = vmatpush3.bf16.msra.mxu0 %v4246_v19  ;;  %3538 = vmatprep.subr.bf16.mxu1 %v3787_v2 }
0x3bdc   :  { %3527 = vmatmul.mubr.msk.bf16.vlgmr.msra.gmra.mxu1 %vm90_vm1, %v2575_v46 }
0x3bdd   :  { %3539 = vmatpush3.bf16.msra.mxu1 %v4332_v39  ;;  %3542 = vmatprep.mubr.msk.bf16.mxu1 %vm3788_vm0, %v3787_v2 }
0x3bde   :  { %3540 = vmatprep.subr.bf16.mxu1 %v3787_v2 }
0x3be1   :  { %3541 = vmatpush3.bf16.msra.mxu1 %v4341_v22 }
0x3c94   :  { %v2685_v13 = vpop.f32.mrf.mxu1  ;;  %v2729_v17 = vpop.f32.mrf.mxu0 }
0x3c95   :  { %v2686_v18 = vadd.f32 %v2685_v13, %v4394_v62 }
0x3c96   :  { %v3512_v19 = vpop.f32.mrf.mxu1  ;;  %v3520_v15 = vpop.f32.mrf.mxu0 }
0x3c97   :  { %v2693_v12 = vmul.f32 %v4263_v21, %v2686_v18  ;;  %v4577_v14 = vsel %vm2691_vm12, %v2686_v18, %v4526_v24 }
0x3c98   :  { %v2688_v39 = vpop.f32.mrf.mxu1  ;;  %v2732_v16 = vpop.f32.mrf.mxu0 }
0x3c99   :  { %v2694_v2 = vadd.f32 %v4269_v57, %v2693_v12 }
0x3c9a   :  { %v3513_v1 = vpop.f32.mrf.mxu1  ;;  %v3521_v54 = vpop.f32.mrf.mxu0 }
0x3c9c   :  { %v2769_v22 = vpop.f32.mrf.mxu1 }
0x3c9d   :  { %v2775_v30 = vadd.f32 %v2769_v22, %v2694_v2 }
0x3c9e   :  { %v3528_v55 = vpop.f32.mrf.mxu1 }
0x3c9f   :  { %3738 = vtanh.f32 %v2775_v30  ;;  %v3014_v31 = vmul.f32 -1.442695, %v2775_v30 }
0x3ca0   :  { %v2772_v20 = vpop.f32.mrf.mxu1 }
0x3ca1   :  { %3740 = vpow2.f32 %v3014_v31 }
0x3ca2   :  { %v3529_v56 = vpop.f32.mrf.mxu1 }
0x3cac   :  { %v3739_v23 = vpop.eup %3738 }
0x3cad   :  { %2785 = vrot.lane.b32.xlu1 %v3739_v23, %s3790_s20 }
0x3cae   :  { %v3741_v21 = vpop.eup %3740 }
0x3caf   :  { %v2779_v24 = vadd.f32 1.0, %v3741_v21 }
0x3cb1   :  { %3742 = vrcp.f32 %v2779_v24 }
0x3cbe   :  { %v3743_v25 = vpop.eup %3742 }
0x3cbf   :  { %v2783_v57 = vmul.f32 %v3743_v25, %v4533_v38 }
0x3d1f   :  { %v2786_v32 = vpop.permute.xlu1 %2785 }
0x3d20   :  { %v2788_v33 = vmul.f32 %v3743_v25, %v2786_v32 }
0x3d22   :  { %2790 = vrot.lane.b32.xlu0 %v2788_v33, %s3791_s21 }
0x3d94   :  { %v2791_v34 = vpop.permute.xlu0 %2790 }
0x3d95   :  { %v2793_v36 = vadd.f32 %v2791_v34, %v2783_v57 }
0x3d97   :  { %3744 = vtanh.f32 %v2793_v36 }
0x3da4   :  { %v3745_v28 = vpop.eup %3744 }
0x3da5   :  { %2796 = vrot.lane.b32.xlu1 %v3745_v28, %s3790_s20 }
0x3e17   :  { %v2797_v37 = vpop.permute.xlu1 %2796 }
0x3e18   :  { %v2799_v40 = vmul.f32 %v3743_v25, %v2797_v37 }
0x3e1a   :  { %v2800_v41 = vpack.c.bf16 %v2799_v40, %v2799_v40 }
0x3e1c   :  { %2802 = vrot.lane.b32.xlu0 %v2800_v41, %s3791_s21 }
0x3e8e   :  { %v2803_v35 = vpop.permute.xlu0 %2802 }
0x3e8f   :  { %3535 = vmatmul.mubr.msk.bf16.vlgmr.msra.gmra.mxu0 %vm90_vm1, %v2803_v35 }
0x3f4f   :  { %v2841_v9 = vpop.f32.mrf.mxu0 }
0x3f50   :  { %v2842_v44 = vadd.f32 %v2841_v9, %v2729_v17 }
0x3f51   :  { %v3536_v48 = vpop.f32.mrf.mxu0 }
0x3f52   :  { %v2847_v10 = vadd.f32 %v4300_v58, %v2842_v44 }
0x3f53   :  { %v2844_v38 = vpop.f32.mrf.mxu0 }
0x3f54   :  { %3746 = vtanh.f32 %v2847_v10  ;;  %v3016_v46 = vmul.f32 -1.442695, %v2847_v10 }
0x3f55   :  { %v3537_v29 = vpop.f32.mrf.mxu0 }
0x3f56   :  { %3748 = vpow2.f32 %v3016_v46 }
0x3f61   :  { %v3747_v50 = vpop.eup %3746 }
0x3f62   :  { %2857 = vrot.lane.b32.xlu1 %v3747_v50, %s3790_s20 }
0x3f63   :  { %v3749_v7 = vpop.eup %3748 }
0x3f64   :  { %v2851_v42 = vadd.f32 1.0, %v3749_v7 }
0x3f66   :  { %3750 = vrcp.f32 %v2851_v42 }
0x3f73   :  { %v3751_v52 = vpop.eup %3750 }
0x3f74   :  { %v2855_v4 = vmul.f32 %v3751_v52, %v4549_v0 }
0x3fd4   :  { %v2858_v53 = vpop.permute.xlu1 %2857 }
0x3fd5   :  { %v2860_v26 = vmul.f32 %v3751_v52, %v2858_v53 }
0x3fd7   :  { %2862 = vrot.lane.b32.xlu0 %v2860_v26, %s3791_s21 }
0x4049   :  { %v2863_v60 = vpop.permute.xlu0 %2862 }
0x404a   :  { %v2865_v58 = vadd.f32 %v2863_v60, %v2855_v4 }
0x404c   :  { %3752 = vtanh.f32 %v2865_v58 }
0x4059   :  { %v3753_v45 = vpop.eup %3752 }
0x405a   :  { %2868 = vrot.lane.b32.xlu1 %v3753_v45, %s3790_s20  ;;  %s3765_s20 = scalar_lea.vmem %s2929_s25, 128 }
0x405b   :  { %p3766_p0 = scmp.ne.s32.totalorder %s2929_s25, %s3765_s20  ;;  %p3771_p2 = scmp.lt.s32.totalorder %s3765_s20, %s3765_s20 }
0x405d   :  { %p3772_p3 = por %p3771_p2, %p3770_p1 }
0x405f   :  { %p3773_p4 = pnand %p3772_p3, %p3766_p0 }
0x40cc   :  { %v2869_v6 = vpop.permute.xlu1 %2868 }
0x40cd   :  { %v2871_v61 = vmul.f32 %v3751_v52, %v2869_v6 }
0x40cf   :  { %v2872_v63 = vpack.c.bf16 %v2871_v61, %v2871_v61 }
0x40d1   :  { %2874 = vrot.lane.b32.xlu0 %v2872_v63, %s3791_s21 }
0x4143   :  { %v2875_v51 = vpop.permute.xlu0 %2874 }
0x4144   :  { %3543 = vmatmul.mubr.msk.bf16.vlgmr.msra.gmra.mxu1 %vm90_vm1, %v2875_v51 }
0x4204   :  { %v2913_v27 = vpop.f32.mrf.mxu1 }
0x4205   :  { %v2914_v11 = vadd.f32 %v2913_v27, %v4394_v62 }
0x4206   :  { %v3544_v47 = vpop.f32.mrf.mxu1 }
0x4207   :  { %v2920_v0 = vsel %vm2919_vm13, %v2914_v11, %v4577_v14 }
0x4208   :  { %v2916_v3 = vpop.f32.mrf.mxu1  ;;  %2921 = vst [vmem:[#allocation3] sm:$0xff] %v2920_v0 }
0x4209   :  { %3776 = shalt.err (!%p3773_p4)
}
0x420a   :  { %2931 = dma.vmem_to_hbm [thread:$0]  %s2929_s25, 128, %s4608_s9, [#allocation4]   ;;  %v3545_v49 = vpop.f32.mrf.mxu1 }
0x420b   :  { %3785 = dma.done.wait [#allocation4], 128  }
0x420c   :  { %3786 = vsyncadd [#allocation4], 4294967168 }
0x420d   :  { %2935 = vsyncpa [#allocation4], 1 }

</bundles_post_ra>
